<compile_context>
chip_gen: v6e
topology: v6e:2x2x1
jax: 0.10.0
libtpu: 0.0.40
codegen_flags: <defaults>
</compile_context>

<pallas_src>
import jax
import jax.numpy as jnp
from jax import lax
from jax.experimental import pallas as pl
from jax.experimental.pallas import tpu as pltpu

SEQ = 28           # time steps (image rows)
IN = 28            # input features per step (image cols)
HIDDEN = 64        # LSTM hidden size
NUM_CLASSES = 10
CLASSES_PAD = 128  # lane-dense output width


def _round_up(n, m):
    return ((n + m - 1) // m) * m


def lstm_kernel(gx_ref, w_hh_ref, w_fc_ref, b_fc_ref, o_ref):
    """gx_ref: (SEQ, TB, 4H) bf16, precomputed x @ W_ih + (b_ih + b_hh), time-major.
    w_hh_ref: (H, 4H) bf16.  w_fc_ref: (H, 128) f32 (classes zero-padded).
    b_fc_ref: (1, 128) f32 (-1e30 in padded columns).  o_ref: (TB, 128) f32."""
    H = HIDDEN
    w_hh = w_hh_ref[...]        # resident weights, hoisted out of the time loop

    # sigmoid(x) = 0.5*tanh(0.5*x) + 0.5 for the i/f/o gates, plain tanh for g:
    # one aligned 256-lane tanh per step + per-gate affine fixup (VPU).
    lane = lax.broadcasted_iota(jnp.int32, (1, 4 * H), 1)
    is_g = jnp.logical_and(lane >= 2 * H, lane < 3 * H)
    pre = jnp.where(is_g, jnp.float32(1.0), jnp.float32(0.5))   # scale before tanh
    post = pre                                                  # scale after tanh
    off = jnp.where(is_g, jnp.float32(0.0), jnp.float32(0.5))   # offset after tanh

    def activate(gates):
        return jnp.tanh(gates * pre) * post + off

    # --- step 0 peeled: h = c = 0, so the gates are just the input projection ---
    act0 = activate(gx_ref[0].astype(jnp.float32))
    c0 = act0[:, 0:H] * act0[:, 2 * H:3 * H]            # i * g   (f * c term is 0)
    h0 = act0[:, 3 * H:4 * H] * jnp.tanh(c0)

    # --- steps 1 .. SEQ-1 (serial recurrence) ---
    def step(t, carry):
        h, c = carry
        gates = gx_ref[t].astype(jnp.float32) + jnp.dot(
            h.astype(jnp.bfloat16), w_hh, preferred_element_type=jnp.float32)
        act = activate(gates)
        c = act[:, H:2 * H] * c + act[:, 0:H] * act[:, 2 * H:3 * H]
        h = act[:, 3 * H:4 * H] * jnp.tanh(c)
        return h, c

    h, _ = lax.fori_loop(1, SEQ, step, (h0, c0), unroll=True)

    # Final hidden state -> fc -> softmax.  Padded logit columns are -1e30 (f32)
    # so their exp is exactly 0; normalization uses an EXACT divide so rows sum
    # to 1 (the approx reciprocal caused the previous sum-to-1 failure).
    logits = (jnp.dot(h, w_fc_ref[...], preferred_element_type=jnp.float32)
              + b_fc_ref[...])                                   # (TB, 128) f32
    m = jnp.max(logits, axis=1, keepdims=True)
    e = jnp.exp(logits - m)
    denom = jnp.sum(e, axis=1, keepdims=True)
    o_ref[...] = (e / denom).astype(o_ref.dtype)


def _choose_tile(batch, tb):
    """Batch tile: multiple of 16 (bf16 sublane packing).  For larger batches,
    prefer >= 2 grid tiles so dimension_semantics=("parallel",) can shard the
    batch across v7x's two TensorCores."""
    b16 = _round_up(batch, 16)
    tb = max(16, _round_up(tb, 16))
    if b16 <= tb:
        if b16 >= 64:
            return _round_up((b16 + 1) // 2, 16)   # split into ~2 tiles
        return b16
    return tb


def lstm_forward(x, w_ih, w_hh, b_ih, b_hh, w_fc, b_fc, *, tb=256):
    """x: (B, 1, 28, 28) (any (B, 28*28) layout).  Params in PyTorch layout:
    w_ih (4H, IN), w_hh (4H, H), b_ih/b_hh (4H,), w_fc (10, H), b_fc (10,).
    Returns (B, 10) softmax probabilities."""
    B = x.shape[0]
    H = HIDDEN

    # Same as torch: x.view(B, 28, -1)
    xs = x.reshape(B, SEQ, -1).astype(jnp.float32)                 # (B, T, IN)

    # Hoisted input projection with fused bias: one big lane-dense matmul
    # (bf16 operands / f32 accumulation), stored bf16 to halve HBM->VMEM bytes.
    gx = jnp.einsum('bti,gi->btg', xs.astype(jnp.bfloat16),
                    w_ih.astype(jnp.bfloat16),
                    preferred_element_type=jnp.float32)            # (B, T, 4H)
    gx = (gx + (b_ih + b_hh)[None, None, :]).astype(jnp.bfloat16)

    TB = _choose_tile(B, tb)
    Bp = _round_up(B, TB)
    if Bp != B:
        gx = jnp.pad(gx, ((0, Bp - B), (0, 0), (0, 0)))
    gx_tm = jnp.transpose(gx, (1, 0, 2))                           # (T, Bp, 4H)

    # Kernel-layout params (stored (in, out) so the kernel computes h @ W).
    w_hh_k = w_hh.T.astype(jnp.bfloat16)                           # (H, 4H)
    w_fc_k = jnp.zeros((H, CLASSES_PAD), jnp.float32).at[:, :NUM_CLASSES].set(
        w_fc.T.astype(jnp.float32))
    b_fc_k = jnp.full((1, CLASSES_PAD), -1e30, jnp.float32).at[0, :NUM_CLASSES].set(
        b_fc.astype(jnp.float32))

    grid = (Bp // TB,)
    out = pl.pallas_call(
        lstm_kernel,
        out_shape=jax.ShapeDtypeStruct((Bp, CLASSES_PAD), jnp.float32),
        grid_spec=pl.GridSpec(
            grid=grid,
            in_specs=[
                pl.BlockSpec((SEQ, TB, 4 * H), lambda i: (0, i, 0)),   # gates_x tile
                pl.BlockSpec((H, 4 * H), lambda i: (0, 0)),            # W_hh (resident)
                pl.BlockSpec((H, CLASSES_PAD), lambda i: (0, 0)),      # W_fc (padded)
                pl.BlockSpec((1, CLASSES_PAD), lambda i: (0, 0)),      # b_fc (padded)
            ],
            out_specs=pl.BlockSpec((TB, CLASSES_PAD), lambda i: (i, 0)),
        ),
        compiler_params=pltpu.CompilerParams(
            dimension_semantics=("parallel",)),
    )(gx_tm, w_hh_k, w_fc_k, b_fc_k)
    return out[:B, :NUM_CLASSES]


def lstm_reference(x, w_ih, w_hh, b_ih, b_hh, w_fc, b_fc):
    """Pure-JAX reference mirroring the kernel's bf16 matmul operands."""
    B = x.shape[0]
    H = HIDDEN
    xs = x.reshape(B, SEQ, -1).astype(jnp.float32)
    gx = jnp.einsum('bti,gi->btg', xs.astype(jnp.bfloat16),
                    w_ih.astype(jnp.bfloat16),
                    preferred_element_type=jnp.float32)
    gx = (gx + (b_ih + b_hh)[None, None, :]).astype(jnp.bfloat16).astype(jnp.float32)
    w_hh_b = w_hh.T.astype(jnp.bfloat16)

    def step(carry, g_x):
        h, c = carry
        g = g_x + jnp.dot(h.astype(jnp.bfloat16), w_hh_b,
                          preferred_element_type=jnp.float32)
        i = jax.nn.sigmoid(g[:, 0 * H:1 * H])
        f = jax.nn.sigmoid(g[:, 1 * H:2 * H])
        gg = jnp.tanh(g[:, 2 * H:3 * H])
        o = jax.nn.sigmoid(g[:, 3 * H:4 * H])
        c = f * c + i * gg
        h = o * jnp.tanh(c)
        return (h, c), None

    init = (jnp.zeros((B, H), jnp.float32), jnp.zeros((B, H), jnp.float32))
    (h, _), _ = lax.scan(step, init, jnp.transpose(gx, (1, 0, 2)))
    logits = h @ w_fc.T.astype(jnp.float32) + b_fc[None, :].astype(jnp.float32)
    return jax.nn.softmax(logits, axis=1)


def init_params(key):
    """PyTorch-default-style init, PyTorch layouts (weights are (out, in))."""
    k1, k2, k3, k4, k5, k6 = jax.random.split(key, 6)
    s = 1.0 / jnp.sqrt(float(HIDDEN))
    w_ih = jax.random.uniform(k1, (4 * HIDDEN, IN), jnp.float32, -s, s)
    w_hh = jax.random.uniform(k2, (4 * HIDDEN, HIDDEN), jnp.float32, -s, s)
    b_ih = jax.random.uniform(k3, (4 * HIDDEN,), jnp.float32, -s, s)
    b_hh = jax.random.uniform(k4, (4 * HIDDEN,), jnp.float32, -s, s)
    w_fc = jax.random.uniform(k5, (NUM_CLASSES, HIDDEN), jnp.float32, -s, s)
    b_fc = jax.random.uniform(k6, (NUM_CLASSES,), jnp.float32, -s, s)
    return w_ih, w_hh, b_ih, b_hh, w_fc, b_fc


if __name__ == "__main__":
    key = jax.random.PRNGKey(0)
    kx, kp = jax.random.split(key)
    B = 8
    # MNIST-like batch (B, 1, 28, 28); the module views it as (B, 28, 28).
    x = jax.random.normal(kx, (B, 1, 28, 28), jnp.float32)
    params = init_params(kp)

    out = lstm_forward(x, *params)
    out = jax.block_until_ready(out)
    ref = lstm_reference(x, *params)

    assert out.shape == (B, NUM_CLASSES)
    assert bool(jnp.all(jnp.isfinite(out)))
    # softmax rows sum to 1 (exact divide in the kernel)
    assert bool(jnp.all(jnp.abs(jnp.sum(out, axis=1) - 1.0) < 1e-3))
    # matches the pure-JAX LSTM reference
    max_err = float(jnp.max(jnp.abs(out - ref)))
    assert max_err < 5e-3, max_err
    print("KERNEL_OK")
</pallas_src>

<mosaic_0001>
module attributes {stable_mosaic.version = 11 : i64} {
  func.func @lstm_kernel(%arg0: i32, %arg1: memref<28x16x256xbf16, #tpu.memory_space<vmem>>, %arg2: memref<64x256xbf16, #tpu.memory_space<vmem>>, %arg3: memref<64x128xf32, #tpu.memory_space<vmem>>, %arg4: memref<1x128xf32, #tpu.memory_space<vmem>>, %arg5: memref<16x128xf32, #tpu.memory_space<vmem>>) attributes {dimension_semantics = [#tpu.dimension_semantics<parallel>], iteration_bounds = array<i64: 1>, scalar_prefetch = 0 : i64, scratch_operands = 0 : i64, tpu.core_type = #tpu.core_type<tc>, window_params = [{transform_indices = @transform_0, window_bounds = array<i64: 28, 16, 256>}, {pipeline_mode = #tpu.pipeline_mode<synchronous>, transform_indices = @transform_1, window_bounds = array<i64: 64, 256>}, {pipeline_mode = #tpu.pipeline_mode<synchronous>, transform_indices = @transform_2, window_bounds = array<i64: 64, 128>}, {pipeline_mode = #tpu.pipeline_mode<synchronous>, transform_indices = @transform_3, window_bounds = array<i64: 1, 128>}, {transform_indices = @transform_4, window_bounds = array<i64: 16, 128>}]} {
    %c0 = arith.constant 0 : index
    %c0_0 = arith.constant 0 : index
    %0 = vector.load %arg2[%c0, %c0_0] : memref<64x256xbf16, #tpu.memory_space<vmem>>, vector<64x256xbf16>
    %1 = tpu.iota {dimensions = array<i32: 1>} : vector<1x256xi32>
    %c128_i32 = arith.constant 128 : i32
    %2 = vector.broadcast %c128_i32 : i32 to vector<1x256xi32>
    %3 = arith.cmpi sge, %1, %2 : vector<1x256xi32>
    %c192_i32 = arith.constant 192 : i32
    %4 = vector.broadcast %c192_i32 : i32 to vector<1x256xi32>
    %5 = arith.cmpi slt, %1, %4 : vector<1x256xi32>
    %6 = arith.andi %3, %5 : vector<1x256xi1>
    %cst = arith.constant 1.000000e+00 : f32
    %cst_1 = arith.constant 5.000000e-01 : f32
    %7 = vector.broadcast %cst : f32 to vector<1x256xf32>
    %8 = vector.broadcast %cst_1 : f32 to vector<1x256xf32>
    %9 = arith.select %6, %7, %8 : vector<1x256xi1>, vector<1x256xf32>
    %cst_2 = arith.constant 0.000000e+00 : f32
    %cst_3 = arith.constant 5.000000e-01 : f32
    %10 = vector.broadcast %cst_2 : f32 to vector<1x256xf32>
    %11 = vector.broadcast %cst_3 : f32 to vector<1x256xf32>
    %12 = arith.select %6, %10, %11 : vector<1x256xi1>, vector<1x256xf32>
    %c0_4 = arith.constant 0 : index
    %c0_5 = arith.constant 0 : index
    %c0_6 = arith.constant 0 : index
    %13 = vector.load %arg1[%c0_4, %c0_5, %c0_6] : memref<28x16x256xbf16, #tpu.memory_space<vmem>>, vector<1x16x256xbf16>
    %14 = vector.shape_cast %13 : vector<1x16x256xbf16> to vector<16x256xbf16>
    %15 = arith.extf %14 : vector<16x256xbf16> to vector<16x256xf32>
    %16 = vector.broadcast %9 : vector<1x256xf32> to vector<16x256xf32>
    %17 = arith.mulf %15, %16 : vector<16x256xf32>
    %18 = math.tanh %17 : vector<16x256xf32>
    %19 = vector.broadcast %9 : vector<1x256xf32> to vector<16x256xf32>
    %20 = arith.mulf %18, %19 : vector<16x256xf32>
    %21 = vector.broadcast %12 : vector<1x256xf32> to vector<16x256xf32>
    %22 = arith.addf %20, %21 : vector<16x256xf32>
    %23 = vector.extract_strided_slice %22 {offsets = [0, 0], sizes = [16, 64], strides = [1, 1]} : vector<16x256xf32> to vector<16x64xf32>
    %24 = vector.extract_strided_slice %22 {offsets = [0, 128], sizes = [16, 64], strides = [1, 1]} : vector<16x256xf32> to vector<16x64xf32>
    %25 = arith.mulf %23, %24 : vector<16x64xf32>
    %26 = vector.extract_strided_slice %22 {offsets = [0, 192], sizes = [16, 64], strides = [1, 1]} : vector<16x256xf32> to vector<16x64xf32>
    %27 = math.tanh %25 : vector<16x64xf32>
    %28 = arith.mulf %26, %27 : vector<16x64xf32>
    %c1_i32 = arith.constant 1 : i32
    %29 = arith.index_cast %c1_i32 : i32 to index
    %c0_7 = arith.constant 0 : index
    %c0_8 = arith.constant 0 : index
    %30 = vector.load %arg1[%29, %c0_7, %c0_8] : memref<28x16x256xbf16, #tpu.memory_space<vmem>>, vector<1x16x256xbf16>
    %31 = vector.shape_cast %30 : vector<1x16x256xbf16> to vector<16x256xbf16>
    %32 = arith.extf %31 : vector<16x256xbf16> to vector<16x256xf32>
    %33 = arith.truncf %28 : vector<16x64xf32> to vector<16x64xbf16>
    %cst_9 = arith.constant dense<0.000000e+00> : vector<16x256xf32>
    %34 = tpu.matmul %33, %0, %cst_9 {dimension_numbers = #tpu.dot_dimension_numbers<[1], [0], [0], [1], [0, 0, 1, 1], [], []>} : vector<16x64xbf16>, vector<64x256xbf16>, vector<16x256xf32> -> vector<16x256xf32>
    %35 = arith.addf %32, %34 : vector<16x256xf32>
    %36 = vector.broadcast %9 : vector<1x256xf32> to vector<16x256xf32>
    %37 = arith.mulf %35, %36 : vector<16x256xf32>
    %38 = math.tanh %37 : vector<16x256xf32>
    %39 = vector.broadcast %9 : vector<1x256xf32> to vector<16x256xf32>
    %40 = arith.mulf %38, %39 : vector<16x256xf32>
    %41 = vector.broadcast %12 : vector<1x256xf32> to vector<16x256xf32>
    %42 = arith.addf %40, %41 : vector<16x256xf32>
    %43 = vector.extract_strided_slice %42 {offsets = [0, 64], sizes = [16, 64], strides = [1, 1]} : vector<16x256xf32> to vector<16x64xf32>
    %44 = arith.mulf %43, %25 : vector<16x64xf32>
    %45 = vector.extract_strided_slice %42 {offsets = [0, 0], sizes = [16, 64], strides = [1, 1]} : vector<16x256xf32> to vector<16x64xf32>
    %46 = vector.extract_strided_slice %42 {offsets = [0, 128], sizes = [16, 64], strides = [1, 1]} : vector<16x256xf32> to vector<16x64xf32>
    %47 = arith.mulf %45, %46 : vector<16x64xf32>
    %48 = arith.addf %44, %47 : vector<16x64xf32>
    %49 = vector.extract_strided_slice %42 {offsets = [0, 192], sizes = [16, 64], strides = [1, 1]} : vector<16x256xf32> to vector<16x64xf32>
    %50 = math.tanh %48 : vector<16x64xf32>
    %51 = arith.mulf %49, %50 : vector<16x64xf32>
    %c2_i32 = arith.constant 2 : i32
    %52 = arith.index_cast %c2_i32 : i32 to index
    %c0_10 = arith.constant 0 : index
    %c0_11 = arith.constant 0 : index
    %53 = vector.load %arg1[%52, %c0_10, %c0_11] : memref<28x16x256xbf16, #tpu.memory_space<vmem>>, vector<1x16x256xbf16>
    %54 = vector.shape_cast %53 : vector<1x16x256xbf16> to vector<16x256xbf16>
    %55 = arith.extf %54 : vector<16x256xbf16> to vector<16x256xf32>
    %56 = arith.truncf %51 : vector<16x64xf32> to vector<16x64xbf16>
    %cst_12 = arith.constant dense<0.000000e+00> : vector<16x256xf32>
    %57 = tpu.matmul %56, %0, %cst_12 {dimension_numbers = #tpu.dot_dimension_numbers<[1], [0], [0], [1], [0, 0, 1, 1], [], []>} : vector<16x64xbf16>, vector<64x256xbf16>, vector<16x256xf32> -> vector<16x256xf32>
    %58 = arith.addf %55, %57 : vector<16x256xf32>
    %59 = vector.broadcast %9 : vector<1x256xf32> to vector<16x256xf32>
    %60 = arith.mulf %58, %59 : vector<16x256xf32>
    %61 = math.tanh %60 : vector<16x256xf32>
    %62 = vector.broadcast %9 : vector<1x256xf32> to vector<16x256xf32>
    %63 = arith.mulf %61, %62 : vector<16x256xf32>
    %64 = vector.broadcast %12 : vector<1x256xf32> to vector<16x256xf32>
    %65 = arith.addf %63, %64 : vector<16x256xf32>
    %66 = vector.extract_strided_slice %65 {offsets = [0, 64], sizes = [16, 64], strides = [1, 1]} : vector<16x256xf32> to vector<16x64xf32>
    %67 = arith.mulf %66, %48 : vector<16x64xf32>
    %68 = vector.extract_strided_slice %65 {offsets = [0, 0], sizes = [16, 64], strides = [1, 1]} : vector<16x256xf32> to vector<16x64xf32>
    %69 = vector.extract_strided_slice %65 {offsets = [0, 128], sizes = [16, 64], strides = [1, 1]} : vector<16x256xf32> to vector<16x64xf32>
    %70 = arith.mulf %68, %69 : vector<16x64xf32>
    %71 = arith.addf %67, %70 : vector<16x64xf32>
    %72 = vector.extract_strided_slice %65 {offsets = [0, 192], sizes = [16, 64], strides = [1, 1]} : vector<16x256xf32> to vector<16x64xf32>
    %73 = math.tanh %71 : vector<16x64xf32>
    %74 = arith.mulf %72, %73 : vector<16x64xf32>
    %c3_i32 = arith.constant 3 : i32
    %75 = arith.index_cast %c3_i32 : i32 to index
    %c0_13 = arith.constant 0 : index
    %c0_14 = arith.constant 0 : index
    %76 = vector.load %arg1[%75, %c0_13, %c0_14] : memref<28x16x256xbf16, #tpu.memory_space<vmem>>, vector<1x16x256xbf16>
    %77 = vector.shape_cast %76 : vector<1x16x256xbf16> to vector<16x256xbf16>
    %78 = arith.extf %77 : vector<16x256xbf16> to vector<16x256xf32>
    %79 = arith.truncf %74 : vector<16x64xf32> to vector<16x64xbf16>
    %cst_15 = arith.constant dense<0.000000e+00> : vector<16x256xf32>
    %80 = tpu.matmul %79, %0, %cst_15 {dimension_numbers = #tpu.dot_dimension_numbers<[1], [0], [0], [1], [0, 0, 1, 1], [], []>} : vector<16x64xbf16>, vector<64x256xbf16>, vector<16x256xf32> -> vector<16x256xf32>
    %81 = arith.addf %78, %80 : vector<16x256xf32>
    %82 = vector.broadcast %9 : vector<1x256xf32> to vector<16x256xf32>
    %83 = arith.mulf %81, %82 : vector<16x256xf32>
    %84 = math.tanh %83 : vector<16x256xf32>
    %85 = vector.broadcast %9 : vector<1x256xf32> to vector<16x256xf32>
    %86 = arith.mulf %84, %85 : vector<16x256xf32>
    %87 = vector.broadcast %12 : vector<1x256xf32> to vector<16x256xf32>
    %88 = arith.addf %86, %87 : vector<16x256xf32>
    %89 = vector.extract_strided_slice %88 {offsets = [0, 64], sizes = [16, 64], strides = [1, 1]} : vector<16x256xf32> to vector<16x64xf32>
    %90 = arith.mulf %89, %71 : vector<16x64xf32>
    %91 = vector.extract_strided_slice %88 {offsets = [0, 0], sizes = [16, 64], strides = [1, 1]} : vector<16x256xf32> to vector<16x64xf32>
    %92 = vector.extract_strided_slice %88 {offsets = [0, 128], sizes = [16, 64], strides = [1, 1]} : vector<16x256xf32> to vector<16x64xf32>
    %93 = arith.mulf %91, %92 : vector<16x64xf32>
    %94 = arith.addf %90, %93 : vector<16x64xf32>
    %95 = vector.extract_strided_slice %88 {offsets = [0, 192], sizes = [16, 64], strides = [1, 1]} : vector<16x256xf32> to vector<16x64xf32>
    %96 = math.tanh %94 : vector<16x64xf32>
    %97 = arith.mulf %95, %96 : vector<16x64xf32>
    %c4_i32 = arith.constant 4 : i32
    %98 = arith.index_cast %c4_i32 : i32 to index
    %c0_16 = arith.constant 0 : index
    %c0_17 = arith.constant 0 : index
    %99 = vector.load %arg1[%98, %c0_16, %c0_17] : memref<28x16x256xbf16, #tpu.memory_space<vmem>>, vector<1x16x256xbf16>
    %100 = vector.shape_cast %99 : vector<1x16x256xbf16> to vector<16x256xbf16>
    %101 = arith.extf %100 : vector<16x256xbf16> to vector<16x256xf32>
    %102 = arith.truncf %97 : vector<16x64xf32> to vector<16x64xbf16>
    %cst_18 = arith.constant dense<0.000000e+00> : vector<16x256xf32>
    %103 = tpu.matmul %102, %0, %cst_18 {dimension_numbers = #tpu.dot_dimension_numbers<[1], [0], [0], [1], [0, 0, 1, 1], [], []>} : vector<16x64xbf16>, vector<64x256xbf16>, vector<16x256xf32> -> vector<16x256xf32>
    %104 = arith.addf %101, %103 : vector<16x256xf32>
    %105 = vector.broadcast %9 : vector<1x256xf32> to vector<16x256xf32>
    %106 = arith.mulf %104, %105 : vector<16x256xf32>
    %107 = math.tanh %106 : vector<16x256xf32>
    %108 = vector.broadcast %9 : vector<1x256xf32> to vector<16x256xf32>
    %109 = arith.mulf %107, %108 : vector<16x256xf32>
    %110 = vector.broadcast %12 : vector<1x256xf32> to vector<16x256xf32>
    %111 = arith.addf %109, %110 : vector<16x256xf32>
    %112 = vector.extract_strided_slice %111 {offsets = [0, 64], sizes = [16, 64], strides = [1, 1]} : vector<16x256xf32> to vector<16x64xf32>
    %113 = arith.mulf %112, %94 : vector<16x64xf32>
    %114 = vector.extract_strided_slice %111 {offsets = [0, 0], sizes = [16, 64], strides = [1, 1]} : vector<16x256xf32> to vector<16x64xf32>
    %115 = vector.extract_strided_slice %111 {offsets = [0, 128], sizes = [16, 64], strides = [1, 1]} : vector<16x256xf32> to vector<16x64xf32>
    %116 = arith.mulf %114, %115 : vector<16x64xf32>
    %117 = arith.addf %113, %116 : vector<16x64xf32>
    %118 = vector.extract_strided_slice %111 {offsets = [0, 192], sizes = [16, 64], strides = [1, 1]} : vector<16x256xf32> to vector<16x64xf32>
    %119 = math.tanh %117 : vector<16x64xf32>
    %120 = arith.mulf %118, %119 : vector<16x64xf32>
    %c5_i32 = arith.constant 5 : i32
    %121 = arith.index_cast %c5_i32 : i32 to index
    %c0_19 = arith.constant 0 : index
    %c0_20 = arith.constant 0 : index
    %122 = vector.load %arg1[%121, %c0_19, %c0_20] : memref<28x16x256xbf16, #tpu.memory_space<vmem>>, vector<1x16x256xbf16>
    %123 = vector.shape_cast %122 : vector<1x16x256xbf16> to vector<16x256xbf16>
    %124 = arith.extf %123 : vector<16x256xbf16> to vector<16x256xf32>
    %125 = arith.truncf %120 : vector<16x64xf32> to vector<16x64xbf16>
    %cst_21 = arith.constant dense<0.000000e+00> : vector<16x256xf32>
    %126 = tpu.matmul %125, %0, %cst_21 {dimension_numbers = #tpu.dot_dimension_numbers<[1], [0], [0], [1], [0, 0, 1, 1], [], []>} : vector<16x64xbf16>, vector<64x256xbf16>, vector<16x256xf32> -> vector<16x256xf32>
    %127 = arith.addf %124, %126 : vector<16x256xf32>
    %128 = vector.broadcast %9 : vector<1x256xf32> to vector<16x256xf32>
    %129 = arith.mulf %127, %128 : vector<16x256xf32>
    %130 = math.tanh %129 : vector<16x256xf32>
    %131 = vector.broadcast %9 : vector<1x256xf32> to vector<16x256xf32>
    %132 = arith.mulf %130, %131 : vector<16x256xf32>
    %133 = vector.broadcast %12 : vector<1x256xf32> to vector<16x256xf32>
    %134 = arith.addf %132, %133 : vector<16x256xf32>
    %135 = vector.extract_strided_slice %134 {offsets = [0, 64], sizes = [16, 64], strides = [1, 1]} : vector<16x256xf32> to vector<16x64xf32>
    %136 = arith.mulf %135, %117 : vector<16x64xf32>
    %137 = vector.extract_strided_slice %134 {offsets = [0, 0], sizes = [16, 64], strides = [1, 1]} : vector<16x256xf32> to vector<16x64xf32>
    %138 = vector.extract_strided_slice %134 {offsets = [0, 128], sizes = [16, 64], strides = [1, 1]} : vector<16x256xf32> to vector<16x64xf32>
    %139 = arith.mulf %137, %138 : vector<16x64xf32>
    %140 = arith.addf %136, %139 : vector<16x64xf32>
    %141 = vector.extract_strided_slice %134 {offsets = [0, 192], sizes = [16, 64], strides = [1, 1]} : vector<16x256xf32> to vector<16x64xf32>
    %142 = math.tanh %140 : vector<16x64xf32>
    %143 = arith.mulf %141, %142 : vector<16x64xf32>
    %c6_i32 = arith.constant 6 : i32
    %144 = arith.index_cast %c6_i32 : i32 to index
    %c0_22 = arith.constant 0 : index
    %c0_23 = arith.constant 0 : index
    %145 = vector.load %arg1[%144, %c0_22, %c0_23] : memref<28x16x256xbf16, #tpu.memory_space<vmem>>, vector<1x16x256xbf16>
    %146 = vector.shape_cast %145 : vector<1x16x256xbf16> to vector<16x256xbf16>
    %147 = arith.extf %146 : vector<16x256xbf16> to vector<16x256xf32>
    %148 = arith.truncf %143 : vector<16x64xf32> to vector<16x64xbf16>
    %cst_24 = arith.constant dense<0.000000e+00> : vector<16x256xf32>
    %149 = tpu.matmul %148, %0, %cst_24 {dimension_numbers = #tpu.dot_dimension_numbers<[1], [0], [0], [1], [0, 0, 1, 1], [], []>} : vector<16x64xbf16>, vector<64x256xbf16>, vector<16x256xf32> -> vector<16x256xf32>
    %150 = arith.addf %147, %149 : vector<16x256xf32>
    %151 = vector.broadcast %9 : vector<1x256xf32> to vector<16x256xf32>
    %152 = arith.mulf %150, %151 : vector<16x256xf32>
    %153 = math.tanh %152 : vector<16x256xf32>
    %154 = vector.broadcast %9 : vector<1x256xf32> to vector<16x256xf32>
    %155 = arith.mulf %153, %154 : vector<16x256xf32>
    %156 = vector.broadcast %12 : vector<1x256xf32> to vector<16x256xf32>
    %157 = arith.addf %155, %156 : vector<16x256xf32>
    %158 = vector.extract_strided_slice %157 {offsets = [0, 64], sizes = [16, 64], strides = [1, 1]} : vector<16x256xf32> to vector<16x64xf32>
    %159 = arith.mulf %158, %140 : vector<16x64xf32>
    %160 = vector.extract_strided_slice %157 {offsets = [0, 0], sizes = [16, 64], strides = [1, 1]} : vector<16x256xf32> to vector<16x64xf32>
    %161 = vector.extract_strided_slice %157 {offsets = [0, 128], sizes = [16, 64], strides = [1, 1]} : vector<16x256xf32> to vector<16x64xf32>
    %162 = arith.mulf %160, %161 : vector<16x64xf32>
    %163 = arith.addf %159, %162 : vector<16x64xf32>
    %164 = vector.extract_strided_slice %157 {offsets = [0, 192], sizes = [16, 64], strides = [1, 1]} : vector<16x256xf32> to vector<16x64xf32>
    %165 = math.tanh %163 : vector<16x64xf32>
    %166 = arith.mulf %164, %165 : vector<16x64xf32>
    %c7_i32 = arith.constant 7 : i32
    %167 = arith.index_cast %c7_i32 : i32 to index
    %c0_25 = arith.constant 0 : index
    %c0_26 = arith.constant 0 : index
    %168 = vector.load %arg1[%167, %c0_25, %c0_26] : memref<28x16x256xbf16, #tpu.memory_space<vmem>>, vector<1x16x256xbf16>
    %169 = vector.shape_cast %168 : vector<1x16x256xbf16> to vector<16x256xbf16>
    %170 = arith.extf %169 : vector<16x256xbf16> to vector<16x256xf32>
    %171 = arith.truncf %166 : vector<16x64xf32> to vector<16x64xbf16>
    %cst_27 = arith.constant dense<0.000000e+00> : vector<16x256xf32>
    %172 = tpu.matmul %171, %0, %cst_27 {dimension_numbers = #tpu.dot_dimension_numbers<[1], [0], [0], [1], [0, 0, 1, 1], [], []>} : vector<16x64xbf16>, vector<64x256xbf16>, vector<16x256xf32> -> vector<16x256xf32>
    %173 = arith.addf %170, %172 : vector<16x256xf32>
    %174 = vector.broadcast %9 : vector<1x256xf32> to vector<16x256xf32>
    %175 = arith.mulf %173, %174 : vector<16x256xf32>
    %176 = math.tanh %175 : vector<16x256xf32>
    %177 = vector.broadcast %9 : vector<1x256xf32> to vector<16x256xf32>
    %178 = arith.mulf %176, %177 : vector<16x256xf32>
    %179 = vector.broadcast %12 : vector<1x256xf32> to vector<16x256xf32>
    %180 = arith.addf %178, %179 : vector<16x256xf32>
    %181 = vector.extract_strided_slice %180 {offsets = [0, 64], sizes = [16, 64], strides = [1, 1]} : vector<16x256xf32> to vector<16x64xf32>
    %182 = arith.mulf %181, %163 : vector<16x64xf32>
    %183 = vector.extract_strided_slice %180 {offsets = [0, 0], sizes = [16, 64], strides = [1, 1]} : vector<16x256xf32> to vector<16x64xf32>
    %184 = vector.extract_strided_slice %180 {offsets = [0, 128], sizes = [16, 64], strides = [1, 1]} : vector<16x256xf32> to vector<16x64xf32>
    %185 = arith.mulf %183, %184 : vector<16x64xf32>
    %186 = arith.addf %182, %185 : vector<16x64xf32>
    %187 = vector.extract_strided_slice %180 {offsets = [0, 192], sizes = [16, 64], strides = [1, 1]} : vector<16x256xf32> to vector<16x64xf32>
    %188 = math.tanh %186 : vector<16x64xf32>
    %189 = arith.mulf %187, %188 : vector<16x64xf32>
    %c8_i32 = arith.constant 8 : i32
    %190 = arith.index_cast %c8_i32 : i32 to index
    %c0_28 = arith.constant 0 : index
    %c0_29 = arith.constant 0 : index
    %191 = vector.load %arg1[%190, %c0_28, %c0_29] : memref<28x16x256xbf16, #tpu.memory_space<vmem>>, vector<1x16x256xbf16>
    %192 = vector.shape_cast %191 : vector<1x16x256xbf16> to vector<16x256xbf16>
    %193 = arith.extf %192 : vector<16x256xbf16> to vector<16x256xf32>
    %194 = arith.truncf %189 : vector<16x64xf32> to vector<16x64xbf16>
    %cst_30 = arith.constant dense<0.000000e+00> : vector<16x256xf32>
    %195 = tpu.matmul %194, %0, %cst_30 {dimension_numbers = #tpu.dot_dimension_numbers<[1], [0], [0], [1], [0, 0, 1, 1], [], []>} : vector<16x64xbf16>, vector<64x256xbf16>, vector<16x256xf32> -> vector<16x256xf32>
    %196 = arith.addf %193, %195 : vector<16x256xf32>
    %197 = vector.broadcast %9 : vector<1x256xf32> to vector<16x256xf32>
    %198 = arith.mulf %196, %197 : vector<16x256xf32>
    %199 = math.tanh %198 : vector<16x256xf32>
    %200 = vector.broadcast %9 : vector<1x256xf32> to vector<16x256xf32>
    %201 = arith.mulf %199, %200 : vector<16x256xf32>
    %202 = vector.broadcast %12 : vector<1x256xf32> to vector<16x256xf32>
    %203 = arith.addf %201, %202 : vector<16x256xf32>
    %204 = vector.extract_strided_slice %203 {offsets = [0, 64], sizes = [16, 64], strides = [1, 1]} : vector<16x256xf32> to vector<16x64xf32>
    %205 = arith.mulf %204, %186 : vector<16x64xf32>
    %206 = vector.extract_strided_slice %203 {offsets = [0, 0], sizes = [16, 64], strides = [1, 1]} : vector<16x256xf32> to vector<16x64xf32>
    %207 = vector.extract_strided_slice %203 {offsets = [0, 128], sizes = [16, 64], strides = [1, 1]} : vector<16x256xf32> to vector<16x64xf32>
    %208 = arith.mulf %206, %207 : vector<16x64xf32>
    %209 = arith.addf %205, %208 : vector<16x64xf32>
    %210 = vector.extract_strided_slice %203 {offsets = [0, 192], sizes = [16, 64], strides = [1, 1]} : vector<16x256xf32> to vector<16x64xf32>
    %211 = math.tanh %209 : vector<16x64xf32>
    %212 = arith.mulf %210, %211 : vector<16x64xf32>
    %c9_i32 = arith.constant 9 : i32
    %213 = arith.index_cast %c9_i32 : i32 to index
    %c0_31 = arith.constant 0 : index
    %c0_32 = arith.constant 0 : index
    %214 = vector.load %arg1[%213, %c0_31, %c0_32] : memref<28x16x256xbf16, #tpu.memory_space<vmem>>, vector<1x16x256xbf16>
    %215 = vector.shape_cast %214 : vector<1x16x256xbf16> to vector<16x256xbf16>
    %216 = arith.extf %215 : vector<16x256xbf16> to vector<16x256xf32>
    %217 = arith.truncf %212 : vector<16x64xf32> to vector<16x64xbf16>
    %cst_33 = arith.constant dense<0.000000e+00> : vector<16x256xf32>
    %218 = tpu.matmul %217, %0, %cst_33 {dimension_numbers = #tpu.dot_dimension_numbers<[1], [0], [0], [1], [0, 0, 1, 1], [], []>} : vector<16x64xbf16>, vector<64x256xbf16>, vector<16x256xf32> -> vector<16x256xf32>
    %219 = arith.addf %216, %218 : vector<16x256xf32>
    %220 = vector.broadcast %9 : vector<1x256xf32> to vector<16x256xf32>
    %221 = arith.mulf %219, %220 : vector<16x256xf32>
    %222 = math.tanh %221 : vector<16x256xf32>
    %223 = vector.broadcast %9 : vector<1x256xf32> to vector<16x256xf32>
    %224 = arith.mulf %222, %223 : vector<16x256xf32>
    %225 = vector.broadcast %12 : vector<1x256xf32> to vector<16x256xf32>
    %226 = arith.addf %224, %225 : vector<16x256xf32>
    %227 = vector.extract_strided_slice %226 {offsets = [0, 64], sizes = [16, 64], strides = [1, 1]} : vector<16x256xf32> to vector<16x64xf32>
    %228 = arith.mulf %227, %209 : vector<16x64xf32>
    %229 = vector.extract_strided_slice %226 {offsets = [0, 0], sizes = [16, 64], strides = [1, 1]} : vector<16x256xf32> to vector<16x64xf32>
    %230 = vector.extract_strided_slice %226 {offsets = [0, 128], sizes = [16, 64], strides = [1, 1]} : vector<16x256xf32> to vector<16x64xf32>
    %231 = arith.mulf %229, %230 : vector<16x64xf32>
    %232 = arith.addf %228, %231 : vector<16x64xf32>
    %233 = vector.extract_strided_slice %226 {offsets = [0, 192], sizes = [16, 64], strides = [1, 1]} : vector<16x256xf32> to vector<16x64xf32>
    %234 = math.tanh %232 : vector<16x64xf32>
    %235 = arith.mulf %233, %234 : vector<16x64xf32>
    %c10_i32 = arith.constant 10 : i32
    %236 = arith.index_cast %c10_i32 : i32 to index
    %c0_34 = arith.constant 0 : index
    %c0_35 = arith.constant 0 : index
    %237 = vector.load %arg1[%236, %c0_34, %c0_35] : memref<28x16x256xbf16, #tpu.memory_space<vmem>>, vector<1x16x256xbf16>
    %238 = vector.shape_cast %237 : vector<1x16x256xbf16> to vector<16x256xbf16>
    %239 = arith.extf %238 : vector<16x256xbf16> to vector<16x256xf32>
    %240 = arith.truncf %235 : vector<16x64xf32> to vector<16x64xbf16>
    %cst_36 = arith.constant dense<0.000000e+00> : vector<16x256xf32>
    %241 = tpu.matmul %240, %0, %cst_36 {dimension_numbers = #tpu.dot_dimension_numbers<[1], [0], [0], [1], [0, 0, 1, 1], [], []>} : vector<16x64xbf16>, vector<64x256xbf16>, vector<16x256xf32> -> vector<16x256xf32>
    %242 = arith.addf %239, %241 : vector<16x256xf32>
    %243 = vector.broadcast %9 : vector<1x256xf32> to vector<16x256xf32>
    %244 = arith.mulf %242, %243 : vector<16x256xf32>
    %245 = math.tanh %244 : vector<16x256xf32>
    %246 = vector.broadcast %9 : vector<1x256xf32> to vector<16x256xf32>
    %247 = arith.mulf %245, %246 : vector<16x256xf32>
    %248 = vector.broadcast %12 : vector<1x256xf32> to vector<16x256xf32>
    %249 = arith.addf %247, %248 : vector<16x256xf32>
    %250 = vector.extract_strided_slice %249 {offsets = [0, 64], sizes = [16, 64], strides = [1, 1]} : vector<16x256xf32> to vector<16x64xf32>
    %251 = arith.mulf %250, %232 : vector<16x64xf32>
    %252 = vector.extract_strided_slice %249 {offsets = [0, 0], sizes = [16, 64], strides = [1, 1]} : vector<16x256xf32> to vector<16x64xf32>
    %253 = vector.extract_strided_slice %249 {offsets = [0, 128], sizes = [16, 64], strides = [1, 1]} : vector<16x256xf32> to vector<16x64xf32>
    %254 = arith.mulf %252, %253 : vector<16x64xf32>
    %255 = arith.addf %251, %254 : vector<16x64xf32>
    %256 = vector.extract_strided_slice %249 {offsets = [0, 192], sizes = [16, 64], strides = [1, 1]} : vector<16x256xf32> to vector<16x64xf32>
    %257 = math.tanh %255 : vector<16x64xf32>
    %258 = arith.mulf %256, %257 : vector<16x64xf32>
    %c11_i32 = arith.constant 11 : i32
    %259 = arith.index_cast %c11_i32 : i32 to index
    %c0_37 = arith.constant 0 : index
    %c0_38 = arith.constant 0 : index
    %260 = vector.load %arg1[%259, %c0_37, %c0_38] : memref<28x16x256xbf16, #tpu.memory_space<vmem>>, vector<1x16x256xbf16>
    %261 = vector.shape_cast %260 : vector<1x16x256xbf16> to vector<16x256xbf16>
    %262 = arith.extf %261 : vector<16x256xbf16> to vector<16x256xf32>
    %263 = arith.truncf %258 : vector<16x64xf32> to vector<16x64xbf16>
    %cst_39 = arith.constant dense<0.000000e+00> : vector<16x256xf32>
    %264 = tpu.matmul %263, %0, %cst_39 {dimension_numbers = #tpu.dot_dimension_numbers<[1], [0], [0], [1], [0, 0, 1, 1], [], []>} : vector<16x64xbf16>, vector<64x256xbf16>, vector<16x256xf32> -> vector<16x256xf32>
    %265 = arith.addf %262, %264 : vector<16x256xf32>
    %266 = vector.broadcast %9 : vector<1x256xf32> to vector<16x256xf32>
    %267 = arith.mulf %265, %266 : vector<16x256xf32>
    %268 = math.tanh %267 : vector<16x256xf32>
    %269 = vector.broadcast %9 : vector<1x256xf32> to vector<16x256xf32>
    %270 = arith.mulf %268, %269 : vector<16x256xf32>
    %271 = vector.broadcast %12 : vector<1x256xf32> to vector<16x256xf32>
    %272 = arith.addf %270, %271 : vector<16x256xf32>
    %273 = vector.extract_strided_slice %272 {offsets = [0, 64], sizes = [16, 64], strides = [1, 1]} : vector<16x256xf32> to vector<16x64xf32>
    %274 = arith.mulf %273, %255 : vector<16x64xf32>
    %275 = vector.extract_strided_slice %272 {offsets = [0, 0], sizes = [16, 64], strides = [1, 1]} : vector<16x256xf32> to vector<16x64xf32>
    %276 = vector.extract_strided_slice %272 {offsets = [0, 128], sizes = [16, 64], strides = [1, 1]} : vector<16x256xf32> to vector<16x64xf32>
    %277 = arith.mulf %275, %276 : vector<16x64xf32>
    %278 = arith.addf %274, %277 : vector<16x64xf32>
    %279 = vector.extract_strided_slice %272 {offsets = [0, 192], sizes = [16, 64], strides = [1, 1]} : vector<16x256xf32> to vector<16x64xf32>
    %280 = math.tanh %278 : vector<16x64xf32>
    %281 = arith.mulf %279, %280 : vector<16x64xf32>
    %c12_i32 = arith.constant 12 : i32
    %282 = arith.index_cast %c12_i32 : i32 to index
    %c0_40 = arith.constant 0 : index
    %c0_41 = arith.constant 0 : index
    %283 = vector.load %arg1[%282, %c0_40, %c0_41] : memref<28x16x256xbf16, #tpu.memory_space<vmem>>, vector<1x16x256xbf16>
    %284 = vector.shape_cast %283 : vector<1x16x256xbf16> to vector<16x256xbf16>
    %285 = arith.extf %284 : vector<16x256xbf16> to vector<16x256xf32>
    %286 = arith.truncf %281 : vector<16x64xf32> to vector<16x64xbf16>
    %cst_42 = arith.constant dense<0.000000e+00> : vector<16x256xf32>
    %287 = tpu.matmul %286, %0, %cst_42 {dimension_numbers = #tpu.dot_dimension_numbers<[1], [0], [0], [1], [0, 0, 1, 1], [], []>} : vector<16x64xbf16>, vector<64x256xbf16>, vector<16x256xf32> -> vector<16x256xf32>
    %288 = arith.addf %285, %287 : vector<16x256xf32>
    %289 = vector.broadcast %9 : vector<1x256xf32> to vector<16x256xf32>
    %290 = arith.mulf %288, %289 : vector<16x256xf32>
    %291 = math.tanh %290 : vector<16x256xf32>
    %292 = vector.broadcast %9 : vector<1x256xf32> to vector<16x256xf32>
    %293 = arith.mulf %291, %292 : vector<16x256xf32>
    %294 = vector.broadcast %12 : vector<1x256xf32> to vector<16x256xf32>
    %295 = arith.addf %293, %294 : vector<16x256xf32>
    %296 = vector.extract_strided_slice %295 {offsets = [0, 64], sizes = [16, 64], strides = [1, 1]} : vector<16x256xf32> to vector<16x64xf32>
    %297 = arith.mulf %296, %278 : vector<16x64xf32>
    %298 = vector.extract_strided_slice %295 {offsets = [0, 0], sizes = [16, 64], strides = [1, 1]} : vector<16x256xf32> to vector<16x64xf32>
    %299 = vector.extract_strided_slice %295 {offsets = [0, 128], sizes = [16, 64], strides = [1, 1]} : vector<16x256xf32> to vector<16x64xf32>
    %300 = arith.mulf %298, %299 : vector<16x64xf32>
    %301 = arith.addf %297, %300 : vector<16x64xf32>
    %302 = vector.extract_strided_slice %295 {offsets = [0, 192], sizes = [16, 64], strides = [1, 1]} : vector<16x256xf32> to vector<16x64xf32>
    %303 = math.tanh %301 : vector<16x64xf32>
    %304 = arith.mulf %302, %303 : vector<16x64xf32>
    %c13_i32 = arith.constant 13 : i32
    %305 = arith.index_cast %c13_i32 : i32 to index
    %c0_43 = arith.constant 0 : index
    %c0_44 = arith.constant 0 : index
    %306 = vector.load %arg1[%305, %c0_43, %c0_44] : memref<28x16x256xbf16, #tpu.memory_space<vmem>>, vector<1x16x256xbf16>
    %307 = vector.shape_cast %306 : vector<1x16x256xbf16> to vector<16x256xbf16>
    %308 = arith.extf %307 : vector<16x256xbf16> to vector<16x256xf32>
    %309 = arith.truncf %304 : vector<16x64xf32> to vector<16x64xbf16>
    %cst_45 = arith.constant dense<0.000000e+00> : vector<16x256xf32>
    %310 = tpu.matmul %309, %0, %cst_45 {dimension_numbers = #tpu.dot_dimension_numbers<[1], [0], [0], [1], [0, 0, 1, 1], [], []>} : vector<16x64xbf16>, vector<64x256xbf16>, vector<16x256xf32> -> vector<16x256xf32>
    %311 = arith.addf %308, %310 : vector<16x256xf32>
    %312 = vector.broadcast %9 : vector<1x256xf32> to vector<16x256xf32>
    %313 = arith.mulf %311, %312 : vector<16x256xf32>
    %314 = math.tanh %313 : vector<16x256xf32>
    %315 = vector.broadcast %9 : vector<1x256xf32> to vector<16x256xf32>
    %316 = arith.mulf %314, %315 : vector<16x256xf32>
    %317 = vector.broadcast %12 : vector<1x256xf32> to vector<16x256xf32>
    %318 = arith.addf %316, %317 : vector<16x256xf32>
    %319 = vector.extract_strided_slice %318 {offsets = [0, 64], sizes = [16, 64], strides = [1, 1]} : vector<16x256xf32> to vector<16x64xf32>
    %320 = arith.mulf %319, %301 : vector<16x64xf32>
    %321 = vector.extract_strided_slice %318 {offsets = [0, 0], sizes = [16, 64], strides = [1, 1]} : vector<16x256xf32> to vector<16x64xf32>
    %322 = vector.extract_strided_slice %318 {offsets = [0, 128], sizes = [16, 64], strides = [1, 1]} : vector<16x256xf32> to vector<16x64xf32>
    %323 = arith.mulf %321, %322 : vector<16x64xf32>
    %324 = arith.addf %320, %323 : vector<16x64xf32>
    %325 = vector.extract_strided_slice %318 {offsets = [0, 192], sizes = [16, 64], strides = [1, 1]} : vector<16x256xf32> to vector<16x64xf32>
    %326 = math.tanh %324 : vector<16x64xf32>
    %327 = arith.mulf %325, %326 : vector<16x64xf32>
    %c14_i32 = arith.constant 14 : i32
    %328 = arith.index_cast %c14_i32 : i32 to index
    %c0_46 = arith.constant 0 : index
    %c0_47 = arith.constant 0 : index
    %329 = vector.load %arg1[%328, %c0_46, %c0_47] : memref<28x16x256xbf16, #tpu.memory_space<vmem>>, vector<1x16x256xbf16>
    %330 = vector.shape_cast %329 : vector<1x16x256xbf16> to vector<16x256xbf16>
    %331 = arith.extf %330 : vector<16x256xbf16> to vector<16x256xf32>
    %332 = arith.truncf %327 : vector<16x64xf32> to vector<16x64xbf16>
    %cst_48 = arith.constant dense<0.000000e+00> : vector<16x256xf32>
    %333 = tpu.matmul %332, %0, %cst_48 {dimension_numbers = #tpu.dot_dimension_numbers<[1], [0], [0], [1], [0, 0, 1, 1], [], []>} : vector<16x64xbf16>, vector<64x256xbf16>, vector<16x256xf32> -> vector<16x256xf32>
    %334 = arith.addf %331, %333 : vector<16x256xf32>
    %335 = vector.broadcast %9 : vector<1x256xf32> to vector<16x256xf32>
    %336 = arith.mulf %334, %335 : vector<16x256xf32>
    %337 = math.tanh %336 : vector<16x256xf32>
    %338 = vector.broadcast %9 : vector<1x256xf32> to vector<16x256xf32>
    %339 = arith.mulf %337, %338 : vector<16x256xf32>
    %340 = vector.broadcast %12 : vector<1x256xf32> to vector<16x256xf32>
    %341 = arith.addf %339, %340 : vector<16x256xf32>
    %342 = vector.extract_strided_slice %341 {offsets = [0, 64], sizes = [16, 64], strides = [1, 1]} : vector<16x256xf32> to vector<16x64xf32>
    %343 = arith.mulf %342, %324 : vector<16x64xf32>
    %344 = vector.extract_strided_slice %341 {offsets = [0, 0], sizes = [16, 64], strides = [1, 1]} : vector<16x256xf32> to vector<16x64xf32>
    %345 = vector.extract_strided_slice %341 {offsets = [0, 128], sizes = [16, 64], strides = [1, 1]} : vector<16x256xf32> to vector<16x64xf32>
    %346 = arith.mulf %344, %345 : vector<16x64xf32>
    %347 = arith.addf %343, %346 : vector<16x64xf32>
    %348 = vector.extract_strided_slice %341 {offsets = [0, 192], sizes = [16, 64], strides = [1, 1]} : vector<16x256xf32> to vector<16x64xf32>
    %349 = math.tanh %347 : vector<16x64xf32>
    %350 = arith.mulf %348, %349 : vector<16x64xf32>
    %c15_i32 = arith.constant 15 : i32
    %351 = arith.index_cast %c15_i32 : i32 to index
    %c0_49 = arith.constant 0 : index
    %c0_50 = arith.constant 0 : index
    %352 = vector.load %arg1[%351, %c0_49, %c0_50] : memref<28x16x256xbf16, #tpu.memory_space<vmem>>, vector<1x16x256xbf16>
    %353 = vector.shape_cast %352 : vector<1x16x256xbf16> to vector<16x256xbf16>
    %354 = arith.extf %353 : vector<16x256xbf16> to vector<16x256xf32>
    %355 = arith.truncf %350 : vector<16x64xf32> to vector<16x64xbf16>
    %cst_51 = arith.constant dense<0.000000e+00> : vector<16x256xf32>
    %356 = tpu.matmul %355, %0, %cst_51 {dimension_numbers = #tpu.dot_dimension_numbers<[1], [0], [0], [1], [0, 0, 1, 1], [], []>} : vector<16x64xbf16>, vector<64x256xbf16>, vector<16x256xf32> -> vector<16x256xf32>
    %357 = arith.addf %354, %356 : vector<16x256xf32>
    %358 = vector.broadcast %9 : vector<1x256xf32> to vector<16x256xf32>
    %359 = arith.mulf %357, %358 : vector<16x256xf32>
    %360 = math.tanh %359 : vector<16x256xf32>
    %361 = vector.broadcast %9 : vector<1x256xf32> to vector<16x256xf32>
    %362 = arith.mulf %360, %361 : vector<16x256xf32>
    %363 = vector.broadcast %12 : vector<1x256xf32> to vector<16x256xf32>
    %364 = arith.addf %362, %363 : vector<16x256xf32>
    %365 = vector.extract_strided_slice %364 {offsets = [0, 64], sizes = [16, 64], strides = [1, 1]} : vector<16x256xf32> to vector<16x64xf32>
    %366 = arith.mulf %365, %347 : vector<16x64xf32>
    %367 = vector.extract_strided_slice %364 {offsets = [0, 0], sizes = [16, 64], strides = [1, 1]} : vector<16x256xf32> to vector<16x64xf32>
    %368 = vector.extract_strided_slice %364 {offsets = [0, 128], sizes = [16, 64], strides = [1, 1]} : vector<16x256xf32> to vector<16x64xf32>
    %369 = arith.mulf %367, %368 : vector<16x64xf32>
    %370 = arith.addf %366, %369 : vector<16x64xf32>
    %371 = vector.extract_strided_slice %364 {offsets = [0, 192], sizes = [16, 64], strides = [1, 1]} : vector<16x256xf32> to vector<16x64xf32>
    %372 = math.tanh %370 : vector<16x64xf32>
    %373 = arith.mulf %371, %372 : vector<16x64xf32>
    %c16_i32 = arith.constant 16 : i32
    %374 = arith.index_cast %c16_i32 : i32 to index
    %c0_52 = arith.constant 0 : index
    %c0_53 = arith.constant 0 : index
    %375 = vector.load %arg1[%374, %c0_52, %c0_53] : memref<28x16x256xbf16, #tpu.memory_space<vmem>>, vector<1x16x256xbf16>
    %376 = vector.shape_cast %375 : vector<1x16x256xbf16> to vector<16x256xbf16>
    %377 = arith.extf %376 : vector<16x256xbf16> to vector<16x256xf32>
    %378 = arith.truncf %373 : vector<16x64xf32> to vector<16x64xbf16>
    %cst_54 = arith.constant dense<0.000000e+00> : vector<16x256xf32>
    %379 = tpu.matmul %378, %0, %cst_54 {dimension_numbers = #tpu.dot_dimension_numbers<[1], [0], [0], [1], [0, 0, 1, 1], [], []>} : vector<16x64xbf16>, vector<64x256xbf16>, vector<16x256xf32> -> vector<16x256xf32>
    %380 = arith.addf %377, %379 : vector<16x256xf32>
    %381 = vector.broadcast %9 : vector<1x256xf32> to vector<16x256xf32>
    %382 = arith.mulf %380, %381 : vector<16x256xf32>
    %383 = math.tanh %382 : vector<16x256xf32>
    %384 = vector.broadcast %9 : vector<1x256xf32> to vector<16x256xf32>
    %385 = arith.mulf %383, %384 : vector<16x256xf32>
    %386 = vector.broadcast %12 : vector<1x256xf32> to vector<16x256xf32>
    %387 = arith.addf %385, %386 : vector<16x256xf32>
    %388 = vector.extract_strided_slice %387 {offsets = [0, 64], sizes = [16, 64], strides = [1, 1]} : vector<16x256xf32> to vector<16x64xf32>
    %389 = arith.mulf %388, %370 : vector<16x64xf32>
    %390 = vector.extract_strided_slice %387 {offsets = [0, 0], sizes = [16, 64], strides = [1, 1]} : vector<16x256xf32> to vector<16x64xf32>
    %391 = vector.extract_strided_slice %387 {offsets = [0, 128], sizes = [16, 64], strides = [1, 1]} : vector<16x256xf32> to vector<16x64xf32>
    %392 = arith.mulf %390, %391 : vector<16x64xf32>
    %393 = arith.addf %389, %392 : vector<16x64xf32>
    %394 = vector.extract_strided_slice %387 {offsets = [0, 192], sizes = [16, 64], strides = [1, 1]} : vector<16x256xf32> to vector<16x64xf32>
    %395 = math.tanh %393 : vector<16x64xf32>
    %396 = arith.mulf %394, %395 : vector<16x64xf32>
    %c17_i32 = arith.constant 17 : i32
    %397 = arith.index_cast %c17_i32 : i32 to index
    %c0_55 = arith.constant 0 : index
    %c0_56 = arith.constant 0 : index
    %398 = vector.load %arg1[%397, %c0_55, %c0_56] : memref<28x16x256xbf16, #tpu.memory_space<vmem>>, vector<1x16x256xbf16>
    %399 = vector.shape_cast %398 : vector<1x16x256xbf16> to vector<16x256xbf16>
    %400 = arith.extf %399 : vector<16x256xbf16> to vector<16x256xf32>
    %401 = arith.truncf %396 : vector<16x64xf32> to vector<16x64xbf16>
    %cst_57 = arith.constant dense<0.000000e+00> : vector<16x256xf32>
    %402 = tpu.matmul %401, %0, %cst_57 {dimension_numbers = #tpu.dot_dimension_numbers<[1], [0], [0], [1], [0, 0, 1, 1], [], []>} : vector<16x64xbf16>, vector<64x256xbf16>, vector<16x256xf32> -> vector<16x256xf32>
    %403 = arith.addf %400, %402 : vector<16x256xf32>
    %404 = vector.broadcast %9 : vector<1x256xf32> to vector<16x256xf32>
    %405 = arith.mulf %403, %404 : vector<16x256xf32>
    %406 = math.tanh %405 : vector<16x256xf32>
    %407 = vector.broadcast %9 : vector<1x256xf32> to vector<16x256xf32>
    %408 = arith.mulf %406, %407 : vector<16x256xf32>
    %409 = vector.broadcast %12 : vector<1x256xf32> to vector<16x256xf32>
    %410 = arith.addf %408, %409 : vector<16x256xf32>
    %411 = vector.extract_strided_slice %410 {offsets = [0, 64], sizes = [16, 64], strides = [1, 1]} : vector<16x256xf32> to vector<16x64xf32>
    %412 = arith.mulf %411, %393 : vector<16x64xf32>
    %413 = vector.extract_strided_slice %410 {offsets = [0, 0], sizes = [16, 64], strides = [1, 1]} : vector<16x256xf32> to vector<16x64xf32>
    %414 = vector.extract_strided_slice %410 {offsets = [0, 128], sizes = [16, 64], strides = [1, 1]} : vector<16x256xf32> to vector<16x64xf32>
    %415 = arith.mulf %413, %414 : vector<16x64xf32>
    %416 = arith.addf %412, %415 : vector<16x64xf32>
    %417 = vector.extract_strided_slice %410 {offsets = [0, 192], sizes = [16, 64], strides = [1, 1]} : vector<16x256xf32> to vector<16x64xf32>
    %418 = math.tanh %416 : vector<16x64xf32>
    %419 = arith.mulf %417, %418 : vector<16x64xf32>
    %c18_i32 = arith.constant 18 : i32
    %420 = arith.index_cast %c18_i32 : i32 to index
    %c0_58 = arith.constant 0 : index
    %c0_59 = arith.constant 0 : index
    %421 = vector.load %arg1[%420, %c0_58, %c0_59] : memref<28x16x256xbf16, #tpu.memory_space<vmem>>, vector<1x16x256xbf16>
    %422 = vector.shape_cast %421 : vector<1x16x256xbf16> to vector<16x256xbf16>
    %423 = arith.extf %422 : vector<16x256xbf16> to vector<16x256xf32>
    %424 = arith.truncf %419 : vector<16x64xf32> to vector<16x64xbf16>
    %cst_60 = arith.constant dense<0.000000e+00> : vector<16x256xf32>
    %425 = tpu.matmul %424, %0, %cst_60 {dimension_numbers = #tpu.dot_dimension_numbers<[1], [0], [0], [1], [0, 0, 1, 1], [], []>} : vector<16x64xbf16>, vector<64x256xbf16>, vector<16x256xf32> -> vector<16x256xf32>
    %426 = arith.addf %423, %425 : vector<16x256xf32>
    %427 = vector.broadcast %9 : vector<1x256xf32> to vector<16x256xf32>
    %428 = arith.mulf %426, %427 : vector<16x256xf32>
    %429 = math.tanh %428 : vector<16x256xf32>
    %430 = vector.broadcast %9 : vector<1x256xf32> to vector<16x256xf32>
    %431 = arith.mulf %429, %430 : vector<16x256xf32>
    %432 = vector.broadcast %12 : vector<1x256xf32> to vector<16x256xf32>
    %433 = arith.addf %431, %432 : vector<16x256xf32>
    %434 = vector.extract_strided_slice %433 {offsets = [0, 64], sizes = [16, 64], strides = [1, 1]} : vector<16x256xf32> to vector<16x64xf32>
    %435 = arith.mulf %434, %416 : vector<16x64xf32>
    %436 = vector.extract_strided_slice %433 {offsets = [0, 0], sizes = [16, 64], strides = [1, 1]} : vector<16x256xf32> to vector<16x64xf32>
    %437 = vector.extract_strided_slice %433 {offsets = [0, 128], sizes = [16, 64], strides = [1, 1]} : vector<16x256xf32> to vector<16x64xf32>
    %438 = arith.mulf %436, %437 : vector<16x64xf32>
    %439 = arith.addf %435, %438 : vector<16x64xf32>
    %440 = vector.extract_strided_slice %433 {offsets = [0, 192], sizes = [16, 64], strides = [1, 1]} : vector<16x256xf32> to vector<16x64xf32>
    %441 = math.tanh %439 : vector<16x64xf32>
    %442 = arith.mulf %440, %441 : vector<16x64xf32>
    %c19_i32 = arith.constant 19 : i32
    %443 = arith.index_cast %c19_i32 : i32 to index
    %c0_61 = arith.constant 0 : index
    %c0_62 = arith.constant 0 : index
    %444 = vector.load %arg1[%443, %c0_61, %c0_62] : memref<28x16x256xbf16, #tpu.memory_space<vmem>>, vector<1x16x256xbf16>
    %445 = vector.shape_cast %444 : vector<1x16x256xbf16> to vector<16x256xbf16>
    %446 = arith.extf %445 : vector<16x256xbf16> to vector<16x256xf32>
    %447 = arith.truncf %442 : vector<16x64xf32> to vector<16x64xbf16>
    %cst_63 = arith.constant dense<0.000000e+00> : vector<16x256xf32>
    %448 = tpu.matmul %447, %0, %cst_63 {dimension_numbers = #tpu.dot_dimension_numbers<[1], [0], [0], [1], [0, 0, 1, 1], [], []>} : vector<16x64xbf16>, vector<64x256xbf16>, vector<16x256xf32> -> vector<16x256xf32>
    %449 = arith.addf %446, %448 : vector<16x256xf32>
    %450 = vector.broadcast %9 : vector<1x256xf32> to vector<16x256xf32>
    %451 = arith.mulf %449, %450 : vector<16x256xf32>
    %452 = math.tanh %451 : vector<16x256xf32>
    %453 = vector.broadcast %9 : vector<1x256xf32> to vector<16x256xf32>
    %454 = arith.mulf %452, %453 : vector<16x256xf32>
    %455 = vector.broadcast %12 : vector<1x256xf32> to vector<16x256xf32>
    %456 = arith.addf %454, %455 : vector<16x256xf32>
    %457 = vector.extract_strided_slice %456 {offsets = [0, 64], sizes = [16, 64], strides = [1, 1]} : vector<16x256xf32> to vector<16x64xf32>
    %458 = arith.mulf %457, %439 : vector<16x64xf32>
    %459 = vector.extract_strided_slice %456 {offsets = [0, 0], sizes = [16, 64], strides = [1, 1]} : vector<16x256xf32> to vector<16x64xf32>
    %460 = vector.extract_strided_slice %456 {offsets = [0, 128], sizes = [16, 64], strides = [1, 1]} : vector<16x256xf32> to vector<16x64xf32>
    %461 = arith.mulf %459, %460 : vector<16x64xf32>
    %462 = arith.addf %458, %461 : vector<16x64xf32>
    %463 = vector.extract_strided_slice %456 {offsets = [0, 192], sizes = [16, 64], strides = [1, 1]} : vector<16x256xf32> to vector<16x64xf32>
    %464 = math.tanh %462 : vector<16x64xf32>
    %465 = arith.mulf %463, %464 : vector<16x64xf32>
    %c20_i32 = arith.constant 20 : i32
    %466 = arith.index_cast %c20_i32 : i32 to index
    %c0_64 = arith.constant 0 : index
    %c0_65 = arith.constant 0 : index
    %467 = vector.load %arg1[%466, %c0_64, %c0_65] : memref<28x16x256xbf16, #tpu.memory_space<vmem>>, vector<1x16x256xbf16>
    %468 = vector.shape_cast %467 : vector<1x16x256xbf16> to vector<16x256xbf16>
    %469 = arith.extf %468 : vector<16x256xbf16> to vector<16x256xf32>
    %470 = arith.truncf %465 : vector<16x64xf32> to vector<16x64xbf16>
    %cst_66 = arith.constant dense<0.000000e+00> : vector<16x256xf32>
    %471 = tpu.matmul %470, %0, %cst_66 {dimension_numbers = #tpu.dot_dimension_numbers<[1], [0], [0], [1], [0, 0, 1, 1], [], []>} : vector<16x64xbf16>, vector<64x256xbf16>, vector<16x256xf32> -> vector<16x256xf32>
    %472 = arith.addf %469, %471 : vector<16x256xf32>
    %473 = vector.broadcast %9 : vector<1x256xf32> to vector<16x256xf32>
    %474 = arith.mulf %472, %473 : vector<16x256xf32>
    %475 = math.tanh %474 : vector<16x256xf32>
    %476 = vector.broadcast %9 : vector<1x256xf32> to vector<16x256xf32>
    %477 = arith.mulf %475, %476 : vector<16x256xf32>
    %478 = vector.broadcast %12 : vector<1x256xf32> to vector<16x256xf32>
    %479 = arith.addf %477, %478 : vector<16x256xf32>
    %480 = vector.extract_strided_slice %479 {offsets = [0, 64], sizes = [16, 64], strides = [1, 1]} : vector<16x256xf32> to vector<16x64xf32>
    %481 = arith.mulf %480, %462 : vector<16x64xf32>
    %482 = vector.extract_strided_slice %479 {offsets = [0, 0], sizes = [16, 64], strides = [1, 1]} : vector<16x256xf32> to vector<16x64xf32>
    %483 = vector.extract_strided_slice %479 {offsets = [0, 128], sizes = [16, 64], strides = [1, 1]} : vector<16x256xf32> to vector<16x64xf32>
    %484 = arith.mulf %482, %483 : vector<16x64xf32>
    %485 = arith.addf %481, %484 : vector<16x64xf32>
    %486 = vector.extract_strided_slice %479 {offsets = [0, 192], sizes = [16, 64], strides = [1, 1]} : vector<16x256xf32> to vector<16x64xf32>
    %487 = math.tanh %485 : vector<16x64xf32>
    %488 = arith.mulf %486, %487 : vector<16x64xf32>
    %c21_i32 = arith.constant 21 : i32
    %489 = arith.index_cast %c21_i32 : i32 to index
    %c0_67 = arith.constant 0 : index
    %c0_68 = arith.constant 0 : index
    %490 = vector.load %arg1[%489, %c0_67, %c0_68] : memref<28x16x256xbf16, #tpu.memory_space<vmem>>, vector<1x16x256xbf16>
    %491 = vector.shape_cast %490 : vector<1x16x256xbf16> to vector<16x256xbf16>
    %492 = arith.extf %491 : vector<16x256xbf16> to vector<16x256xf32>
    %493 = arith.truncf %488 : vector<16x64xf32> to vector<16x64xbf16>
    %cst_69 = arith.constant dense<0.000000e+00> : vector<16x256xf32>
    %494 = tpu.matmul %493, %0, %cst_69 {dimension_numbers = #tpu.dot_dimension_numbers<[1], [0], [0], [1], [0, 0, 1, 1], [], []>} : vector<16x64xbf16>, vector<64x256xbf16>, vector<16x256xf32> -> vector<16x256xf32>
    %495 = arith.addf %492, %494 : vector<16x256xf32>
    %496 = vector.broadcast %9 : vector<1x256xf32> to vector<16x256xf32>
    %497 = arith.mulf %495, %496 : vector<16x256xf32>
    %498 = math.tanh %497 : vector<16x256xf32>
    %499 = vector.broadcast %9 : vector<1x256xf32> to vector<16x256xf32>
    %500 = arith.mulf %498, %499 : vector<16x256xf32>
    %501 = vector.broadcast %12 : vector<1x256xf32> to vector<16x256xf32>
    %502 = arith.addf %500, %501 : vector<16x256xf32>
    %503 = vector.extract_strided_slice %502 {offsets = [0, 64], sizes = [16, 64], strides = [1, 1]} : vector<16x256xf32> to vector<16x64xf32>
    %504 = arith.mulf %503, %485 : vector<16x64xf32>
    %505 = vector.extract_strided_slice %502 {offsets = [0, 0], sizes = [16, 64], strides = [1, 1]} : vector<16x256xf32> to vector<16x64xf32>
    %506 = vector.extract_strided_slice %502 {offsets = [0, 128], sizes = [16, 64], strides = [1, 1]} : vector<16x256xf32> to vector<16x64xf32>
    %507 = arith.mulf %505, %506 : vector<16x64xf32>
    %508 = arith.addf %504, %507 : vector<16x64xf32>
    %509 = vector.extract_strided_slice %502 {offsets = [0, 192], sizes = [16, 64], strides = [1, 1]} : vector<16x256xf32> to vector<16x64xf32>
    %510 = math.tanh %508 : vector<16x64xf32>
    %511 = arith.mulf %509, %510 : vector<16x64xf32>
    %c22_i32 = arith.constant 22 : i32
    %512 = arith.index_cast %c22_i32 : i32 to index
    %c0_70 = arith.constant 0 : index
    %c0_71 = arith.constant 0 : index
    %513 = vector.load %arg1[%512, %c0_70, %c0_71] : memref<28x16x256xbf16, #tpu.memory_space<vmem>>, vector<1x16x256xbf16>
    %514 = vector.shape_cast %513 : vector<1x16x256xbf16> to vector<16x256xbf16>
    %515 = arith.extf %514 : vector<16x256xbf16> to vector<16x256xf32>
    %516 = arith.truncf %511 : vector<16x64xf32> to vector<16x64xbf16>
    %cst_72 = arith.constant dense<0.000000e+00> : vector<16x256xf32>
    %517 = tpu.matmul %516, %0, %cst_72 {dimension_numbers = #tpu.dot_dimension_numbers<[1], [0], [0], [1], [0, 0, 1, 1], [], []>} : vector<16x64xbf16>, vector<64x256xbf16>, vector<16x256xf32> -> vector<16x256xf32>
    %518 = arith.addf %515, %517 : vector<16x256xf32>
    %519 = vector.broadcast %9 : vector<1x256xf32> to vector<16x256xf32>
    %520 = arith.mulf %518, %519 : vector<16x256xf32>
    %521 = math.tanh %520 : vector<16x256xf32>
    %522 = vector.broadcast %9 : vector<1x256xf32> to vector<16x256xf32>
    %523 = arith.mulf %521, %522 : vector<16x256xf32>
    %524 = vector.broadcast %12 : vector<1x256xf32> to vector<16x256xf32>
    %525 = arith.addf %523, %524 : vector<16x256xf32>
    %526 = vector.extract_strided_slice %525 {offsets = [0, 64], sizes = [16, 64], strides = [1, 1]} : vector<16x256xf32> to vector<16x64xf32>
    %527 = arith.mulf %526, %508 : vector<16x64xf32>
    %528 = vector.extract_strided_slice %525 {offsets = [0, 0], sizes = [16, 64], strides = [1, 1]} : vector<16x256xf32> to vector<16x64xf32>
    %529 = vector.extract_strided_slice %525 {offsets = [0, 128], sizes = [16, 64], strides = [1, 1]} : vector<16x256xf32> to vector<16x64xf32>
    %530 = arith.mulf %528, %529 : vector<16x64xf32>
    %531 = arith.addf %527, %530 : vector<16x64xf32>
    %532 = vector.extract_strided_slice %525 {offsets = [0, 192], sizes = [16, 64], strides = [1, 1]} : vector<16x256xf32> to vector<16x64xf32>
    %533 = math.tanh %531 : vector<16x64xf32>
    %534 = arith.mulf %532, %533 : vector<16x64xf32>
    %c23_i32 = arith.constant 23 : i32
    %535 = arith.index_cast %c23_i32 : i32 to index
    %c0_73 = arith.constant 0 : index
    %c0_74 = arith.constant 0 : index
    %536 = vector.load %arg1[%535, %c0_73, %c0_74] : memref<28x16x256xbf16, #tpu.memory_space<vmem>>, vector<1x16x256xbf16>
    %537 = vector.shape_cast %536 : vector<1x16x256xbf16> to vector<16x256xbf16>
    %538 = arith.extf %537 : vector<16x256xbf16> to vector<16x256xf32>
    %539 = arith.truncf %534 : vector<16x64xf32> to vector<16x64xbf16>
    %cst_75 = arith.constant dense<0.000000e+00> : vector<16x256xf32>
    %540 = tpu.matmul %539, %0, %cst_75 {dimension_numbers = #tpu.dot_dimension_numbers<[1], [0], [0], [1], [0, 0, 1, 1], [], []>} : vector<16x64xbf16>, vector<64x256xbf16>, vector<16x256xf32> -> vector<16x256xf32>
    %541 = arith.addf %538, %540 : vector<16x256xf32>
    %542 = vector.broadcast %9 : vector<1x256xf32> to vector<16x256xf32>
    %543 = arith.mulf %541, %542 : vector<16x256xf32>
    %544 = math.tanh %543 : vector<16x256xf32>
    %545 = vector.broadcast %9 : vector<1x256xf32> to vector<16x256xf32>
    %546 = arith.mulf %544, %545 : vector<16x256xf32>
    %547 = vector.broadcast %12 : vector<1x256xf32> to vector<16x256xf32>
    %548 = arith.addf %546, %547 : vector<16x256xf32>
    %549 = vector.extract_strided_slice %548 {offsets = [0, 64], sizes = [16, 64], strides = [1, 1]} : vector<16x256xf32> to vector<16x64xf32>
    %550 = arith.mulf %549, %531 : vector<16x64xf32>
    %551 = vector.extract_strided_slice %548 {offsets = [0, 0], sizes = [16, 64], strides = [1, 1]} : vector<16x256xf32> to vector<16x64xf32>
    %552 = vector.extract_strided_slice %548 {offsets = [0, 128], sizes = [16, 64], strides = [1, 1]} : vector<16x256xf32> to vector<16x64xf32>
    %553 = arith.mulf %551, %552 : vector<16x64xf32>
    %554 = arith.addf %550, %553 : vector<16x64xf32>
    %555 = vector.extract_strided_slice %548 {offsets = [0, 192], sizes = [16, 64], strides = [1, 1]} : vector<16x256xf32> to vector<16x64xf32>
    %556 = math.tanh %554 : vector<16x64xf32>
    %557 = arith.mulf %555, %556 : vector<16x64xf32>
    %c24_i32 = arith.constant 24 : i32
    %558 = arith.index_cast %c24_i32 : i32 to index
    %c0_76 = arith.constant 0 : index
    %c0_77 = arith.constant 0 : index
    %559 = vector.load %arg1[%558, %c0_76, %c0_77] : memref<28x16x256xbf16, #tpu.memory_space<vmem>>, vector<1x16x256xbf16>
    %560 = vector.shape_cast %559 : vector<1x16x256xbf16> to vector<16x256xbf16>
    %561 = arith.extf %560 : vector<16x256xbf16> to vector<16x256xf32>
    %562 = arith.truncf %557 : vector<16x64xf32> to vector<16x64xbf16>
    %cst_78 = arith.constant dense<0.000000e+00> : vector<16x256xf32>
    %563 = tpu.matmul %562, %0, %cst_78 {dimension_numbers = #tpu.dot_dimension_numbers<[1], [0], [0], [1], [0, 0, 1, 1], [], []>} : vector<16x64xbf16>, vector<64x256xbf16>, vector<16x256xf32> -> vector<16x256xf32>
    %564 = arith.addf %561, %563 : vector<16x256xf32>
    %565 = vector.broadcast %9 : vector<1x256xf32> to vector<16x256xf32>
    %566 = arith.mulf %564, %565 : vector<16x256xf32>
    %567 = math.tanh %566 : vector<16x256xf32>
    %568 = vector.broadcast %9 : vector<1x256xf32> to vector<16x256xf32>
    %569 = arith.mulf %567, %568 : vector<16x256xf32>
    %570 = vector.broadcast %12 : vector<1x256xf32> to vector<16x256xf32>
    %571 = arith.addf %569, %570 : vector<16x256xf32>
    %572 = vector.extract_strided_slice %571 {offsets = [0, 64], sizes = [16, 64], strides = [1, 1]} : vector<16x256xf32> to vector<16x64xf32>
    %573 = arith.mulf %572, %554 : vector<16x64xf32>
    %574 = vector.extract_strided_slice %571 {offsets = [0, 0], sizes = [16, 64], strides = [1, 1]} : vector<16x256xf32> to vector<16x64xf32>
    %575 = vector.extract_strided_slice %571 {offsets = [0, 128], sizes = [16, 64], strides = [1, 1]} : vector<16x256xf32> to vector<16x64xf32>
    %576 = arith.mulf %574, %575 : vector<16x64xf32>
    %577 = arith.addf %573, %576 : vector<16x64xf32>
    %578 = vector.extract_strided_slice %571 {offsets = [0, 192], sizes = [16, 64], strides = [1, 1]} : vector<16x256xf32> to vector<16x64xf32>
    %579 = math.tanh %577 : vector<16x64xf32>
    %580 = arith.mulf %578, %579 : vector<16x64xf32>
    %c25_i32 = arith.constant 25 : i32
    %581 = arith.index_cast %c25_i32 : i32 to index
    %c0_79 = arith.constant 0 : index
    %c0_80 = arith.constant 0 : index
    %582 = vector.load %arg1[%581, %c0_79, %c0_80] : memref<28x16x256xbf16, #tpu.memory_space<vmem>>, vector<1x16x256xbf16>
    %583 = vector.shape_cast %582 : vector<1x16x256xbf16> to vector<16x256xbf16>
    %584 = arith.extf %583 : vector<16x256xbf16> to vector<16x256xf32>
    %585 = arith.truncf %580 : vector<16x64xf32> to vector<16x64xbf16>
    %cst_81 = arith.constant dense<0.000000e+00> : vector<16x256xf32>
    %586 = tpu.matmul %585, %0, %cst_81 {dimension_numbers = #tpu.dot_dimension_numbers<[1], [0], [0], [1], [0, 0, 1, 1], [], []>} : vector<16x64xbf16>, vector<64x256xbf16>, vector<16x256xf32> -> vector<16x256xf32>
    %587 = arith.addf %584, %586 : vector<16x256xf32>
    %588 = vector.broadcast %9 : vector<1x256xf32> to vector<16x256xf32>
    %589 = arith.mulf %587, %588 : vector<16x256xf32>
    %590 = math.tanh %589 : vector<16x256xf32>
    %591 = vector.broadcast %9 : vector<1x256xf32> to vector<16x256xf32>
    %592 = arith.mulf %590, %591 : vector<16x256xf32>
    %593 = vector.broadcast %12 : vector<1x256xf32> to vector<16x256xf32>
    %594 = arith.addf %592, %593 : vector<16x256xf32>
    %595 = vector.extract_strided_slice %594 {offsets = [0, 64], sizes = [16, 64], strides = [1, 1]} : vector<16x256xf32> to vector<16x64xf32>
    %596 = arith.mulf %595, %577 : vector<16x64xf32>
    %597 = vector.extract_strided_slice %594 {offsets = [0, 0], sizes = [16, 64], strides = [1, 1]} : vector<16x256xf32> to vector<16x64xf32>
    %598 = vector.extract_strided_slice %594 {offsets = [0, 128], sizes = [16, 64], strides = [1, 1]} : vector<16x256xf32> to vector<16x64xf32>
    %599 = arith.mulf %597, %598 : vector<16x64xf32>
    %600 = arith.addf %596, %599 : vector<16x64xf32>
    %601 = vector.extract_strided_slice %594 {offsets = [0, 192], sizes = [16, 64], strides = [1, 1]} : vector<16x256xf32> to vector<16x64xf32>
    %602 = math.tanh %600 : vector<16x64xf32>
    %603 = arith.mulf %601, %602 : vector<16x64xf32>
    %c26_i32 = arith.constant 26 : i32
    %604 = arith.index_cast %c26_i32 : i32 to index
    %c0_82 = arith.constant 0 : index
    %c0_83 = arith.constant 0 : index
    %605 = vector.load %arg1[%604, %c0_82, %c0_83] : memref<28x16x256xbf16, #tpu.memory_space<vmem>>, vector<1x16x256xbf16>
    %606 = vector.shape_cast %605 : vector<1x16x256xbf16> to vector<16x256xbf16>
    %607 = arith.extf %606 : vector<16x256xbf16> to vector<16x256xf32>
    %608 = arith.truncf %603 : vector<16x64xf32> to vector<16x64xbf16>
    %cst_84 = arith.constant dense<0.000000e+00> : vector<16x256xf32>
    %609 = tpu.matmul %608, %0, %cst_84 {dimension_numbers = #tpu.dot_dimension_numbers<[1], [0], [0], [1], [0, 0, 1, 1], [], []>} : vector<16x64xbf16>, vector<64x256xbf16>, vector<16x256xf32> -> vector<16x256xf32>
    %610 = arith.addf %607, %609 : vector<16x256xf32>
    %611 = vector.broadcast %9 : vector<1x256xf32> to vector<16x256xf32>
    %612 = arith.mulf %610, %611 : vector<16x256xf32>
    %613 = math.tanh %612 : vector<16x256xf32>
    %614 = vector.broadcast %9 : vector<1x256xf32> to vector<16x256xf32>
    %615 = arith.mulf %613, %614 : vector<16x256xf32>
    %616 = vector.broadcast %12 : vector<1x256xf32> to vector<16x256xf32>
    %617 = arith.addf %615, %616 : vector<16x256xf32>
    %618 = vector.extract_strided_slice %617 {offsets = [0, 64], sizes = [16, 64], strides = [1, 1]} : vector<16x256xf32> to vector<16x64xf32>
    %619 = arith.mulf %618, %600 : vector<16x64xf32>
    %620 = vector.extract_strided_slice %617 {offsets = [0, 0], sizes = [16, 64], strides = [1, 1]} : vector<16x256xf32> to vector<16x64xf32>
    %621 = vector.extract_strided_slice %617 {offsets = [0, 128], sizes = [16, 64], strides = [1, 1]} : vector<16x256xf32> to vector<16x64xf32>
    %622 = arith.mulf %620, %621 : vector<16x64xf32>
    %623 = arith.addf %619, %622 : vector<16x64xf32>
    %624 = vector.extract_strided_slice %617 {offsets = [0, 192], sizes = [16, 64], strides = [1, 1]} : vector<16x256xf32> to vector<16x64xf32>
    %625 = math.tanh %623 : vector<16x64xf32>
    %626 = arith.mulf %624, %625 : vector<16x64xf32>
    %c27_i32 = arith.constant 27 : i32
    %627 = arith.index_cast %c27_i32 : i32 to index
    %c0_85 = arith.constant 0 : index
    %c0_86 = arith.constant 0 : index
    %628 = vector.load %arg1[%627, %c0_85, %c0_86] : memref<28x16x256xbf16, #tpu.memory_space<vmem>>, vector<1x16x256xbf16>
    %629 = vector.shape_cast %628 : vector<1x16x256xbf16> to vector<16x256xbf16>
    %630 = arith.extf %629 : vector<16x256xbf16> to vector<16x256xf32>
    %631 = arith.truncf %626 : vector<16x64xf32> to vector<16x64xbf16>
    %cst_87 = arith.constant dense<0.000000e+00> : vector<16x256xf32>
    %632 = tpu.matmul %631, %0, %cst_87 {dimension_numbers = #tpu.dot_dimension_numbers<[1], [0], [0], [1], [0, 0, 1, 1], [], []>} : vector<16x64xbf16>, vector<64x256xbf16>, vector<16x256xf32> -> vector<16x256xf32>
    %633 = arith.addf %630, %632 : vector<16x256xf32>
    %634 = vector.broadcast %9 : vector<1x256xf32> to vector<16x256xf32>
    %635 = arith.mulf %633, %634 : vector<16x256xf32>
    %636 = math.tanh %635 : vector<16x256xf32>
    %637 = vector.broadcast %9 : vector<1x256xf32> to vector<16x256xf32>
    %638 = arith.mulf %636, %637 : vector<16x256xf32>
    %639 = vector.broadcast %12 : vector<1x256xf32> to vector<16x256xf32>
    %640 = arith.addf %638, %639 : vector<16x256xf32>
    %641 = vector.extract_strided_slice %640 {offsets = [0, 64], sizes = [16, 64], strides = [1, 1]} : vector<16x256xf32> to vector<16x64xf32>
    %642 = arith.mulf %641, %623 : vector<16x64xf32>
    %643 = vector.extract_strided_slice %640 {offsets = [0, 0], sizes = [16, 64], strides = [1, 1]} : vector<16x256xf32> to vector<16x64xf32>
    %644 = vector.extract_strided_slice %640 {offsets = [0, 128], sizes = [16, 64], strides = [1, 1]} : vector<16x256xf32> to vector<16x64xf32>
    %645 = arith.mulf %643, %644 : vector<16x64xf32>
    %646 = arith.addf %642, %645 : vector<16x64xf32>
    %647 = vector.extract_strided_slice %640 {offsets = [0, 192], sizes = [16, 64], strides = [1, 1]} : vector<16x256xf32> to vector<16x64xf32>
    %648 = math.tanh %646 : vector<16x64xf32>
    %649 = arith.mulf %647, %648 : vector<16x64xf32>
    %c27_i32_88 = arith.constant 27 : i32
    %c0_89 = arith.constant 0 : index
    %c0_90 = arith.constant 0 : index
    %650 = vector.load %arg3[%c0_89, %c0_90] : memref<64x128xf32, #tpu.memory_space<vmem>>, vector<64x128xf32>
    %cst_91 = arith.constant dense<0.000000e+00> : vector<16x128xf32>
    %651 = tpu.matmul %649, %650, %cst_91 {dimension_numbers = #tpu.dot_dimension_numbers<[1], [0], [0], [1], [0, 0, 1, 1], [], []>} : vector<16x64xf32>, vector<64x128xf32>, vector<16x128xf32> -> vector<16x128xf32>
    %c0_92 = arith.constant 0 : index
    %c0_93 = arith.constant 0 : index
    %652 = vector.load %arg4[%c0_92, %c0_93] : memref<1x128xf32, #tpu.memory_space<vmem>>, vector<1x128xf32>
    %653 = vector.broadcast %652 : vector<1x128xf32> to vector<16x128xf32>
    %654 = arith.addf %651, %653 : vector<16x128xf32>
    %cst_94 = arith.constant dense<0xFF800000> : vector<16xf32>
    %655 = vector.multi_reduction <maximumf>, %654, %cst_94 [1] : vector<16x128xf32> to vector<16xf32>
    %656 = vector.shape_cast %655 : vector<16xf32> to vector<16x1xf32>
    %657 = vector.broadcast %656 : vector<16x1xf32> to vector<16x128xf32>
    %658 = arith.subf %654, %657 : vector<16x128xf32>
    %659 = math.exp %658 : vector<16x128xf32>
    %cst_95 = arith.constant dense<0.000000e+00> : vector<16xf32>
    %660 = vector.multi_reduction <add>, %659, %cst_95 [1] : vector<16x128xf32> to vector<16xf32>
    %661 = vector.shape_cast %660 : vector<16xf32> to vector<16x1xf32>
    %662 = vector.broadcast %661 : vector<16x1xf32> to vector<16x128xf32>
    %663 = arith.divf %659, %662 : vector<16x128xf32>
    %c0_96 = arith.constant 0 : index
    %c0_97 = arith.constant 0 : index
    %664 = vector.load %arg5[%c0_96, %c0_97] : memref<16x128xf32, #tpu.memory_space<vmem>>, vector<16x128xf32>
    tpu.vector_store %arg5[%c0_96, %c0_97], %663 {strides = array<i32>} : memref<16x128xf32, #tpu.memory_space<vmem>>, vector<16x128xf32>,
    return
  }
  func.func @transform_0(%arg0: i32) -> (i32, i32, i32) {
    %c0_i32 = arith.constant 0 : i32
    %c0_i32_0 = arith.constant 0 : i32
    %c0_i32_1 = arith.constant 0 : i32
    return %c0_i32, %arg0, %c0_i32_0 : i32, i32, i32
  }
  func.func @transform_1(%arg0: i32) -> (i32, i32) {
    %c0_i32 = arith.constant 0 : i32
    %c0_i32_0 = arith.constant 0 : i32
    %c0_i32_1 = arith.constant 0 : i32
    return %c0_i32, %c0_i32_0 : i32, i32
  }
  func.func @transform_2(%arg0: i32) -> (i32, i32) {
    %c0_i32 = arith.constant 0 : i32
    %c0_i32_0 = arith.constant 0 : i32
    %c0_i32_1 = arith.constant 0 : i32
    return %c0_i32, %c0_i32_0 : i32, i32
  }
  func.func @transform_3(%arg0: i32) -> (i32, i32) {
    %c0_i32 = arith.constant 0 : i32
    %c0_i32_0 = arith.constant 0 : i32
    %c0_i32_1 = arith.constant 0 : i32
    return %c0_i32, %c0_i32_0 : i32, i32
  }
  func.func @transform_4(%arg0: i32) -> (i32, i32) {
    %c0_i32 = arith.constant 0 : i32
    %c0_i32_0 = arith.constant 0 : i32
    return %arg0, %c0_i32 : i32, i32
  }
}

</mosaic_0001>

<bundles_post_ra>
// kernel: tpu_custom_call.1
= control target key start
LH: loop header
LB: loop body
LE: loop exit
PB: predicated region body
PF: predicated region fallthrough
CT: control target
= control target key end

     0   :  { %9 = vsyncpa [#allocation3], 0  ;;  %s4069_s0 = inlined_call_operand.hbm [shape: bf16[28,16,256], index: 0, kind: input, shape index: {}]   ;;  %s4070_s1 = inlined_call_operand.hbm [shape: bf16[64,256], index: 1, kind: input, shape index: {}]   ;;  %s4071_s2 = inlined_call_operand.hbm [shape: f32[64,128], index: 2, kind: input, shape index: {}]   ;;  %s4072_s3 = inlined_call_operand.vmem [shape: f32[1,128], index: 3, kind: input, shape index: {}]   ;;  %s4073_s4 = inlined_call_operand.hbm [shape: f32[16,128], index: 4, kind: output, shape index: {}]  }
   0x1   :  { %10 = vsyncpa [#allocation6], 0 }
   0x2   :  { %11 = vsyncpa [#allocation4], 0  ;;  %s3403_s15 = smov [#allocation5]   ;;  %s3404_s17 = smov [#allocation2]  }
   0x3   :  { %s29_s16 = sshll.u32 %s3403_s15, 4  ;;  %s17_s18 = sshll.u32 %s3404_s17, 4  ;;  %s30_s16 = int_to_ptr.vmem [resolvable:$true] %s29_s16  ;;  %s18_s18 = int_to_ptr.vmem [resolvable:$true] %s17_s18 }
   0x4   :  { %s3325_s19 = scalar_lea.vmem %s30_s16, 1024  ;;  %p3330_p1 = scmp.lt.s32.totalorder %s30_s16, %s30_s16 }
   0x5   :  { %p3326_p0 = scmp.ne.s32.totalorder %s30_s16, %s3325_s19  ;;  %p3331_p2 = scmp.lt.s32.totalorder %s3325_s19, %s3325_s19 }
   0x7   :  { %p3332_p3 = por %p3331_p2, %p3330_p1 }
   0x9   :  { %p3333_p4 = pnand %p3332_p3, %p3326_p0 }
   0xb   :  { %3336 = shalt.err (!%p3333_p4)
}
   0xc   :  { %s3405_s20 = smov 128   ;;  %s3406_s21 = smov 8  }
   0xd   :  { %35 = dma.hbm_to_vmem [thread:$0]  %s4070_s1, 1024, %s30_s16, [#allocation6], %s3405_s20, %s3405_s20, %s3406_s21  }
   0xe   :  { %s3345_s24 = scalar_lea.vmem %s18_s18, 7168  ;;  %p3350_p6 = scmp.lt.s32.totalorder %s18_s18, %s18_s18 }
   0xf   :  { %p3346_p5 = scmp.ne.s32.totalorder %s18_s18, %s3345_s24  ;;  %p3351_p7 = scmp.lt.s32.totalorder %s3345_s24, %s3345_s24 }
  0x11   :  { %p3352_p8 = por %p3351_p7, %p3350_p6 }
  0x13   :  { %p3353_p9 = pnand %p3352_p8, %p3346_p5 }
  0x15   :  { %3356 = shalt.err (!%p3353_p9)
}
  0x16   :  { %23 = dma.hbm_to_vmem [thread:$0]  %s4069_s0, 7168, %s18_s18, [#allocation3], %s3405_s20, %s3405_s20, %s3406_s21  }
  0x17   :  { %s3407_s27 = smov [#allocation7]  }
  0x18   :  { %s41_s28 = sshll.u32 %s3407_s27, 4  ;;  %s42_s28 = int_to_ptr.vmem [resolvable:$true] %s41_s28 }
  0x19   :  { %s3365_s29 = scalar_lea.vmem %s42_s28, 1024  ;;  %p3370_p11 = scmp.lt.s32.totalorder %s42_s28, %s42_s28 }
  0x1a   :  { %p3366_p10 = scmp.ne.s32.totalorder %s42_s28, %s3365_s29  ;;  %p3371_p12 = scmp.lt.s32.totalorder %s3365_s29, %s3365_s29 }
  0x1c   :  { %p3372_p13 = por %p3371_p12, %p3370_p11 }
  0x1e   :  { %p3373_p0 = pnand %p3372_p13, %p3366_p10 }
  0x20   :  { %3376 = shalt.err (!%p3373_p0)
}
  0x21   :  { %47 = dma.hbm_to_vmem [thread:$0]  %s4071_s2, 1024, %s42_s28, [#allocation6], %s3405_s20, %s3405_s20, %s3406_s21  }
  0x22   :  { %3397 = dma.done.wait [#allocation3], 7168  }
  0x23   :  { %3398 = vsyncadd [#allocation3], 4294960128 }
  0x24   :  { %3399 = dma.done.wait [#allocation6], 2048  }
  0x25   :  { %3400 = vsyncadd [#allocation6], 4294965248  ;;  %v68_v0 = vlaneseq  ;;  %v3408_v3 = vmov 0.5   ;;  %v81_v5 = vld [vmem:[#allocation2] sm:$0xff]  ;;  %v82_v6 = vld [vmem:[#allocation2 + $0x8] sm:$0xff]  ;;  %v3409_v34 = vmov 0  }
  0x26   :  { %v83_v7 = vunpack.c.l.bf16 %v81_v5  ;;  %v84_v8 = vunpack.c.h.bf16 %v81_v5  ;;  %v85_v9 = vunpack.c.l.bf16 %v82_v6  ;;  %v86_v10 = vunpack.c.h.bf16 %v82_v6  ;;  %v3467_v30 = vld [vmem:[#allocation5 + $0x34] ss:$8 sps:$4 sm:$0xff]   ;;  %v3469_v31 = vld [vmem:[#allocation5 + $0x30] ss:$8 sps:$4 sm:$0xff]   ;;  %v3471_v32 = vld [vmem:[#allocation5 + $0x24] ss:$8 sps:$4 sm:$0xff]   ;;  %204 = vmatprep.mubr.bf16.mxu0 %v3409_v34  ;;  %307 = vmatprep.mubr.bf16.mxu1 %v3409_v34 }
  0x27   :  { %v69_v1 = vand.u32 127, %v68_v0  ;;  %180 = vmatprep.subr.bf16.mxu0 %v3467_v30  ;;  %283 = vmatprep.subr.bf16.mxu1 %v3467_v30  ;;  %v3476_v33 = vld [vmem:[#allocation5 + $0x20] ss:$8 sps:$4 sm:$0xff]   ;;  %v3480_v36 = vld [vmem:[#allocation5 + $0x14] ss:$8 sps:$4 sm:$0xff]   ;;  %s3410_s0 = smov 64  }
  0x28   :  { %v87_v11 = vmul.f32 0.5, %v83_v7  ;;  %v89_v13 = vmul.f32 0.5, %v85_v9  ;;  %181 = vmatpush1.bf16.msra.mxu0 %v3469_v31  ;;  %284 = vmatpush1.bf16.msra.mxu1 %v3469_v31  ;;  %v3487_v38 = vld [vmem:[#allocation5 + $0x10] ss:$8 sps:$4 sm:$0xff]   ;;  %v3490_v39 = vld [vmem:[#allocation5 + $0x4] ss:$8 sps:$4 sm:$0xff]  }
  0x29   :  { %v70_v2 = vadd.s32 128, %v69_v1  ;;  %182 = vmatprep.subr.bf16.mxu0 %v3471_v32  ;;  %285 = vmatprep.subr.bf16.mxu1 %v3471_v32  ;;  %v3496_v40 = vld [vmem:[#allocation5] ss:$8 sps:$4 sm:$0xff]   ;;  %vm168_vm1 = vcmask 523264   ;;  %v118_v47 = vld [vmem:[#allocation2 + $0x10] sm:$0xff]  ;;  %v119_v49 = vld [vmem:[#allocation2 + $0x18] sm:$0xff] }
  0x2a   :  { %2957 = vtanh.f32 %v87_v11  ;;  %v120_v48 = vunpack.c.l.bf16 %v118_v47  ;;  %v121_v50 = vunpack.c.h.bf16 %v118_v47  ;;  %v122_v53 = vunpack.c.l.bf16 %v119_v49 }
  0x2b   :  { %vm74_vm0 = vcmp.lt.s32.totalorder %v70_v2, 192  ;;  %v123_v57 = vunpack.c.h.bf16 %v119_v49 }
  0x2c   :  { %v3456_v4 = vsel %vm74_vm0, 1.0, %v3408_v3  ;;  %v3461_v17 = vsel %vm74_vm0, 0.0, %v3408_v3  ;;  %183 = vmatpush1.bf16.msra.mxu0 %v3476_v33  ;;  %286 = vmatpush1.bf16.msra.mxu1 %v3476_v33 }
  0x2d   :  { %v88_v12 = vmul.f32 %v84_v8, %v3456_v4  ;;  %v90_v14 = vmul.f32 %v86_v10, %v3456_v4  ;;  %184 = vmatprep.subr.bf16.mxu0 %v3480_v36  ;;  %287 = vmatprep.subr.bf16.mxu1 %v3480_v36 }
  0x2f   :  { %2959 = vtanh.f32 %v88_v12 }
  0x30   :  { %2961 = vtanh.f32 %v89_v13  ;;  %185 = vmatpush1.bf16.msra.mxu0 %v3487_v38  ;;  %288 = vmatpush1.bf16.msra.mxu1 %v3487_v38 }
  0x31   :  { %2963 = vtanh.f32 %v90_v14  ;;  %186 = vmatprep.subr.bf16.mxu0 %v3490_v39  ;;  %289 = vmatprep.subr.bf16.mxu1 %v3490_v39 }
  0x34   :  { %187 = vmatpush1.bf16.msra.mxu0 %v3496_v40  ;;  %290 = vmatpush1.bf16.msra.mxu1 %v3496_v40 }
  0x35   :  { %378 = vmatprep.subr.bf16.mxu0 %v3467_v30  ;;  %473 = vmatprep.subr.bf16.mxu1 %v3467_v30 }
  0x37   :  { %v2958_v15 = vpop.eup %2957 }
  0x38   :  { %v95_v18 = vmul.f32 0.5, %v2958_v15 }
  0x3a   :  { %v99_v22 = vadd.f32 0.5, %v95_v18 }
  0x3c   :  { %v2960_v16 = vpop.eup %2959 }
  0x3d   :  { %v2962_v19 = vpop.eup %2961  ;;  %v96_v20 = vmul.f32 %v2960_v16, %v3456_v4 }
  0x3e   :  { %v2964_v21 = vpop.eup %2963  ;;  %v97_v23 = vmul.f32 0.5, %v2962_v19 }
  0x3f   :  { %v100_v24 = vadd.f32 %v96_v20, %v3461_v17  ;;  %v98_v25 = vmul.f32 %v2964_v21, %v3456_v4 }
  0x40   :  { %v101_v26 = vadd.f32 0.5, %v97_v23 }
  0x41   :  { %v103_v27 = vmul.f32 %v100_v24, %v99_v22  ;;  %v102_v28 = vadd.f32 %v98_v25, %v3461_v17 }
  0x43   :  { %2965 = vtanh.f32 %v103_v27  ;;  %v104_v29 = vmul.f32 %v102_v28, %v101_v26 }
  0x45   :  { %2967 = vtanh.f32 %v104_v29 }
  0x50   :  { %v2966_v35 = vpop.eup %2965 }
  0x51   :  { %109 = vrot.lane.b32.xlu0 %v2966_v35, %s3410_s0 }
  0x52   :  { %v2968_v37 = vpop.eup %2967 }
  0x55   :  { %111 = vrot.lane.b32.xlu0 %v2968_v37, %s3410_s0  ;;  %v262_v37 = vld [vmem:[#allocation2 + $0x20] sm:$0xff] }
  0x59   :  { %239 = vrot.lane.b32.xlu0 %v104_v29, %s3410_s0 }
  0xc3   :  { %v110_v41 = vpop.permute.xlu0 %109 }
  0xc4   :  { %v115_v43 = vmul.f32 %v110_v41, %v100_v24  ;;  %v264_v41 = vunpack.c.l.bf16 %v262_v37 }
  0xc7   :  { %v112_v42 = vpop.permute.xlu0 %111 }
  0xc8   :  { %v116_v44 = vmul.f32 %v112_v42, %v102_v28  ;;  %v263_v42 = vld [vmem:[#allocation2 + $0x28] sm:$0xff] }
  0xca   :  { %v124_v45 = vpack.c.bf16 %v116_v44, %v115_v43  ;;  %v265_v43 = vunpack.c.h.bf16 %v262_v37 }
  0xcb   :  { %v240_v19 = vpop.permute.xlu0 %239 }
  0xcc   :  { %126 = vrot.lane.b32.xlu1 %v124_v45, %s3410_s0 }
  0xd0   :  { %237 = vrot.lane.b32.xlu1 %v103_v27, %s3410_s0 }
 0x13e   :  { %v127_v46 = vpop.permute.xlu1 %126 }
 0x13f   :  { %2877 = vmatmul.mubr.msk.bf16.vlgmr.msra.gmra.mxu0 %vm168_vm1, %v127_v46  ;;  %v266_v46 = vunpack.c.l.bf16 %v263_v42 }
 0x140   :  { %379 = vmatpush1.bf16.msra.mxu0 %v3469_v31  ;;  %402 = vmatprep.mubr.bf16.mxu0 %v3409_v34 }
 0x141   :  { %380 = vmatprep.subr.bf16.mxu0 %v3471_v32 }
 0x142   :  { %v238_v16 = vpop.permute.xlu1 %237 }
 0x144   :  { %381 = vmatpush1.bf16.msra.mxu0 %v3476_v33 }
 0x145   :  { %382 = vmatprep.subr.bf16.mxu0 %v3480_v36 }
 0x148   :  { %383 = vmatpush1.bf16.msra.mxu0 %v3487_v38 }
 0x149   :  { %384 = vmatprep.subr.bf16.mxu0 %v3490_v39 }
 0x14c   :  { %385 = vmatpush1.bf16.msra.mxu0 %v3496_v40 }
 0x14d   :  { %568 = vmatprep.subr.bf16.mxu0 %v3467_v30 }
 0x1ff   :  { %v206_v51 = vpop.f32.mrf.mxu0 }
 0x200   :  { %v215_v52 = vadd.f32 %v206_v51, %v120_v48 }
 0x201   :  { %v208_v54 = vpop.f32.mrf.mxu0 }
 0x202   :  { %v219_v55 = vmul.f32 0.5, %v215_v52  ;;  %v216_v56 = vadd.f32 %v208_v54, %v121_v50  ;;  %v267_v50 = vunpack.c.h.bf16 %v263_v42 }
 0x203   :  { %v210_v58 = vpop.f32.mrf.mxu0 }
 0x204   :  { %2969 = vtanh.f32 %v219_v55  ;;  %v220_v59 = vmul.f32 %v216_v56, %v3456_v4  ;;  %v217_v60 = vadd.f32 %v210_v58, %v122_v53 }
 0x205   :  { %v212_v61 = vpop.f32.mrf.mxu0 }
 0x206   :  { %2971 = vtanh.f32 %v220_v59  ;;  %v221_v62 = vmul.f32 0.5, %v217_v60  ;;  %v218_v63 = vadd.f32 %v212_v61, %v123_v57 }
 0x208   :  { %2973 = vtanh.f32 %v221_v62  ;;  %v222_v0 = vmul.f32 %v218_v63, %v3456_v4 }
 0x20a   :  { %2975 = vtanh.f32 %v222_v0 }
 0x211   :  { %v2970_v1 = vpop.eup %2969 }
 0x212   :  { %v227_v2 = vmul.f32 0.5, %v2970_v1 }
 0x213   :  { %v2972_v3 = vpop.eup %2971 }
 0x214   :  { %v228_v5 = vmul.f32 %v2972_v3, %v3456_v4  ;;  %v231_v7 = vadd.f32 0.5, %v227_v2 }
 0x215   :  { %v2974_v6 = vpop.eup %2973 }
 0x216   :  { %v229_v8 = vmul.f32 0.5, %v2974_v6  ;;  %v232_v9 = vadd.f32 %v228_v5, %v3461_v17  ;;  %v243_v18 = vmul.f32 %v238_v16, %v231_v7 }
 0x217   :  { %v2976_v10 = vpop.eup %2975 }
 0x218   :  { %v245_v11 = vmul.f32 %v232_v9, %v231_v7  ;;  %v230_v12 = vmul.f32 %v2976_v10, %v3456_v4  ;;  %v233_v13 = vadd.f32 0.5, %v229_v8 }
 0x21a   :  { %249 = vrot.lane.b32.xlu1 %v245_v11, %s3410_s0  ;;  %v234_v14 = vadd.f32 %v230_v12, %v3461_v17  ;;  %v244_v22 = vmul.f32 %v240_v19, %v233_v13 }
 0x21c   :  { %v246_v15 = vmul.f32 %v234_v14, %v233_v13 }
 0x21e   :  { %251 = vrot.lane.b32.xlu0 %v246_v15, %s3410_s0 }
 0x28c   :  { %v250_v20 = vpop.permute.xlu1 %249 }
 0x28d   :  { %v255_v21 = vadd.f32 %v250_v20, %v243_v18 }
 0x28f   :  { %2977 = vtanh.f32 %v255_v21 }
 0x290   :  { %v252_v23 = vpop.permute.xlu0 %251 }
 0x291   :  { %v256_v24 = vadd.f32 %v252_v23, %v244_v22 }
 0x293   :  { %2979 = vtanh.f32 %v256_v24 }
 0x29c   :  { %v2978_v25 = vpop.eup %2977 }
 0x29d   :  { %v259_v27 = vmul.f32 %v2978_v25, %v232_v9 }
 0x2a0   :  { %v2980_v26 = vpop.eup %2979 }
 0x2a1   :  { %v260_v28 = vmul.f32 %v2980_v26, %v234_v14 }
 0x2a3   :  { %v268_v29 = vpack.c.bf16 %v260_v28, %v259_v27 }
 0x2a5   :  { %270 = vrot.lane.b32.xlu1 %v268_v29, %s3410_s0 }
 0x317   :  { %v271_v35 = vpop.permute.xlu1 %270 }
 0x318   :  { %2878 = vmatmul.mubr.msk.bf16.vlgmr.msra.gmra.mxu1 %vm168_vm1, %v271_v35 }
 0x319   :  { %474 = vmatpush1.bf16.msra.mxu1 %v3469_v31  ;;  %497 = vmatprep.mubr.bf16.mxu1 %v3409_v34 }
 0x31a   :  { %475 = vmatprep.subr.bf16.mxu1 %v3471_v32 }
 0x31d   :  { %476 = vmatpush1.bf16.msra.mxu1 %v3476_v33 }
 0x31e   :  { %477 = vmatprep.subr.bf16.mxu1 %v3480_v36 }
 0x321   :  { %478 = vmatpush1.bf16.msra.mxu1 %v3487_v38 }
 0x322   :  { %479 = vmatprep.subr.bf16.mxu1 %v3490_v39 }
 0x325   :  { %480 = vmatpush1.bf16.msra.mxu1 %v3496_v40 }
 0x326   :  { %663 = vmatprep.subr.bf16.mxu1 %v3467_v30 }
 0x3d8   :  { %v309_v44 = vpop.f32.mrf.mxu1 }
 0x3d9   :  { %v318_v45 = vadd.f32 %v309_v44, %v264_v41 }
 0x3da   :  { %v311_v47 = vpop.f32.mrf.mxu1 }
 0x3db   :  { %v322_v48 = vmul.f32 0.5, %v318_v45  ;;  %v319_v49 = vadd.f32 %v311_v47, %v265_v43 }
 0x3dc   :  { %v313_v51 = vpop.f32.mrf.mxu1 }
 0x3dd   :  { %2981 = vtanh.f32 %v322_v48  ;;  %v323_v52 = vmul.f32 %v319_v49, %v3456_v4  ;;  %v320_v53 = vadd.f32 %v313_v51, %v266_v46 }
 0x3de   :  { %v315_v54 = vpop.f32.mrf.mxu1 }
 0x3df   :  { %2983 = vtanh.f32 %v323_v52  ;;  %v324_v55 = vmul.f32 0.5, %v320_v53  ;;  %v321_v56 = vadd.f32 %v315_v54, %v267_v50 }
 0x3e1   :  { %2985 = vtanh.f32 %v324_v55  ;;  %v325_v57 = vmul.f32 %v321_v56, %v3456_v4 }
 0x3e3   :  { %2987 = vtanh.f32 %v325_v57 }
 0x3ea   :  { %v2982_v58 = vpop.eup %2981 }
 0x3eb   :  { %v330_v59 = vmul.f32 0.5, %v2982_v58 }
 0x3ec   :  { %v2984_v60 = vpop.eup %2983 }
 0x3ed   :  { %v331_v61 = vmul.f32 %v2984_v60, %v3456_v4  ;;  %v334_v63 = vadd.f32 0.5, %v330_v59 }
 0x3ee   :  { %v2986_v62 = vpop.eup %2985 }
 0x3ef   :  { %v332_v0 = vmul.f32 0.5, %v2986_v62  ;;  %v335_v1 = vadd.f32 %v331_v61, %v3461_v17  ;;  %v338_v9 = vmul.f32 %v334_v63, %v255_v21  ;;  %v357_v21 = vld [vmem:[#allocation2 + $0x30] sm:$0xff] }
 0x3f0   :  { %v2988_v2 = vpop.eup %2987  ;;  %v359_v23 = vunpack.c.l.bf16 %v357_v21  ;;  %v360_v25 = vunpack.c.h.bf16 %v357_v21 }
 0x3f1   :  { %v340_v3 = vmul.f32 %v335_v1, %v334_v63  ;;  %v333_v5 = vmul.f32 %v2988_v2, %v3456_v4  ;;  %v336_v6 = vadd.f32 0.5, %v332_v0 }
 0x3f3   :  { %344 = vrot.lane.b32.xlu0 %v340_v3, %s3410_s0  ;;  %v337_v7 = vadd.f32 %v333_v5, %v3461_v17  ;;  %v339_v12 = vmul.f32 %v336_v6, %v256_v24  ;;  %v358_v24 = vld [vmem:[#allocation2 + $0x38] sm:$0xff] }
 0x3f4   :  { %v361_v28 = vunpack.c.l.bf16 %v358_v24  ;;  %v362_v41 = vunpack.c.h.bf16 %v358_v24 }
 0x3f5   :  { %v341_v8 = vmul.f32 %v337_v7, %v336_v6 }
 0x3f7   :  { %346 = vrot.lane.b32.xlu1 %v341_v8, %s3410_s0 }
 0x465   :  { %v345_v10 = vpop.permute.xlu0 %344 }
 0x466   :  { %v350_v11 = vadd.f32 %v345_v10, %v338_v9 }
 0x468   :  { %2989 = vtanh.f32 %v350_v11 }
 0x469   :  { %v347_v13 = vpop.permute.xlu1 %346 }
 0x46a   :  { %v351_v14 = vadd.f32 %v347_v13, %v339_v12 }
 0x46c   :  { %2991 = vtanh.f32 %v351_v14 }
 0x475   :  { %v2990_v15 = vpop.eup %2989 }
 0x476   :  { %v354_v18 = vmul.f32 %v2990_v15, %v335_v1 }
 0x479   :  { %v2992_v16 = vpop.eup %2991 }
 0x47a   :  { %v355_v19 = vmul.f32 %v2992_v16, %v337_v7 }
 0x47c   :  { %v363_v20 = vpack.c.bf16 %v355_v19, %v354_v18 }
 0x47e   :  { %365 = vrot.lane.b32.xlu0 %v363_v20, %s3410_s0 }
 0x4f0   :  { %v366_v22 = vpop.permute.xlu0 %365 }
 0x4f1   :  { %2879 = vmatmul.mubr.msk.bf16.vlgmr.msra.gmra.mxu0 %vm168_vm1, %v366_v22 }
 0x4f2   :  { %569 = vmatpush1.bf16.msra.mxu0 %v3469_v31  ;;  %592 = vmatprep.mubr.bf16.mxu0 %v3409_v34 }
 0x4f3   :  { %570 = vmatprep.subr.bf16.mxu0 %v3471_v32 }
 0x4f6   :  { %571 = vmatpush1.bf16.msra.mxu0 %v3476_v33 }
 0x4f7   :  { %572 = vmatprep.subr.bf16.mxu0 %v3480_v36 }
 0x4fa   :  { %573 = vmatpush1.bf16.msra.mxu0 %v3487_v38 }
 0x4fb   :  { %574 = vmatprep.subr.bf16.mxu0 %v3490_v39 }
 0x4fe   :  { %575 = vmatpush1.bf16.msra.mxu0 %v3496_v40 }
 0x4ff   :  { %758 = vmatprep.subr.bf16.mxu0 %v3467_v30 }
 0x5b1   :  { %v404_v26 = vpop.f32.mrf.mxu0 }
 0x5b2   :  { %v413_v27 = vadd.f32 %v404_v26, %v359_v23 }
 0x5b3   :  { %v406_v29 = vpop.f32.mrf.mxu0 }
 0x5b4   :  { %v417_v35 = vmul.f32 0.5, %v413_v27  ;;  %v414_v37 = vadd.f32 %v406_v29, %v360_v25 }
 0x5b5   :  { %v408_v42 = vpop.f32.mrf.mxu0 }
 0x5b6   :  { %2993 = vtanh.f32 %v417_v35  ;;  %v418_v43 = vmul.f32 %v414_v37, %v3456_v4  ;;  %v415_v44 = vadd.f32 %v408_v42, %v361_v28 }
 0x5b7   :  { %v410_v45 = vpop.f32.mrf.mxu0 }
 0x5b8   :  { %2995 = vtanh.f32 %v418_v43  ;;  %v419_v46 = vmul.f32 0.5, %v415_v44  ;;  %v416_v47 = vadd.f32 %v410_v45, %v362_v41 }
 0x5ba   :  { %2997 = vtanh.f32 %v419_v46  ;;  %v420_v48 = vmul.f32 %v416_v47, %v3456_v4 }
 0x5bc   :  { %2999 = vtanh.f32 %v420_v48 }
 0x5c3   :  { %v2994_v49 = vpop.eup %2993 }
 0x5c4   :  { %v425_v50 = vmul.f32 0.5, %v2994_v49 }
 0x5c5   :  { %v2996_v51 = vpop.eup %2995 }
 0x5c6   :  { %v426_v52 = vmul.f32 %v2996_v51, %v3456_v4  ;;  %v429_v54 = vadd.f32 0.5, %v425_v50 }
 0x5c7   :  { %v2998_v53 = vpop.eup %2997 }
 0x5c8   :  { %v427_v55 = vmul.f32 0.5, %v2998_v53  ;;  %v430_v56 = vadd.f32 %v426_v52, %v3461_v17  ;;  %v433_v63 = vmul.f32 %v429_v54, %v350_v11  ;;  %v452_v11 = vld [vmem:[#allocation2 + $0x40] sm:$0xff] }
 0x5c9   :  { %v3000_v57 = vpop.eup %2999  ;;  %v454_v13 = vunpack.c.l.bf16 %v452_v11  ;;  %v455_v15 = vunpack.c.h.bf16 %v452_v11 }
 0x5ca   :  { %v435_v58 = vmul.f32 %v430_v56, %v429_v54  ;;  %v428_v59 = vmul.f32 %v3000_v57, %v3456_v4  ;;  %v431_v60 = vadd.f32 0.5, %v427_v55 }
 0x5cc   :  { %439 = vrot.lane.b32.xlu1 %v435_v58, %s3410_s0  ;;  %v432_v61 = vadd.f32 %v428_v59, %v3461_v17  ;;  %v434_v2 = vmul.f32 %v431_v60, %v351_v14  ;;  %v453_v14 = vld [vmem:[#allocation2 + $0x48] sm:$0xff] }
 0x5cd   :  { %v456_v19 = vunpack.c.l.bf16 %v453_v14  ;;  %v457_v23 = vunpack.c.h.bf16 %v453_v14 }
 0x5ce   :  { %v436_v62 = vmul.f32 %v432_v61, %v431_v60 }
 0x5d0   :  { %441 = vrot.lane.b32.xlu0 %v436_v62, %s3410_s0 }
 0x63e   :  { %v440_v0 = vpop.permute.xlu1 %439 }
 0x63f   :  { %v445_v1 = vadd.f32 %v440_v0, %v433_v63 }
 0x641   :  { %3001 = vtanh.f32 %v445_v1 }
 0x642   :  { %v442_v3 = vpop.permute.xlu0 %441 }
 0x643   :  { %v446_v5 = vadd.f32 %v442_v3, %v434_v2 }
 0x645   :  { %3003 = vtanh.f32 %v446_v5 }
 0x64e   :  { %v3002_v6 = vpop.eup %3001 }
 0x64f   :  { %v449_v8 = vmul.f32 %v3002_v6, %v430_v56 }
 0x652   :  { %v3004_v7 = vpop.eup %3003 }
 0x653   :  { %v450_v9 = vmul.f32 %v3004_v7, %v432_v61 }
 0x655   :  { %v458_v10 = vpack.c.bf16 %v450_v9, %v449_v8 }
 0x657   :  { %460 = vrot.lane.b32.xlu1 %v458_v10, %s3410_s0 }
 0x6c9   :  { %v461_v12 = vpop.permute.xlu1 %460 }
 0x6ca   :  { %2880 = vmatmul.mubr.msk.bf16.vlgmr.msra.gmra.mxu1 %vm168_vm1, %v461_v12 }
 0x6cb   :  { %664 = vmatpush1.bf16.msra.mxu1 %v3469_v31  ;;  %687 = vmatprep.mubr.bf16.mxu1 %v3409_v34 }
 0x6cc   :  { %665 = vmatprep.subr.bf16.mxu1 %v3471_v32 }
 0x6cf   :  { %666 = vmatpush1.bf16.msra.mxu1 %v3476_v33 }
 0x6d0   :  { %667 = vmatprep.subr.bf16.mxu1 %v3480_v36 }
 0x6d3   :  { %668 = vmatpush1.bf16.msra.mxu1 %v3487_v38 }
 0x6d4   :  { %669 = vmatprep.subr.bf16.mxu1 %v3490_v39 }
 0x6d7   :  { %670 = vmatpush1.bf16.msra.mxu1 %v3496_v40 }
 0x6d8   :  { %853 = vmatprep.subr.bf16.mxu1 %v3467_v30 }
 0x78a   :  { %v499_v16 = vpop.f32.mrf.mxu1 }
 0x78b   :  { %v508_v18 = vadd.f32 %v499_v16, %v454_v13 }
 0x78c   :  { %v501_v20 = vpop.f32.mrf.mxu1 }
 0x78d   :  { %v512_v22 = vmul.f32 0.5, %v508_v18  ;;  %v509_v21 = vadd.f32 %v501_v20, %v455_v15 }
 0x78e   :  { %v503_v24 = vpop.f32.mrf.mxu1 }
 0x78f   :  { %3005 = vtanh.f32 %v512_v22  ;;  %v513_v25 = vmul.f32 %v509_v21, %v3456_v4  ;;  %v510_v26 = vadd.f32 %v503_v24, %v456_v19 }
 0x790   :  { %v505_v27 = vpop.f32.mrf.mxu1 }
 0x791   :  { %3007 = vtanh.f32 %v513_v25  ;;  %v514_v28 = vmul.f32 0.5, %v510_v26  ;;  %v511_v29 = vadd.f32 %v505_v27, %v457_v23 }
 0x793   :  { %3009 = vtanh.f32 %v514_v28  ;;  %v515_v35 = vmul.f32 %v511_v29, %v3456_v4 }
 0x795   :  { %3011 = vtanh.f32 %v515_v35 }
 0x79c   :  { %v3006_v37 = vpop.eup %3005 }
 0x79d   :  { %v520_v41 = vmul.f32 0.5, %v3006_v37 }
 0x79e   :  { %v3008_v42 = vpop.eup %3007 }
 0x79f   :  { %v521_v43 = vmul.f32 %v3008_v42, %v3456_v4  ;;  %v524_v45 = vadd.f32 0.5, %v520_v41 }
 0x7a0   :  { %v3010_v44 = vpop.eup %3009 }
 0x7a1   :  { %v522_v46 = vmul.f32 0.5, %v3010_v44  ;;  %v525_v47 = vadd.f32 %v521_v43, %v3461_v17  ;;  %v528_v54 = vmul.f32 %v524_v45, %v445_v1  ;;  %v547_v1 = vld [vmem:[#allocation2 + $0x50] sm:$0xff] }
 0x7a2   :  { %v3012_v48 = vpop.eup %3011  ;;  %v549_v3 = vunpack.c.l.bf16 %v547_v1  ;;  %v550_v6 = vunpack.c.h.bf16 %v547_v1 }
 0x7a3   :  { %v530_v49 = vmul.f32 %v525_v47, %v524_v45  ;;  %v523_v50 = vmul.f32 %v3012_v48, %v3456_v4  ;;  %v526_v51 = vadd.f32 0.5, %v522_v46 }
 0x7a5   :  { %534 = vrot.lane.b32.xlu0 %v530_v49, %s3410_s0  ;;  %v527_v52 = vadd.f32 %v523_v50, %v3461_v17  ;;  %v529_v57 = vmul.f32 %v526_v51, %v446_v5  ;;  %v548_v5 = vld [vmem:[#allocation2 + $0x58] sm:$0xff] }
 0x7a6   :  { %v551_v9 = vunpack.c.l.bf16 %v548_v5  ;;  %v552_v13 = vunpack.c.h.bf16 %v548_v5 }
 0x7a7   :  { %v531_v53 = vmul.f32 %v527_v52, %v526_v51 }
 0x7a9   :  { %536 = vrot.lane.b32.xlu1 %v531_v53, %s3410_s0 }
 0x817   :  { %v535_v55 = vpop.permute.xlu0 %534 }
 0x818   :  { %v540_v56 = vadd.f32 %v535_v55, %v528_v54 }
 0x81a   :  { %3013 = vtanh.f32 %v540_v56 }
 0x81b   :  { %v537_v58 = vpop.permute.xlu1 %536 }
 0x81c   :  { %v541_v59 = vadd.f32 %v537_v58, %v529_v57 }
 0x81e   :  { %3015 = vtanh.f32 %v541_v59 }
 0x827   :  { %v3014_v60 = vpop.eup %3013 }
 0x828   :  { %v544_v62 = vmul.f32 %v3014_v60, %v525_v47 }
 0x82b   :  { %v3016_v61 = vpop.eup %3015 }
 0x82c   :  { %v545_v63 = vmul.f32 %v3016_v61, %v527_v52 }
 0x82e   :  { %v553_v0 = vpack.c.bf16 %v545_v63, %v544_v62 }
 0x830   :  { %555 = vrot.lane.b32.xlu0 %v553_v0, %s3410_s0 }
 0x8a2   :  { %v556_v2 = vpop.permute.xlu0 %555 }
 0x8a3   :  { %2881 = vmatmul.mubr.msk.bf16.vlgmr.msra.gmra.mxu0 %vm168_vm1, %v556_v2 }
 0x8a4   :  { %759 = vmatpush1.bf16.msra.mxu0 %v3469_v31  ;;  %782 = vmatprep.mubr.bf16.mxu0 %v3409_v34 }
 0x8a5   :  { %760 = vmatprep.subr.bf16.mxu0 %v3471_v32 }
 0x8a8   :  { %761 = vmatpush1.bf16.msra.mxu0 %v3476_v33 }
 0x8a9   :  { %762 = vmatprep.subr.bf16.mxu0 %v3480_v36 }
 0x8ac   :  { %763 = vmatpush1.bf16.msra.mxu0 %v3487_v38 }
 0x8ad   :  { %764 = vmatprep.subr.bf16.mxu0 %v3490_v39 }
 0x8b0   :  { %765 = vmatpush1.bf16.msra.mxu0 %v3496_v40 }
 0x8b1   :  { %948 = vmatprep.subr.bf16.mxu0 %v3467_v30 }
 0x963   :  { %v594_v7 = vpop.f32.mrf.mxu0 }
 0x964   :  { %v603_v8 = vadd.f32 %v594_v7, %v549_v3 }
 0x965   :  { %v596_v10 = vpop.f32.mrf.mxu0 }
 0x966   :  { %v607_v12 = vmul.f32 0.5, %v603_v8  ;;  %v604_v11 = vadd.f32 %v596_v10, %v550_v6 }
 0x967   :  { %v598_v14 = vpop.f32.mrf.mxu0 }
 0x968   :  { %3017 = vtanh.f32 %v607_v12  ;;  %v608_v15 = vmul.f32 %v604_v11, %v3456_v4  ;;  %v605_v16 = vadd.f32 %v598_v14, %v551_v9 }
 0x969   :  { %v600_v18 = vpop.f32.mrf.mxu0 }
 0x96a   :  { %3019 = vtanh.f32 %v608_v15  ;;  %v609_v19 = vmul.f32 0.5, %v605_v16  ;;  %v606_v20 = vadd.f32 %v600_v18, %v552_v13 }
 0x96c   :  { %3021 = vtanh.f32 %v609_v19  ;;  %v610_v22 = vmul.f32 %v606_v20, %v3456_v4 }
 0x96e   :  { %3023 = vtanh.f32 %v610_v22 }
 0x975   :  { %v3018_v21 = vpop.eup %3017 }
 0x976   :  { %v615_v23 = vmul.f32 0.5, %v3018_v21 }
 0x977   :  { %v3020_v24 = vpop.eup %3019 }
 0x978   :  { %v616_v25 = vmul.f32 %v3020_v24, %v3456_v4  ;;  %v619_v27 = vadd.f32 0.5, %v615_v23 }
 0x979   :  { %v3022_v26 = vpop.eup %3021 }
 0x97a   :  { %v617_v28 = vmul.f32 0.5, %v3022_v26  ;;  %v620_v29 = vadd.f32 %v616_v25, %v3461_v17  ;;  %v623_v45 = vmul.f32 %v619_v27, %v540_v56  ;;  %v642_v56 = vld [vmem:[#allocation2 + $0x60] sm:$0xff] }
 0x97b   :  { %v3024_v35 = vpop.eup %3023  ;;  %v644_v58 = vunpack.c.l.bf16 %v642_v56  ;;  %v645_v60 = vunpack.c.h.bf16 %v642_v56 }
 0x97c   :  { %v625_v37 = vmul.f32 %v620_v29, %v619_v27  ;;  %v618_v41 = vmul.f32 %v3024_v35, %v3456_v4  ;;  %v621_v42 = vadd.f32 0.5, %v617_v28 }
 0x97e   :  { %629 = vrot.lane.b32.xlu1 %v625_v37, %s3410_s0  ;;  %v622_v43 = vadd.f32 %v618_v41, %v3461_v17  ;;  %v624_v48 = vmul.f32 %v621_v42, %v541_v59  ;;  %v643_v59 = vld [vmem:[#allocation2 + $0x68] sm:$0xff] }
 0x97f   :  { %v646_v63 = vunpack.c.l.bf16 %v643_v59  ;;  %v647_v3 = vunpack.c.h.bf16 %v643_v59 }
 0x980   :  { %v626_v44 = vmul.f32 %v622_v43, %v621_v42 }
 0x982   :  { %631 = vrot.lane.b32.xlu0 %v626_v44, %s3410_s0 }
 0x9f0   :  { %v630_v46 = vpop.permute.xlu1 %629 }
 0x9f1   :  { %v635_v47 = vadd.f32 %v630_v46, %v623_v45 }
 0x9f3   :  { %3025 = vtanh.f32 %v635_v47 }
 0x9f4   :  { %v632_v49 = vpop.permute.xlu0 %631 }
 0x9f5   :  { %v636_v50 = vadd.f32 %v632_v49, %v624_v48 }
 0x9f7   :  { %3027 = vtanh.f32 %v636_v50 }
 0xa00   :  { %v3026_v51 = vpop.eup %3025 }
 0xa01   :  { %v639_v53 = vmul.f32 %v3026_v51, %v620_v29 }
 0xa04   :  { %v3028_v52 = vpop.eup %3027 }
 0xa05   :  { %v640_v54 = vmul.f32 %v3028_v52, %v622_v43 }
 0xa07   :  { %v648_v55 = vpack.c.bf16 %v640_v54, %v639_v53 }
 0xa09   :  { %650 = vrot.lane.b32.xlu1 %v648_v55, %s3410_s0 }
 0xa7b   :  { %v651_v57 = vpop.permute.xlu1 %650 }
 0xa7c   :  { %2882 = vmatmul.mubr.msk.bf16.vlgmr.msra.gmra.mxu1 %vm168_vm1, %v651_v57 }
 0xa7d   :  { %854 = vmatpush1.bf16.msra.mxu1 %v3469_v31  ;;  %877 = vmatprep.mubr.bf16.mxu1 %v3409_v34 }
 0xa7e   :  { %855 = vmatprep.subr.bf16.mxu1 %v3471_v32 }
 0xa81   :  { %856 = vmatpush1.bf16.msra.mxu1 %v3476_v33 }
 0xa82   :  { %857 = vmatprep.subr.bf16.mxu1 %v3480_v36 }
 0xa85   :  { %858 = vmatpush1.bf16.msra.mxu1 %v3487_v38 }
 0xa86   :  { %859 = vmatprep.subr.bf16.mxu1 %v3490_v39 }
 0xa89   :  { %860 = vmatpush1.bf16.msra.mxu1 %v3496_v40 }
 0xa8a   :  { %1043 = vmatprep.subr.bf16.mxu1 %v3467_v30 }
 0xb3c   :  { %v689_v61 = vpop.f32.mrf.mxu1 }
 0xb3d   :  { %v698_v62 = vadd.f32 %v689_v61, %v644_v58 }
 0xb3e   :  { %v691_v0 = vpop.f32.mrf.mxu1 }
 0xb3f   :  { %v702_v2 = vmul.f32 0.5, %v698_v62  ;;  %v699_v1 = vadd.f32 %v691_v0, %v645_v60 }
 0xb40   :  { %v693_v5 = vpop.f32.mrf.mxu1 }
 0xb41   :  { %3029 = vtanh.f32 %v702_v2  ;;  %v703_v6 = vmul.f32 %v699_v1, %v3456_v4  ;;  %v700_v7 = vadd.f32 %v693_v5, %v646_v63 }
 0xb42   :  { %v695_v8 = vpop.f32.mrf.mxu1 }
 0xb43   :  { %3031 = vtanh.f32 %v703_v6  ;;  %v704_v9 = vmul.f32 0.5, %v700_v7  ;;  %v701_v10 = vadd.f32 %v695_v8, %v647_v3 }
 0xb45   :  { %3033 = vtanh.f32 %v704_v9  ;;  %v705_v12 = vmul.f32 %v701_v10, %v3456_v4 }
 0xb47   :  { %3035 = vtanh.f32 %v705_v12 }
 0xb4e   :  { %v3030_v11 = vpop.eup %3029 }
 0xb4f   :  { %v710_v13 = vmul.f32 0.5, %v3030_v11 }
 0xb50   :  { %v3032_v14 = vpop.eup %3031 }
 0xb51   :  { %v711_v15 = vmul.f32 %v3032_v14, %v3456_v4  ;;  %v714_v18 = vadd.f32 0.5, %v710_v13 }
 0xb52   :  { %v3034_v16 = vpop.eup %3033 }
 0xb53   :  { %v712_v19 = vmul.f32 0.5, %v3034_v16  ;;  %v715_v20 = vadd.f32 %v711_v15, %v3461_v17  ;;  %v718_v27 = vmul.f32 %v714_v18, %v635_v47  ;;  %v737_v47 = vld [vmem:[#allocation2 + $0x70] sm:$0xff] }
 0xb54   :  { %v3036_v22 = vpop.eup %3035  ;;  %v739_v49 = vunpack.c.l.bf16 %v737_v47  ;;  %v740_v51 = vunpack.c.h.bf16 %v737_v47 }
 0xb55   :  { %v720_v21 = vmul.f32 %v715_v20, %v714_v18  ;;  %v713_v23 = vmul.f32 %v3036_v22, %v3456_v4  ;;  %v716_v24 = vadd.f32 0.5, %v712_v19 }
 0xb57   :  { %724 = vrot.lane.b32.xlu0 %v720_v21, %s3410_s0  ;;  %v717_v25 = vadd.f32 %v713_v23, %v3461_v17  ;;  %v719_v35 = vmul.f32 %v716_v24, %v636_v50  ;;  %v738_v50 = vld [vmem:[#allocation2 + $0x78] sm:$0xff] }
 0xb58   :  { %v741_v54 = vunpack.c.l.bf16 %v738_v50  ;;  %v742_v58 = vunpack.c.h.bf16 %v738_v50 }
 0xb59   :  { %v721_v26 = vmul.f32 %v717_v25, %v716_v24 }
 0xb5b   :  { %726 = vrot.lane.b32.xlu1 %v721_v26, %s3410_s0 }
 0xbc9   :  { %v725_v28 = vpop.permute.xlu0 %724 }
 0xbca   :  { %v730_v29 = vadd.f32 %v725_v28, %v718_v27 }
 0xbcc   :  { %3037 = vtanh.f32 %v730_v29 }
 0xbcd   :  { %v727_v37 = vpop.permute.xlu1 %726 }
 0xbce   :  { %v731_v41 = vadd.f32 %v727_v37, %v719_v35 }
 0xbd0   :  { %3039 = vtanh.f32 %v731_v41 }
 0xbd9   :  { %v3038_v42 = vpop.eup %3037 }
 0xbda   :  { %v734_v44 = vmul.f32 %v3038_v42, %v715_v20 }
 0xbdd   :  { %v3040_v43 = vpop.eup %3039 }
 0xbde   :  { %v735_v45 = vmul.f32 %v3040_v43, %v717_v25 }
 0xbe0   :  { %v743_v46 = vpack.c.bf16 %v735_v45, %v734_v44 }
 0xbe2   :  { %745 = vrot.lane.b32.xlu0 %v743_v46, %s3410_s0 }
 0xc54   :  { %v746_v48 = vpop.permute.xlu0 %745 }
 0xc55   :  { %2883 = vmatmul.mubr.msk.bf16.vlgmr.msra.gmra.mxu0 %vm168_vm1, %v746_v48 }
 0xc56   :  { %949 = vmatpush1.bf16.msra.mxu0 %v3469_v31  ;;  %972 = vmatprep.mubr.bf16.mxu0 %v3409_v34 }
 0xc57   :  { %950 = vmatprep.subr.bf16.mxu0 %v3471_v32 }
 0xc5a   :  { %951 = vmatpush1.bf16.msra.mxu0 %v3476_v33 }
 0xc5b   :  { %952 = vmatprep.subr.bf16.mxu0 %v3480_v36 }
 0xc5e   :  { %953 = vmatpush1.bf16.msra.mxu0 %v3487_v38 }
 0xc5f   :  { %954 = vmatprep.subr.bf16.mxu0 %v3490_v39 }
 0xc62   :  { %955 = vmatpush1.bf16.msra.mxu0 %v3496_v40 }
 0xc63   :  { %1138 = vmatprep.subr.bf16.mxu0 %v3467_v30 }
 0xd15   :  { %v784_v52 = vpop.f32.mrf.mxu0 }
 0xd16   :  { %v793_v53 = vadd.f32 %v784_v52, %v739_v49 }
 0xd17   :  { %v786_v55 = vpop.f32.mrf.mxu0 }
 0xd18   :  { %v797_v57 = vmul.f32 0.5, %v793_v53  ;;  %v794_v56 = vadd.f32 %v786_v55, %v740_v51 }
 0xd19   :  { %v788_v59 = vpop.f32.mrf.mxu0 }
 0xd1a   :  { %3041 = vtanh.f32 %v797_v57  ;;  %v798_v60 = vmul.f32 %v794_v56, %v3456_v4  ;;  %v795_v61 = vadd.f32 %v788_v59, %v741_v54 }
 0xd1b   :  { %v790_v62 = vpop.f32.mrf.mxu0 }
 0xd1c   :  { %3043 = vtanh.f32 %v798_v60  ;;  %v799_v63 = vmul.f32 0.5, %v795_v61  ;;  %v796_v0 = vadd.f32 %v790_v62, %v742_v58 }
 0xd1e   :  { %3045 = vtanh.f32 %v799_v63  ;;  %v800_v2 = vmul.f32 %v796_v0, %v3456_v4 }
 0xd20   :  { %3047 = vtanh.f32 %v800_v2 }
 0xd27   :  { %v3042_v1 = vpop.eup %3041 }
 0xd28   :  { %v805_v3 = vmul.f32 0.5, %v3042_v1 }
 0xd29   :  { %v3044_v5 = vpop.eup %3043 }
 0xd2a   :  { %v806_v6 = vmul.f32 %v3044_v5, %v3456_v4  ;;  %v809_v8 = vadd.f32 0.5, %v805_v3 }
 0xd2b   :  { %v3046_v7 = vpop.eup %3045 }
 0xd2c   :  { %v807_v9 = vmul.f32 0.5, %v3046_v7  ;;  %v810_v10 = vadd.f32 %v806_v6, %v3461_v17  ;;  %v813_v18 = vmul.f32 %v809_v8, %v730_v29  ;;  %v832_v29 = vld [vmem:[#allocation2 + $0x80] sm:$0xff] }
 0xd2d   :  { %v3048_v12 = vpop.eup %3047  ;;  %v834_v37 = vunpack.c.l.bf16 %v832_v29 }
 0xd2e   :  { %v815_v11 = vmul.f32 %v810_v10, %v809_v8  ;;  %v808_v13 = vmul.f32 %v3048_v12, %v3456_v4  ;;  %v811_v14 = vadd.f32 0.5, %v807_v9 }
 0xd30   :  { %819 = vrot.lane.b32.xlu1 %v815_v11, %s3410_s0  ;;  %v812_v15 = vadd.f32 %v808_v13, %v3461_v17  ;;  %v814_v22 = vmul.f32 %v811_v14, %v731_v41  ;;  %v833_v41 = vld [vmem:[#allocation2 + $0x88] sm:$0xff]  ;;  %v3667_v11 = vld [vmem:[#allocation5 + $0x30] ss:$8 sps:$4 sm:$0xff]  }
 0xd31   :  { %v836_v44 = vunpack.c.l.bf16 %v833_v41  ;;  %v837_v46 = vunpack.c.h.bf16 %v833_v41  ;;  %v3671_v13 = vld [vmem:[#allocation5 + $0x24] ss:$8 sps:$4 sm:$0xff]  }
 0xd32   :  { %v816_v16 = vmul.f32 %v812_v15, %v811_v14  ;;  %v3674_v14 = vld [vmem:[#allocation5 + $0x20] ss:$8 sps:$4 sm:$0xff]  }
 0xd34   :  { %821 = vrot.lane.b32.xlu0 %v816_v16, %s3410_s0  ;;  %v3680_v16 = vld [vmem:[#allocation5 + $0x10] ss:$8 sps:$4 sm:$0xff]  }
 0xda2   :  { %v820_v19 = vpop.permute.xlu1 %819 }
 0xda3   :  { %v825_v20 = vadd.f32 %v820_v19, %v813_v18  ;;  %v3683_v18 = vld [vmem:[#allocation5 + $0x4] ss:$8 sps:$4 sm:$0xff]   ;;  %v3686_v19 = vld [vmem:[#allocation5] ss:$8 sps:$4 sm:$0xff]  }
 0xda5   :  { %3049 = vtanh.f32 %v825_v20 }
 0xda6   :  { %v822_v21 = vpop.permute.xlu0 %821 }
 0xda7   :  { %v826_v23 = vadd.f32 %v822_v21, %v814_v22  ;;  %v927_v22 = vld [vmem:[#allocation2 + $0x90] sm:$0xff] }
 0xda8   :  { %v929_v21 = vunpack.c.l.bf16 %v927_v22 }
 0xda9   :  { %3051 = vtanh.f32 %v826_v23 }
 0xdb2   :  { %v3050_v24 = vpop.eup %3049 }
 0xdb3   :  { %v829_v26 = vmul.f32 %v3050_v24, %v810_v10  ;;  %v930_v24 = vunpack.c.h.bf16 %v927_v22 }
 0xdb6   :  { %v3052_v25 = vpop.eup %3051 }
 0xdb7   :  { %v830_v27 = vmul.f32 %v3052_v25, %v812_v15  ;;  %v3677_v15 = vld [vmem:[#allocation5 + $0x14] ss:$8 sps:$4 sm:$0xff]  }
 0xdb9   :  { %v838_v28 = vpack.c.bf16 %v830_v27, %v829_v26 }
 0xdbb   :  { %840 = vrot.lane.b32.xlu1 %v838_v28, %s3410_s0 }
 0xe2d   :  { %v841_v35 = vpop.permute.xlu1 %840 }
 0xe2e   :  { %2884 = vmatmul.mubr.msk.bf16.vlgmr.msra.gmra.mxu1 %vm168_vm1, %v841_v35 }
 0xe2f   :  { %1044 = vmatpush1.bf16.msra.mxu1 %v3469_v31  ;;  %1067 = vmatprep.mubr.bf16.mxu1 %v3409_v34  ;;  %v835_v31 = vunpack.c.h.bf16 %v832_v29 }
 0xe30   :  { %1045 = vmatprep.subr.bf16.mxu1 %v3471_v32 }
 0xe33   :  { %1046 = vmatpush1.bf16.msra.mxu1 %v3476_v33 }
 0xe34   :  { %1047 = vmatprep.subr.bf16.mxu1 %v3480_v36 }
 0xe37   :  { %1048 = vmatpush1.bf16.msra.mxu1 %v3487_v38 }
 0xe38   :  { %1049 = vmatprep.subr.bf16.mxu1 %v3490_v39 }
 0xe3b   :  { %1050 = vmatpush1.bf16.msra.mxu1 %v3496_v40 }
 0xe3c   :  { %1233 = vmatprep.subr.bf16.mxu1 %v3467_v30 }
 0xeee   :  { %v879_v42 = vpop.f32.mrf.mxu1 }
 0xeef   :  { %v888_v43 = vadd.f32 %v879_v42, %v834_v37 }
 0xef0   :  { %v881_v32 = vpop.f32.mrf.mxu1 }
 0xef1   :  { %v892_v45 = vmul.f32 0.5, %v888_v43  ;;  %v889_v33 = vadd.f32 %v881_v32, %v835_v31 }
 0xef2   :  { %v883_v36 = vpop.f32.mrf.mxu1 }
 0xef3   :  { %3053 = vtanh.f32 %v892_v45  ;;  %v893_v38 = vmul.f32 %v889_v33, %v3456_v4  ;;  %v890_v39 = vadd.f32 %v883_v36, %v836_v44 }
 0xef4   :  { %v885_v48 = vpop.f32.mrf.mxu1 }
 0xef5   :  { %3055 = vtanh.f32 %v893_v38  ;;  %v894_v40 = vmul.f32 0.5, %v890_v39  ;;  %v891_v30 = vadd.f32 %v885_v48, %v837_v46 }
 0xef7   :  { %3057 = vtanh.f32 %v894_v40  ;;  %v895_v47 = vmul.f32 %v891_v30, %v3456_v4 }
 0xef9   :  { %3059 = vtanh.f32 %v895_v47 }
 0xf00   :  { %v3054_v49 = vpop.eup %3053 }
 0xf01   :  { %v900_v50 = vmul.f32 0.5, %v3054_v49 }
 0xf02   :  { %v3056_v51 = vpop.eup %3055 }
 0xf03   :  { %v901_v52 = vmul.f32 %v3056_v51, %v3456_v4  ;;  %v904_v54 = vadd.f32 0.5, %v900_v50 }
 0xf04   :  { %v3058_v53 = vpop.eup %3057 }
 0xf05   :  { %v902_v55 = vmul.f32 0.5, %v3058_v53  ;;  %v905_v57 = vadd.f32 %v901_v52, %v3461_v17  ;;  %v908_v63 = vmul.f32 %v904_v54, %v825_v20  ;;  %v3689_v20 = vld [vmem:[#allocation5 + $0x34] ss:$8 sps:$4 sm:$0xff]  }
 0xf06   :  { %v3060_v56 = vpop.eup %3059 }
 0xf07   :  { %v910_v58 = vmul.f32 %v905_v57, %v904_v54  ;;  %v903_v59 = vmul.f32 %v3060_v56, %v3456_v4  ;;  %v906_v60 = vadd.f32 0.5, %v902_v55 }
 0xf09   :  { %914 = vrot.lane.b32.xlu0 %v910_v58, %s3410_s0  ;;  %v907_v61 = vadd.f32 %v903_v59, %v3461_v17  ;;  %v909_v1 = vmul.f32 %v906_v60, %v826_v23  ;;  %v928_v23 = vld [vmem:[#allocation2 + $0x98] sm:$0xff] }
 0xf0a   :  { %v931_v27 = vunpack.c.l.bf16 %v928_v23  ;;  %v932_v37 = vunpack.c.h.bf16 %v928_v23 }
 0xf0b   :  { %v911_v62 = vmul.f32 %v907_v61, %v906_v60 }
 0xf0d   :  { %916 = vrot.lane.b32.xlu1 %v911_v62, %s3410_s0 }
 0xf7b   :  { %v915_v0 = vpop.permute.xlu0 %914 }
 0xf7c   :  { %v3659_v2 = vadd.f32 %v915_v0, %v908_v63 }
 0xf7e   :  { %3061 = vtanh.f32 %v3659_v2 }
 0xf7f   :  { %v917_v3 = vpop.permute.xlu1 %916 }
 0xf80   :  { %v3662_v5 = vadd.f32 %v917_v3, %v909_v1 }
 0xf82   :  { %3063 = vtanh.f32 %v3662_v5 }
 0xf8b   :  { %v3062_v6 = vpop.eup %3061 }
 0xf8c   :  { %v924_v8 = vmul.f32 %v3062_v6, %v905_v57 }
 0xf8f   :  { %v3064_v7 = vpop.eup %3063 }
 0xf90   :  { %v925_v9 = vmul.f32 %v3064_v7, %v907_v61 }
 0xf92   :  { %v933_v10 = vpack.c.bf16 %v925_v9, %v924_v8 }
 0xf94   :  { %935 = vrot.lane.b32.xlu0 %v933_v10, %s3410_s0 }
0x1006   :  { %v936_v12 = vpop.permute.xlu0 %935 }
0x1007   :  { %2885 = vmatmul.mubr.msk.bf16.vlgmr.msra.gmra.mxu0 %vm168_vm1, %v936_v12 }
0x1008   :  { %1139 = vmatpush1.bf16.msra.mxu0 %v3667_v11  ;;  %1162 = vmatprep.mubr.bf16.mxu0 %v3409_v34 }
0x1009   :  { %1140 = vmatprep.subr.bf16.mxu0 %v3671_v13 }
0x100c   :  { %1141 = vmatpush1.bf16.msra.mxu0 %v3674_v14 }
0x100d   :  { %1142 = vmatprep.subr.bf16.mxu0 %v3677_v15 }
0x1010   :  { %1143 = vmatpush1.bf16.msra.mxu0 %v3680_v16 }
0x1011   :  { %1144 = vmatprep.subr.bf16.mxu0 %v3683_v18 }
0x1014   :  { %1145 = vmatpush1.bf16.msra.mxu0 %v3686_v19 }
0x1015   :  { %1328 = vmatprep.subr.bf16.mxu0 %v3689_v20 }
0x10c7   :  { %v974_v25 = vpop.f32.mrf.mxu0 }
0x10c8   :  { %v983_v26 = vadd.f32 %v974_v25, %v929_v21 }
0x10c9   :  { %v976_v28 = vpop.f32.mrf.mxu0 }
0x10ca   :  { %v987_v35 = vmul.f32 0.5, %v983_v26  ;;  %v984_v29 = vadd.f32 %v976_v28, %v930_v24 }
0x10cb   :  { %v978_v41 = vpop.f32.mrf.mxu0 }
0x10cc   :  { %3065 = vtanh.f32 %v987_v35  ;;  %v988_v31 = vmul.f32 %v984_v29, %v3456_v4  ;;  %v985_v42 = vadd.f32 %v978_v41, %v931_v27 }
0x10cd   :  { %v980_v43 = vpop.f32.mrf.mxu0 }
0x10ce   :  { %3067 = vtanh.f32 %v988_v31  ;;  %v989_v44 = vmul.f32 0.5, %v985_v42  ;;  %v986_v32 = vadd.f32 %v980_v43, %v932_v37 }
0x10d0   :  { %3069 = vtanh.f32 %v989_v44  ;;  %v990_v45 = vmul.f32 %v986_v32, %v3456_v4 }
0x10d2   :  { %3071 = vtanh.f32 %v990_v45 }
0x10d9   :  { %v3066_v33 = vpop.eup %3065 }
0x10da   :  { %v995_v46 = vmul.f32 0.5, %v3066_v33 }
0x10db   :  { %v3068_v36 = vpop.eup %3067 }
0x10dc   :  { %v996_v38 = vmul.f32 %v3068_v36, %v3456_v4  ;;  %v999_v48 = vadd.f32 0.5, %v995_v46 }
0x10dd   :  { %v3070_v39 = vpop.eup %3069 }
0x10de   :  { %v997_v40 = vmul.f32 0.5, %v3070_v39  ;;  %v1000_v30 = vadd.f32 %v996_v38, %v3461_v17  ;;  %v1003_v54 = vmul.f32 %v999_v48, %v3659_v2  ;;  %v1022_v2 = vld [vmem:[#allocation2 + $0xa0] sm:$0xff] }
0x10df   :  { %v3072_v47 = vpop.eup %3071  ;;  %v1024_v3 = vunpack.c.l.bf16 %v1022_v2  ;;  %v1025_v6 = vunpack.c.h.bf16 %v1022_v2 }
0x10e0   :  { %v1005_v49 = vmul.f32 %v1000_v30, %v999_v48  ;;  %v998_v50 = vmul.f32 %v3072_v47, %v3456_v4  ;;  %v1001_v51 = vadd.f32 0.5, %v997_v40 }
0x10e2   :  { %1009 = vrot.lane.b32.xlu1 %v1005_v49, %s3410_s0  ;;  %v1002_v52 = vadd.f32 %v998_v50, %v3461_v17  ;;  %v1004_v56 = vmul.f32 %v1001_v51, %v3662_v5  ;;  %v1023_v5 = vld [vmem:[#allocation2 + $0xa8] sm:$0xff] }
0x10e3   :  { %v1026_v9 = vunpack.c.l.bf16 %v1023_v5  ;;  %v1027_v21 = vunpack.c.h.bf16 %v1023_v5 }
0x10e4   :  { %v1006_v53 = vmul.f32 %v1002_v52, %v1001_v51 }
0x10e6   :  { %1011 = vrot.lane.b32.xlu0 %v1006_v53, %s3410_s0 }
0x1154   :  { %v1010_v55 = vpop.permute.xlu1 %1009 }
0x1155   :  { %v1015_v57 = vadd.f32 %v1010_v55, %v1003_v54 }
0x1157   :  { %3073 = vtanh.f32 %v1015_v57 }
0x1158   :  { %v1012_v58 = vpop.permute.xlu0 %1011 }
0x1159   :  { %v1016_v59 = vadd.f32 %v1012_v58, %v1004_v56 }
0x115b   :  { %3075 = vtanh.f32 %v1016_v59 }
0x1164   :  { %v3074_v60 = vpop.eup %3073 }
0x1165   :  { %v1019_v62 = vmul.f32 %v3074_v60, %v1000_v30 }
0x1168   :  { %v3076_v61 = vpop.eup %3075 }
0x1169   :  { %v1020_v63 = vmul.f32 %v3076_v61, %v1002_v52 }
0x116b   :  { %v1028_v0 = vpack.c.bf16 %v1020_v63, %v1019_v62 }
0x116d   :  { %1030 = vrot.lane.b32.xlu1 %v1028_v0, %s3410_s0 }
0x11df   :  { %v1031_v1 = vpop.permute.xlu1 %1030 }
0x11e0   :  { %2886 = vmatmul.mubr.msk.bf16.vlgmr.msra.gmra.mxu1 %vm168_vm1, %v1031_v1 }
0x11e1   :  { %1234 = vmatpush1.bf16.msra.mxu1 %v3667_v11  ;;  %1257 = vmatprep.mubr.bf16.mxu1 %v3409_v34 }
0x11e2   :  { %1235 = vmatprep.subr.bf16.mxu1 %v3671_v13 }
0x11e5   :  { %1236 = vmatpush1.bf16.msra.mxu1 %v3674_v14 }
0x11e6   :  { %1237 = vmatprep.subr.bf16.mxu1 %v3677_v15 }
0x11e9   :  { %1238 = vmatpush1.bf16.msra.mxu1 %v3680_v16 }
0x11ea   :  { %1239 = vmatprep.subr.bf16.mxu1 %v3683_v18 }
0x11ed   :  { %1240 = vmatpush1.bf16.msra.mxu1 %v3686_v19 }
0x11ee   :  { %1423 = vmatprep.subr.bf16.mxu1 %v3689_v20 }
0x12a0   :  { %v1069_v7 = vpop.f32.mrf.mxu1 }
0x12a1   :  { %v1078_v8 = vadd.f32 %v1069_v7, %v1024_v3 }
0x12a2   :  { %v1071_v10 = vpop.f32.mrf.mxu1 }
0x12a3   :  { %v1082_v12 = vmul.f32 0.5, %v1078_v8  ;;  %v1079_v22 = vadd.f32 %v1071_v10, %v1025_v6 }
0x12a4   :  { %v1073_v23 = vpop.f32.mrf.mxu1 }
0x12a5   :  { %3077 = vtanh.f32 %v1082_v12  ;;  %v1083_v24 = vmul.f32 %v1079_v22, %v3456_v4  ;;  %v1080_v25 = vadd.f32 %v1073_v23, %v1026_v9 }
0x12a6   :  { %v1075_v26 = vpop.f32.mrf.mxu1 }
0x12a7   :  { %3079 = vtanh.f32 %v1083_v24  ;;  %v1084_v27 = vmul.f32 0.5, %v1080_v25  ;;  %v1081_v28 = vadd.f32 %v1075_v26, %v1027_v21 }
0x12a9   :  { %3081 = vtanh.f32 %v1084_v27  ;;  %v1085_v35 = vmul.f32 %v1081_v28, %v3456_v4 }
0x12ab   :  { %3083 = vtanh.f32 %v1085_v35 }
0x12b2   :  { %v3078_v29 = vpop.eup %3077 }
0x12b3   :  { %v1090_v37 = vmul.f32 0.5, %v3078_v29 }
0x12b4   :  { %v3080_v41 = vpop.eup %3079 }
0x12b5   :  { %v1091_v31 = vmul.f32 %v3080_v41, %v3456_v4  ;;  %v1094_v43 = vadd.f32 0.5, %v1090_v37 }
0x12b6   :  { %v3082_v42 = vpop.eup %3081 }
0x12b7   :  { %v1092_v44 = vmul.f32 0.5, %v3082_v42  ;;  %v1095_v32 = vadd.f32 %v1091_v31, %v3461_v17  ;;  %v1098_v48 = vmul.f32 %v1094_v43, %v1015_v57  ;;  %v1117_v57 = vld [vmem:[#allocation2 + $0xb0] sm:$0xff] }
0x12b8   :  { %v3084_v45 = vpop.eup %3083  ;;  %v1119_v58 = vunpack.c.l.bf16 %v1117_v57  ;;  %v1120_v60 = vunpack.c.h.bf16 %v1117_v57 }
0x12b9   :  { %v1100_v33 = vmul.f32 %v1095_v32, %v1094_v43  ;;  %v1093_v46 = vmul.f32 %v3084_v45, %v3456_v4  ;;  %v1096_v36 = vadd.f32 0.5, %v1092_v44 }
0x12bb   :  { %1104 = vrot.lane.b32.xlu0 %v1100_v33, %s3410_s0  ;;  %v1097_v38 = vadd.f32 %v1093_v46, %v3461_v17  ;;  %v1099_v47 = vmul.f32 %v1096_v36, %v1016_v59  ;;  %v1118_v59 = vld [vmem:[#allocation2 + $0xb8] sm:$0xff] }
0x12bc   :  { %v1121_v63 = vunpack.c.l.bf16 %v1118_v59  ;;  %v1122_v3 = vunpack.c.h.bf16 %v1118_v59 }
0x12bd   :  { %v1101_v39 = vmul.f32 %v1097_v38, %v1096_v36 }
0x12bf   :  { %1106 = vrot.lane.b32.xlu1 %v1101_v39, %s3410_s0 }
0x132d   :  { %v1105_v40 = vpop.permute.xlu0 %1104 }
0x132e   :  { %v1110_v30 = vadd.f32 %v1105_v40, %v1098_v48 }
0x1330   :  { %3085 = vtanh.f32 %v1110_v30 }
0x1331   :  { %v1107_v49 = vpop.permute.xlu1 %1106 }
0x1332   :  { %v1111_v50 = vadd.f32 %v1107_v49, %v1099_v47 }
0x1334   :  { %3087 = vtanh.f32 %v1111_v50 }
0x133d   :  { %v3086_v51 = vpop.eup %3085 }
0x133e   :  { %v1114_v53 = vmul.f32 %v3086_v51, %v1095_v32 }
0x1341   :  { %v3088_v52 = vpop.eup %3087 }
0x1342   :  { %v1115_v54 = vmul.f32 %v3088_v52, %v1097_v38 }
0x1344   :  { %v1123_v55 = vpack.c.bf16 %v1115_v54, %v1114_v53 }
0x1346   :  { %1125 = vrot.lane.b32.xlu0 %v1123_v55, %s3410_s0 }
0x13b8   :  { %v1126_v56 = vpop.permute.xlu0 %1125 }
0x13b9   :  { %2887 = vmatmul.mubr.msk.bf16.vlgmr.msra.gmra.mxu0 %vm168_vm1, %v1126_v56 }
0x13ba   :  { %1329 = vmatpush1.bf16.msra.mxu0 %v3667_v11  ;;  %1352 = vmatprep.mubr.bf16.mxu0 %v3409_v34 }
0x13bb   :  { %1330 = vmatprep.subr.bf16.mxu0 %v3671_v13 }
0x13be   :  { %1331 = vmatpush1.bf16.msra.mxu0 %v3674_v14 }
0x13bf   :  { %1332 = vmatprep.subr.bf16.mxu0 %v3677_v15 }
0x13c2   :  { %1333 = vmatpush1.bf16.msra.mxu0 %v3680_v16 }
0x13c3   :  { %1334 = vmatprep.subr.bf16.mxu0 %v3683_v18 }
0x13c6   :  { %1335 = vmatpush1.bf16.msra.mxu0 %v3686_v19 }
0x13c7   :  { %1518 = vmatprep.subr.bf16.mxu0 %v3689_v20 }
0x1479   :  { %v1164_v61 = vpop.f32.mrf.mxu0 }
0x147a   :  { %v1173_v62 = vadd.f32 %v1164_v61, %v1119_v58 }
0x147b   :  { %v1166_v0 = vpop.f32.mrf.mxu0 }
0x147c   :  { %v1177_v1 = vmul.f32 0.5, %v1173_v62  ;;  %v1174_v2 = vadd.f32 %v1166_v0, %v1120_v60 }
0x147d   :  { %v1168_v5 = vpop.f32.mrf.mxu0 }
0x147e   :  { %3089 = vtanh.f32 %v1177_v1  ;;  %v1178_v6 = vmul.f32 %v1174_v2, %v3456_v4  ;;  %v1175_v7 = vadd.f32 %v1168_v5, %v1121_v63 }
0x147f   :  { %v1170_v8 = vpop.f32.mrf.mxu0 }
0x1480   :  { %3091 = vtanh.f32 %v1178_v6  ;;  %v1179_v9 = vmul.f32 0.5, %v1175_v7  ;;  %v1176_v10 = vadd.f32 %v1170_v8, %v1122_v3 }
0x1482   :  { %3093 = vtanh.f32 %v1179_v9  ;;  %v1180_v12 = vmul.f32 %v1176_v10, %v3456_v4 }
0x1484   :  { %3095 = vtanh.f32 %v1180_v12 }
0x148b   :  { %v3090_v22 = vpop.eup %3089 }
0x148c   :  { %v1185_v21 = vmul.f32 0.5, %v3090_v22 }
0x148d   :  { %v3092_v23 = vpop.eup %3091 }
0x148e   :  { %v1186_v24 = vmul.f32 %v3092_v23, %v3456_v4  ;;  %v1189_v26 = vadd.f32 0.5, %v1185_v21 }
0x148f   :  { %v3094_v25 = vpop.eup %3093 }
0x1490   :  { %v1187_v27 = vmul.f32 0.5, %v3094_v25  ;;  %v1190_v28 = vadd.f32 %v1186_v24, %v3461_v17  ;;  %v1193_v43 = vmul.f32 %v1189_v26, %v1110_v30  ;;  %v1212_v30 = vld [vmem:[#allocation2 + $0xc0] sm:$0xff] }
0x1491   :  { %v3096_v35 = vpop.eup %3095  ;;  %v1214_v49 = vunpack.c.l.bf16 %v1212_v30  ;;  %v1215_v51 = vunpack.c.h.bf16 %v1212_v30 }
0x1492   :  { %v1195_v29 = vmul.f32 %v1190_v28, %v1189_v26  ;;  %v1188_v37 = vmul.f32 %v3096_v35, %v3456_v4  ;;  %v1191_v41 = vadd.f32 0.5, %v1187_v27 }
0x1494   :  { %1199 = vrot.lane.b32.xlu1 %v1195_v29, %s3410_s0  ;;  %v1192_v31 = vadd.f32 %v1188_v37, %v3461_v17  ;;  %v1194_v45 = vmul.f32 %v1191_v41, %v1111_v50  ;;  %v1213_v50 = vld [vmem:[#allocation2 + $0xc8] sm:$0xff] }
0x1495   :  { %v1216_v54 = vunpack.c.l.bf16 %v1213_v50  ;;  %v1217_v58 = vunpack.c.h.bf16 %v1213_v50 }
0x1496   :  { %v1196_v42 = vmul.f32 %v1192_v31, %v1191_v41 }
0x1498   :  { %1201 = vrot.lane.b32.xlu0 %v1196_v42, %s3410_s0 }
0x1506   :  { %v1200_v44 = vpop.permute.xlu1 %1199 }
0x1507   :  { %v1205_v32 = vadd.f32 %v1200_v44, %v1193_v43 }
0x1509   :  { %3097 = vtanh.f32 %v1205_v32 }
0x150a   :  { %v1202_v33 = vpop.permute.xlu0 %1201 }
0x150b   :  { %v1206_v46 = vadd.f32 %v1202_v33, %v1194_v45 }
0x150d   :  { %3099 = vtanh.f32 %v1206_v46 }
0x1516   :  { %v3098_v36 = vpop.eup %3097 }
0x1517   :  { %v1209_v39 = vmul.f32 %v3098_v36, %v1190_v28 }
0x151a   :  { %v3100_v38 = vpop.eup %3099 }
0x151b   :  { %v1210_v48 = vmul.f32 %v3100_v38, %v1192_v31 }
0x151d   :  { %v1218_v40 = vpack.c.bf16 %v1210_v48, %v1209_v39 }
0x151f   :  { %1220 = vrot.lane.b32.xlu1 %v1218_v40, %s3410_s0 }
0x1591   :  { %v1221_v47 = vpop.permute.xlu1 %1220 }
0x1592   :  { %2888 = vmatmul.mubr.msk.bf16.vlgmr.msra.gmra.mxu1 %vm168_vm1, %v1221_v47 }
0x1593   :  { %1424 = vmatpush1.bf16.msra.mxu1 %v3667_v11  ;;  %1447 = vmatprep.mubr.bf16.mxu1 %v3409_v34 }
0x1594   :  { %1425 = vmatprep.subr.bf16.mxu1 %v3671_v13 }
0x1597   :  { %1426 = vmatpush1.bf16.msra.mxu1 %v3674_v14 }
0x1598   :  { %1427 = vmatprep.subr.bf16.mxu1 %v3677_v15 }
0x159b   :  { %1428 = vmatpush1.bf16.msra.mxu1 %v3680_v16 }
0x159c   :  { %1429 = vmatprep.subr.bf16.mxu1 %v3683_v18 }
0x159f   :  { %1430 = vmatpush1.bf16.msra.mxu1 %v3686_v19 }
0x15a0   :  { %1613 = vmatprep.subr.bf16.mxu1 %v3689_v20 }
0x1652   :  { %v1259_v52 = vpop.f32.mrf.mxu1 }
0x1653   :  { %v1268_v53 = vadd.f32 %v1259_v52, %v1214_v49 }
0x1654   :  { %v1261_v55 = vpop.f32.mrf.mxu1 }
0x1655   :  { %v1272_v56 = vmul.f32 0.5, %v1268_v53  ;;  %v1269_v57 = vadd.f32 %v1261_v55, %v1215_v51 }
0x1656   :  { %v1263_v59 = vpop.f32.mrf.mxu1 }
0x1657   :  { %3101 = vtanh.f32 %v1272_v56  ;;  %v1273_v60 = vmul.f32 %v1269_v57, %v3456_v4  ;;  %v1270_v61 = vadd.f32 %v1263_v59, %v1216_v54 }
0x1658   :  { %v1265_v62 = vpop.f32.mrf.mxu1 }
0x1659   :  { %3103 = vtanh.f32 %v1273_v60  ;;  %v1274_v63 = vmul.f32 0.5, %v1270_v61  ;;  %v1271_v0 = vadd.f32 %v1265_v62, %v1217_v58 }
0x165b   :  { %3105 = vtanh.f32 %v1274_v63  ;;  %v1275_v1 = vmul.f32 %v1271_v0, %v3456_v4 }
0x165d   :  { %3107 = vtanh.f32 %v1275_v1 }
0x1664   :  { %v3102_v2 = vpop.eup %3101 }
0x1665   :  { %v1280_v3 = vmul.f32 0.5, %v3102_v2 }
0x1666   :  { %v3104_v5 = vpop.eup %3103 }
0x1667   :  { %v1281_v6 = vmul.f32 %v3104_v5, %v3456_v4  ;;  %v1284_v8 = vadd.f32 0.5, %v1280_v3 }
0x1668   :  { %v3106_v7 = vpop.eup %3105 }
0x1669   :  { %v1282_v9 = vmul.f32 0.5, %v3106_v7  ;;  %v1285_v10 = vadd.f32 %v1281_v6, %v3461_v17  ;;  %v1288_v26 = vmul.f32 %v1284_v8, %v1205_v32  ;;  %v1307_v32 = vld [vmem:[#allocation2 + $0xd0] sm:$0xff] }
0x166a   :  { %v3108_v12 = vpop.eup %3107  ;;  %v1309_v33 = vunpack.c.l.bf16 %v1307_v32  ;;  %v1310_v36 = vunpack.c.h.bf16 %v1307_v32 }
0x166b   :  { %v1290_v22 = vmul.f32 %v1285_v10, %v1284_v8  ;;  %v1283_v21 = vmul.f32 %v3108_v12, %v3456_v4  ;;  %v1286_v23 = vadd.f32 0.5, %v1282_v9 }
0x166d   :  { %1294 = vrot.lane.b32.xlu0 %v1290_v22, %s3410_s0  ;;  %v1287_v24 = vadd.f32 %v1283_v21, %v3461_v17  ;;  %v1289_v35 = vmul.f32 %v1286_v23, %v1206_v46  ;;  %v1308_v46 = vld [vmem:[#allocation2 + $0xd8] sm:$0xff] }
0x166e   :  { %v1311_v48 = vunpack.c.l.bf16 %v1308_v46  ;;  %v1312_v49 = vunpack.c.h.bf16 %v1308_v46 }
0x166f   :  { %v1291_v25 = vmul.f32 %v1287_v24, %v1286_v23 }
0x1671   :  { %1296 = vrot.lane.b32.xlu1 %v1291_v25, %s3410_s0 }
0x16df   :  { %v1295_v27 = vpop.permute.xlu0 %1294 }
0x16e0   :  { %v1300_v28 = vadd.f32 %v1295_v27, %v1288_v26 }
0x16e2   :  { %3109 = vtanh.f32 %v1300_v28 }
0x16e3   :  { %v1297_v29 = vpop.permute.xlu1 %1296 }
0x16e4   :  { %v1301_v37 = vadd.f32 %v1297_v29, %v1289_v35 }
0x16e6   :  { %3111 = vtanh.f32 %v1301_v37 }
0x16ef   :  { %v3110_v41 = vpop.eup %3109 }
0x16f0   :  { %v1304_v42 = vmul.f32 %v3110_v41, %v1285_v10 }
0x16f3   :  { %v3112_v31 = vpop.eup %3111 }
0x16f4   :  { %v1305_v43 = vmul.f32 %v3112_v31, %v1287_v24 }
0x16f6   :  { %v1313_v44 = vpack.c.bf16 %v1305_v43, %v1304_v42 }
0x16f8   :  { %1315 = vrot.lane.b32.xlu0 %v1313_v44, %s3410_s0 }
0x176a   :  { %v1316_v45 = vpop.permute.xlu0 %1315 }
0x176b   :  { %2889 = vmatmul.mubr.msk.bf16.vlgmr.msra.gmra.mxu0 %vm168_vm1, %v1316_v45 }
0x176c   :  { %1519 = vmatpush1.bf16.msra.mxu0 %v3667_v11  ;;  %1542 = vmatprep.mubr.bf16.mxu0 %v3409_v34 }
0x176d   :  { %1520 = vmatprep.subr.bf16.mxu0 %v3671_v13 }
0x1770   :  { %1521 = vmatpush1.bf16.msra.mxu0 %v3674_v14 }
0x1771   :  { %1522 = vmatprep.subr.bf16.mxu0 %v3677_v15 }
0x1774   :  { %1523 = vmatpush1.bf16.msra.mxu0 %v3680_v16 }
0x1775   :  { %1524 = vmatprep.subr.bf16.mxu0 %v3683_v18 }
0x1778   :  { %1525 = vmatpush1.bf16.msra.mxu0 %v3686_v19 }
0x1779   :  { %1708 = vmatprep.subr.bf16.mxu0 %v3689_v20 }
0x182b   :  { %v1354_v38 = vpop.f32.mrf.mxu0 }
0x182c   :  { %v1363_v39 = vadd.f32 %v1354_v38, %v1309_v33 }
0x182d   :  { %v1356_v40 = vpop.f32.mrf.mxu0 }
0x182e   :  { %v1367_v47 = vmul.f32 0.5, %v1363_v39  ;;  %v1364_v30 = vadd.f32 %v1356_v40, %v1310_v36 }
0x182f   :  { %v1358_v50 = vpop.f32.mrf.mxu0 }
0x1830   :  { %3113 = vtanh.f32 %v1367_v47  ;;  %v1368_v51 = vmul.f32 %v1364_v30, %v3456_v4  ;;  %v1365_v52 = vadd.f32 %v1358_v50, %v1311_v48 }
0x1831   :  { %v1360_v53 = vpop.f32.mrf.mxu0 }
0x1832   :  { %3115 = vtanh.f32 %v1368_v51  ;;  %v1369_v54 = vmul.f32 0.5, %v1365_v52  ;;  %v1366_v55 = vadd.f32 %v1360_v53, %v1312_v49 }
0x1834   :  { %3117 = vtanh.f32 %v1369_v54  ;;  %v1370_v56 = vmul.f32 %v1366_v55, %v3456_v4 }
0x1836   :  { %3119 = vtanh.f32 %v1370_v56 }
0x183d   :  { %v3114_v57 = vpop.eup %3113 }
0x183e   :  { %v1375_v58 = vmul.f32 0.5, %v3114_v57 }
0x183f   :  { %v3116_v59 = vpop.eup %3115 }
0x1840   :  { %v1376_v60 = vmul.f32 %v3116_v59, %v3456_v4  ;;  %v1379_v62 = vadd.f32 0.5, %v1375_v58 }
0x1841   :  { %v3118_v61 = vpop.eup %3117 }
0x1842   :  { %v1377_v63 = vmul.f32 0.5, %v3118_v61  ;;  %v1380_v0 = vadd.f32 %v1376_v60, %v3461_v17  ;;  %v1383_v8 = vmul.f32 %v1379_v62, %v1300_v28  ;;  %v1402_v28 = vld [vmem:[#allocation2 + $0xe0] sm:$0xff] }
0x1843   :  { %v3120_v1 = vpop.eup %3119  ;;  %v1404_v29 = vunpack.c.l.bf16 %v1402_v28  ;;  %v1405_v41 = vunpack.c.h.bf16 %v1402_v28 }
0x1844   :  { %v1385_v2 = vmul.f32 %v1380_v0, %v1379_v62  ;;  %v1378_v3 = vmul.f32 %v3120_v1, %v3456_v4  ;;  %v1381_v5 = vadd.f32 0.5, %v1377_v63 }
0x1846   :  { %1389 = vrot.lane.b32.xlu1 %v1385_v2, %s3410_s0  ;;  %v1382_v6 = vadd.f32 %v1378_v3, %v3461_v17  ;;  %v1384_v12 = vmul.f32 %v1381_v5, %v1301_v37  ;;  %v1403_v37 = vld [vmem:[#allocation2 + $0xe8] sm:$0xff] }
0x1847   :  { %v1406_v43 = vunpack.c.l.bf16 %v1403_v37  ;;  %v1407_v33 = vunpack.c.h.bf16 %v1403_v37 }
0x1848   :  { %v1386_v7 = vmul.f32 %v1382_v6, %v1381_v5 }
0x184a   :  { %1391 = vrot.lane.b32.xlu0 %v1386_v7, %s3410_s0 }
0x18b8   :  { %v1390_v9 = vpop.permute.xlu1 %1389 }
0x18b9   :  { %v1395_v10 = vadd.f32 %v1390_v9, %v1383_v8 }
0x18bb   :  { %3121 = vtanh.f32 %v1395_v10 }
0x18bc   :  { %v1392_v22 = vpop.permute.xlu0 %1391 }
0x18bd   :  { %v1396_v21 = vadd.f32 %v1392_v22, %v1384_v12 }
0x18bf   :  { %3123 = vtanh.f32 %v1396_v21 }
0x18c8   :  { %v3122_v23 = vpop.eup %3121 }
0x18c9   :  { %v1399_v25 = vmul.f32 %v3122_v23, %v1380_v0 }
0x18cc   :  { %v3124_v24 = vpop.eup %3123 }
0x18cd   :  { %v1400_v26 = vmul.f32 %v3124_v24, %v1382_v6 }
0x18cf   :  { %v1408_v27 = vpack.c.bf16 %v1400_v26, %v1399_v25 }
0x18d1   :  { %1410 = vrot.lane.b32.xlu1 %v1408_v27, %s3410_s0 }
0x1943   :  { %v1411_v35 = vpop.permute.xlu1 %1410 }
0x1944   :  { %2890 = vmatmul.mubr.msk.bf16.vlgmr.msra.gmra.mxu1 %vm168_vm1, %v1411_v35 }
0x1945   :  { %1614 = vmatpush1.bf16.msra.mxu1 %v3667_v11  ;;  %1637 = vmatprep.mubr.bf16.mxu1 %v3409_v34 }
0x1946   :  { %1615 = vmatprep.subr.bf16.mxu1 %v3671_v13 }
0x1949   :  { %1616 = vmatpush1.bf16.msra.mxu1 %v3674_v14 }
0x194a   :  { %1617 = vmatprep.subr.bf16.mxu1 %v3677_v15 }
0x194d   :  { %1618 = vmatpush1.bf16.msra.mxu1 %v3680_v16 }
0x194e   :  { %1619 = vmatprep.subr.bf16.mxu1 %v3683_v18 }
0x1951   :  { %1620 = vmatpush1.bf16.msra.mxu1 %v3686_v19 }
0x1952   :  { %1803 = vmatprep.subr.bf16.mxu1 %v3689_v20 }
0x1a04   :  { %v1449_v31 = vpop.f32.mrf.mxu1 }
0x1a05   :  { %v1458_v42 = vadd.f32 %v1449_v31, %v1404_v29 }
0x1a06   :  { %v1451_v44 = vpop.f32.mrf.mxu1 }
0x1a07   :  { %v1462_v45 = vmul.f32 0.5, %v1458_v42  ;;  %v1459_v32 = vadd.f32 %v1451_v44, %v1405_v41 }
0x1a08   :  { %v1453_v46 = vpop.f32.mrf.mxu1 }
0x1a09   :  { %3125 = vtanh.f32 %v1462_v45  ;;  %v1463_v36 = vmul.f32 %v1459_v32, %v3456_v4  ;;  %v1460_v38 = vadd.f32 %v1453_v46, %v1406_v43 }
0x1a0a   :  { %v1455_v39 = vpop.f32.mrf.mxu1 }
0x1a0b   :  { %3127 = vtanh.f32 %v1463_v36  ;;  %v1464_v48 = vmul.f32 0.5, %v1460_v38  ;;  %v1461_v40 = vadd.f32 %v1455_v39, %v1407_v33 }
0x1a0d   :  { %3129 = vtanh.f32 %v1464_v48  ;;  %v1465_v47 = vmul.f32 %v1461_v40, %v3456_v4 }
0x1a0f   :  { %3131 = vtanh.f32 %v1465_v47 }
0x1a16   :  { %v3126_v30 = vpop.eup %3125 }
0x1a17   :  { %v1470_v49 = vmul.f32 0.5, %v3126_v30 }
0x1a18   :  { %v3128_v50 = vpop.eup %3127 }
0x1a19   :  { %v1471_v51 = vmul.f32 %v3128_v50, %v3456_v4  ;;  %v1474_v53 = vadd.f32 0.5, %v1470_v49 }
0x1a1a   :  { %v3130_v52 = vpop.eup %3129 }
0x1a1b   :  { %v1472_v54 = vmul.f32 0.5, %v3130_v52  ;;  %v1475_v55 = vadd.f32 %v1471_v51, %v3461_v17  ;;  %v1478_v62 = vmul.f32 %v1474_v53, %v1395_v10  ;;  %v1497_v10 = vld [vmem:[#allocation2 + $0xf0] sm:$0xff] }
0x1a1c   :  { %v3132_v56 = vpop.eup %3131  ;;  %v1499_v22 = vunpack.c.l.bf16 %v1497_v10  ;;  %v1500_v23 = vunpack.c.h.bf16 %v1497_v10 }
0x1a1d   :  { %v1480_v57 = vmul.f32 %v1475_v55, %v1474_v53  ;;  %v1473_v58 = vmul.f32 %v3132_v56, %v3456_v4  ;;  %v1476_v59 = vadd.f32 0.5, %v1472_v54 }
0x1a1f   :  { %1484 = vrot.lane.b32.xlu0 %v1480_v57, %s3410_s0  ;;  %v1477_v60 = vadd.f32 %v1473_v58, %v3461_v17  ;;  %v1479_v1 = vmul.f32 %v1476_v59, %v1396_v21  ;;  %v1498_v21 = vld [vmem:[#allocation2 + $0xf8] sm:$0xff] }
0x1a20   :  { %v1501_v26 = vunpack.c.l.bf16 %v1498_v21  ;;  %v1502_v29 = vunpack.c.h.bf16 %v1498_v21 }
0x1a21   :  { %v1481_v61 = vmul.f32 %v1477_v60, %v1476_v59 }
0x1a23   :  { %1486 = vrot.lane.b32.xlu1 %v1481_v61, %s3410_s0 }
0x1a91   :  { %v1485_v63 = vpop.permute.xlu0 %1484 }
0x1a92   :  { %v1490_v0 = vadd.f32 %v1485_v63, %v1478_v62 }
0x1a94   :  { %3133 = vtanh.f32 %v1490_v0 }
0x1a95   :  { %v1487_v2 = vpop.permute.xlu1 %1486 }
0x1a96   :  { %v1491_v3 = vadd.f32 %v1487_v2, %v1479_v1 }
0x1a98   :  { %3135 = vtanh.f32 %v1491_v3 }
0x1aa1   :  { %v3134_v5 = vpop.eup %3133 }
0x1aa2   :  { %v1494_v7 = vmul.f32 %v3134_v5, %v1475_v55 }
0x1aa5   :  { %v3136_v6 = vpop.eup %3135 }
0x1aa6   :  { %v1495_v8 = vmul.f32 %v3136_v6, %v1477_v60 }
0x1aa8   :  { %v1503_v9 = vpack.c.bf16 %v1495_v8, %v1494_v7 }
0x1aaa   :  { %1505 = vrot.lane.b32.xlu0 %v1503_v9, %s3410_s0 }
0x1b1c   :  { %v1506_v12 = vpop.permute.xlu0 %1505 }
0x1b1d   :  { %2891 = vmatmul.mubr.msk.bf16.vlgmr.msra.gmra.mxu0 %vm168_vm1, %v1506_v12 }
0x1b1e   :  { %1709 = vmatpush1.bf16.msra.mxu0 %v3667_v11  ;;  %1732 = vmatprep.mubr.bf16.mxu0 %v3409_v34 }
0x1b1f   :  { %1710 = vmatprep.subr.bf16.mxu0 %v3671_v13 }
0x1b22   :  { %1711 = vmatpush1.bf16.msra.mxu0 %v3674_v14 }
0x1b23   :  { %1712 = vmatprep.subr.bf16.mxu0 %v3677_v15 }
0x1b26   :  { %1713 = vmatpush1.bf16.msra.mxu0 %v3680_v16 }
0x1b27   :  { %1714 = vmatprep.subr.bf16.mxu0 %v3683_v18 }
0x1b2a   :  { %1715 = vmatpush1.bf16.msra.mxu0 %v3686_v19 }
0x1b2b   :  { %1898 = vmatprep.subr.bf16.mxu0 %v3689_v20 }
0x1bdd   :  { %v1544_v24 = vpop.f32.mrf.mxu0 }
0x1bde   :  { %v1553_v25 = vadd.f32 %v1544_v24, %v1499_v22 }
0x1bdf   :  { %v1546_v27 = vpop.f32.mrf.mxu0 }
0x1be0   :  { %v1557_v35 = vmul.f32 0.5, %v1553_v25  ;;  %v1554_v28 = vadd.f32 %v1546_v27, %v1500_v23 }
0x1be1   :  { %v1548_v37 = vpop.f32.mrf.mxu0 }
0x1be2   :  { %3137 = vtanh.f32 %v1557_v35  ;;  %v1558_v41 = vmul.f32 %v1554_v28, %v3456_v4  ;;  %v1555_v31 = vadd.f32 %v1548_v37, %v1501_v26 }
0x1be3   :  { %v1550_v42 = vpop.f32.mrf.mxu0 }
0x1be4   :  { %3139 = vtanh.f32 %v1558_v41  ;;  %v1559_v43 = vmul.f32 0.5, %v1555_v31  ;;  %v1556_v44 = vadd.f32 %v1550_v42, %v1502_v29 }
0x1be6   :  { %3141 = vtanh.f32 %v1559_v43  ;;  %v1560_v45 = vmul.f32 %v1556_v44, %v3456_v4 }
0x1be8   :  { %3143 = vtanh.f32 %v1560_v45 }
0x1bef   :  { %v3138_v32 = vpop.eup %3137 }
0x1bf0   :  { %v1565_v33 = vmul.f32 0.5, %v3138_v32 }
0x1bf1   :  { %v3140_v46 = vpop.eup %3139 }
0x1bf2   :  { %v1566_v36 = vmul.f32 %v3140_v46, %v3456_v4  ;;  %v1569_v39 = vadd.f32 0.5, %v1565_v33 }
0x1bf3   :  { %v3142_v38 = vpop.eup %3141 }
0x1bf4   :  { %v1567_v48 = vmul.f32 0.5, %v3142_v38  ;;  %v1570_v40 = vadd.f32 %v1566_v36, %v3461_v17  ;;  %v1573_v53 = vmul.f32 %v1569_v39, %v1490_v0  ;;  %v1592_v0 = vld [vmem:[#allocation2 + $0x100] sm:$0xff] }
0x1bf5   :  { %v3144_v47 = vpop.eup %3143  ;;  %v1594_v2 = vunpack.c.l.bf16 %v1592_v0  ;;  %v1595_v5 = vunpack.c.h.bf16 %v1592_v0 }
0x1bf6   :  { %v1575_v30 = vmul.f32 %v1570_v40, %v1569_v39  ;;  %v1568_v49 = vmul.f32 %v3144_v47, %v3456_v4  ;;  %v1571_v50 = vadd.f32 0.5, %v1567_v48 }
0x1bf8   :  { %1579 = vrot.lane.b32.xlu1 %v1575_v30, %s3410_s0  ;;  %v1572_v51 = vadd.f32 %v1568_v49, %v3461_v17  ;;  %v1574_v56 = vmul.f32 %v1571_v50, %v1491_v3  ;;  %v1593_v3 = vld [vmem:[#allocation2 + $0x108] sm:$0xff] }
0x1bf9   :  { %v1596_v8 = vunpack.c.l.bf16 %v1593_v3  ;;  %v1597_v22 = vunpack.c.h.bf16 %v1593_v3 }
0x1bfa   :  { %v1576_v52 = vmul.f32 %v1572_v51, %v1571_v50 }
0x1bfc   :  { %1581 = vrot.lane.b32.xlu0 %v1576_v52, %s3410_s0 }
0x1c6a   :  { %v1580_v54 = vpop.permute.xlu1 %1579 }
0x1c6b   :  { %v1585_v55 = vadd.f32 %v1580_v54, %v1573_v53 }
0x1c6d   :  { %3145 = vtanh.f32 %v1585_v55 }
0x1c6e   :  { %v1582_v57 = vpop.permute.xlu0 %1581 }
0x1c6f   :  { %v1586_v58 = vadd.f32 %v1582_v57, %v1574_v56 }
0x1c71   :  { %3147 = vtanh.f32 %v1586_v58 }
0x1c7a   :  { %v3146_v59 = vpop.eup %3145 }
0x1c7b   :  { %v1589_v61 = vmul.f32 %v3146_v59, %v1570_v40 }
0x1c7e   :  { %v3148_v60 = vpop.eup %3147 }
0x1c7f   :  { %v1590_v62 = vmul.f32 %v3148_v60, %v1572_v51 }
0x1c81   :  { %v1598_v63 = vpack.c.bf16 %v1590_v62, %v1589_v61 }
0x1c83   :  { %1600 = vrot.lane.b32.xlu1 %v1598_v63, %s3410_s0 }
0x1cf5   :  { %v1601_v1 = vpop.permute.xlu1 %1600 }
0x1cf6   :  { %2892 = vmatmul.mubr.msk.bf16.vlgmr.msra.gmra.mxu1 %vm168_vm1, %v1601_v1 }
0x1cf7   :  { %1804 = vmatpush1.bf16.msra.mxu1 %v3667_v11  ;;  %1827 = vmatprep.mubr.bf16.mxu1 %v3409_v34 }
0x1cf8   :  { %1805 = vmatprep.subr.bf16.mxu1 %v3671_v13 }
0x1cfb   :  { %1806 = vmatpush1.bf16.msra.mxu1 %v3674_v14 }
0x1cfc   :  { %1807 = vmatprep.subr.bf16.mxu1 %v3677_v15 }
0x1cff   :  { %1808 = vmatpush1.bf16.msra.mxu1 %v3680_v16 }
0x1d00   :  { %1809 = vmatprep.subr.bf16.mxu1 %v3683_v18 }
0x1d03   :  { %1810 = vmatpush1.bf16.msra.mxu1 %v3686_v19 }
0x1d04   :  { %1993 = vmatprep.subr.bf16.mxu1 %v3689_v20 }
0x1db6   :  { %v1639_v6 = vpop.f32.mrf.mxu1 }
0x1db7   :  { %v1648_v7 = vadd.f32 %v1639_v6, %v1594_v2 }
0x1db8   :  { %v1641_v9 = vpop.f32.mrf.mxu1 }
0x1db9   :  { %v1652_v12 = vmul.f32 0.5, %v1648_v7  ;;  %v1649_v10 = vadd.f32 %v1641_v9, %v1595_v5 }
0x1dba   :  { %v1643_v21 = vpop.f32.mrf.mxu1 }
0x1dbb   :  { %3149 = vtanh.f32 %v1652_v12  ;;  %v1653_v23 = vmul.f32 %v1649_v10, %v3456_v4  ;;  %v1650_v24 = vadd.f32 %v1643_v21, %v1596_v8 }
0x1dbc   :  { %v1645_v25 = vpop.f32.mrf.mxu1 }
0x1dbd   :  { %3151 = vtanh.f32 %v1653_v23  ;;  %v1654_v26 = vmul.f32 0.5, %v1650_v24  ;;  %v1651_v27 = vadd.f32 %v1645_v25, %v1597_v22 }
0x1dbf   :  { %3153 = vtanh.f32 %v1654_v26  ;;  %v1655_v35 = vmul.f32 %v1651_v27, %v3456_v4 }
0x1dc1   :  { %3155 = vtanh.f32 %v1655_v35 }
0x1dc8   :  { %v3150_v28 = vpop.eup %3149 }
0x1dc9   :  { %v1660_v29 = vmul.f32 0.5, %v3150_v28 }
0x1dca   :  { %v3152_v37 = vpop.eup %3151 }
0x1dcb   :  { %v1661_v41 = vmul.f32 %v3152_v37, %v3456_v4  ;;  %v1664_v42 = vadd.f32 0.5, %v1660_v29 }
0x1dcc   :  { %v3154_v31 = vpop.eup %3153 }
0x1dcd   :  { %v1662_v43 = vmul.f32 0.5, %v3154_v31  ;;  %v1665_v44 = vadd.f32 %v1661_v41, %v3461_v17  ;;  %v1668_v39 = vmul.f32 %v1664_v42, %v1585_v55  ;;  %v1687_v55 = vld [vmem:[#allocation2 + $0x110] sm:$0xff] }
0x1dce   :  { %v3156_v45 = vpop.eup %3155  ;;  %v1689_v57 = vunpack.c.l.bf16 %v1687_v55 }
0x1dcf   :  { %v1670_v32 = vmul.f32 %v1665_v44, %v1664_v42  ;;  %v1663_v33 = vmul.f32 %v3156_v45, %v3456_v4  ;;  %v1666_v46 = vadd.f32 0.5, %v1662_v43 }
0x1dd1   :  { %1674 = vrot.lane.b32.xlu0 %v1670_v32, %s3410_s0  ;;  %v1667_v36 = vadd.f32 %v1663_v33, %v3461_v17  ;;  %v1669_v47 = vmul.f32 %v1666_v46, %v1586_v58  ;;  %v1688_v58 = vld [vmem:[#allocation2 + $0x118] sm:$0xff]  ;;  %v3866_v33 = vld [vmem:[#allocation5 + $0x24] ss:$8 sps:$4 sm:$0xff]  }
0x1dd2   :  { %v1691_v61 = vunpack.c.l.bf16 %v1688_v58  ;;  %v1692_v63 = vunpack.c.h.bf16 %v1688_v58  ;;  %v3862_v32 = vld [vmem:[#allocation5 + $0x30] ss:$8 sps:$4 sm:$0xff]  }
0x1dd3   :  { %v1671_v38 = vmul.f32 %v1667_v36, %v1666_v46  ;;  %v3869_v46 = vld [vmem:[#allocation5 + $0x20] ss:$8 sps:$4 sm:$0xff]  }
0x1dd5   :  { %1676 = vrot.lane.b32.xlu1 %v1671_v38, %s3410_s0  ;;  %v3875_v38 = vld [vmem:[#allocation5 + $0x10] ss:$8 sps:$4 sm:$0xff]  }
0x1e43   :  { %v1675_v48 = vpop.permute.xlu0 %1674 }
0x1e44   :  { %v1680_v40 = vadd.f32 %v1675_v48, %v1668_v39  ;;  %v3878_v39 = vld [vmem:[#allocation5 + $0x4] ss:$8 sps:$4 sm:$0xff]   ;;  %v3881_v48 = vld [vmem:[#allocation5] ss:$8 sps:$4 sm:$0xff]  }
0x1e46   :  { %3157 = vtanh.f32 %v1680_v40 }
0x1e47   :  { %v1677_v30 = vpop.permute.xlu1 %1676 }
0x1e48   :  { %v1681_v49 = vadd.f32 %v1677_v30, %v1669_v47  ;;  %v1782_v47 = vld [vmem:[#allocation2 + $0x120] sm:$0xff] }
0x1e49   :  { %v1784_v30 = vunpack.c.l.bf16 %v1782_v47 }
0x1e4a   :  { %3159 = vtanh.f32 %v1681_v49 }
0x1e53   :  { %v3158_v50 = vpop.eup %3157 }
0x1e54   :  { %v1684_v52 = vmul.f32 %v3158_v50, %v1665_v44  ;;  %v1785_v50 = vunpack.c.h.bf16 %v1782_v47 }
0x1e57   :  { %v3160_v51 = vpop.eup %3159 }
0x1e58   :  { %v1685_v53 = vmul.f32 %v3160_v51, %v1667_v36  ;;  %v3872_v36 = vld [vmem:[#allocation5 + $0x14] ss:$8 sps:$4 sm:$0xff]  }
0x1e5a   :  { %v1693_v54 = vpack.c.bf16 %v1685_v53, %v1684_v52 }
0x1e5c   :  { %1695 = vrot.lane.b32.xlu0 %v1693_v54, %s3410_s0 }
0x1ece   :  { %v1696_v56 = vpop.permute.xlu0 %1695 }
0x1ecf   :  { %2893 = vmatmul.mubr.msk.bf16.vlgmr.msra.gmra.mxu0 %vm168_vm1, %v1696_v56 }
0x1ed0   :  { %1899 = vmatpush1.bf16.msra.mxu0 %v3667_v11  ;;  %1922 = vmatprep.mubr.bf16.mxu0 %v3409_v34  ;;  %v1690_v11 = vunpack.c.h.bf16 %v1687_v55 }
0x1ed1   :  { %1900 = vmatprep.subr.bf16.mxu0 %v3671_v13 }
0x1ed4   :  { %1901 = vmatpush1.bf16.msra.mxu0 %v3674_v14 }
0x1ed5   :  { %1902 = vmatprep.subr.bf16.mxu0 %v3677_v15 }
0x1ed8   :  { %1903 = vmatpush1.bf16.msra.mxu0 %v3680_v16 }
0x1ed9   :  { %1904 = vmatprep.subr.bf16.mxu0 %v3683_v18 }
0x1edc   :  { %1905 = vmatpush1.bf16.msra.mxu0 %v3686_v19 }
0x1edd   :  { %2088 = vmatprep.subr.bf16.mxu0 %v3689_v20 }
0x1f8f   :  { %v1734_v59 = vpop.f32.mrf.mxu0 }
0x1f90   :  { %v1743_v60 = vadd.f32 %v1734_v59, %v1689_v57 }
0x1f91   :  { %v1736_v13 = vpop.f32.mrf.mxu0 }
0x1f92   :  { %v1747_v62 = vmul.f32 0.5, %v1743_v60  ;;  %v1744_v14 = vadd.f32 %v1736_v13, %v1690_v11 }
0x1f93   :  { %v1738_v15 = vpop.f32.mrf.mxu0 }
0x1f94   :  { %3161 = vtanh.f32 %v1747_v62  ;;  %v1748_v16 = vmul.f32 %v1744_v14, %v3456_v4  ;;  %v1745_v18 = vadd.f32 %v1738_v15, %v1691_v61 }
0x1f95   :  { %v1740_v1 = vpop.f32.mrf.mxu0 }
0x1f96   :  { %3163 = vtanh.f32 %v1748_v16  ;;  %v1749_v19 = vmul.f32 0.5, %v1745_v18  ;;  %v1746_v20 = vadd.f32 %v1740_v1, %v1692_v63 }
0x1f98   :  { %3165 = vtanh.f32 %v1749_v19  ;;  %v1750_v0 = vmul.f32 %v1746_v20, %v3456_v4 }
0x1f9a   :  { %3167 = vtanh.f32 %v1750_v0 }
0x1fa1   :  { %v3162_v2 = vpop.eup %3161 }
0x1fa2   :  { %v1755_v3 = vmul.f32 0.5, %v3162_v2 }
0x1fa3   :  { %v3164_v5 = vpop.eup %3163 }
0x1fa4   :  { %v1756_v6 = vmul.f32 %v3164_v5, %v3456_v4  ;;  %v1759_v8 = vadd.f32 0.5, %v1755_v3 }
0x1fa5   :  { %v3166_v7 = vpop.eup %3165 }
0x1fa6   :  { %v1757_v9 = vmul.f32 0.5, %v3166_v7  ;;  %v1760_v12 = vadd.f32 %v1756_v6, %v3461_v17  ;;  %v1763_v26 = vmul.f32 %v1759_v8, %v1680_v40  ;;  %v3884_v40 = vld [vmem:[#allocation5 + $0x34] ss:$8 sps:$4 sm:$0xff]  }
0x1fa7   :  { %v3168_v10 = vpop.eup %3167 }
0x1fa8   :  { %v1765_v22 = vmul.f32 %v1760_v12, %v1759_v8  ;;  %v1758_v21 = vmul.f32 %v3168_v10, %v3456_v4  ;;  %v1761_v23 = vadd.f32 0.5, %v1757_v9 }
0x1faa   :  { %1769 = vrot.lane.b32.xlu1 %v1765_v22, %s3410_s0  ;;  %v1762_v24 = vadd.f32 %v1758_v21, %v3461_v17  ;;  %v1764_v28 = vmul.f32 %v1761_v23, %v1681_v49  ;;  %v1783_v49 = vld [vmem:[#allocation2 + $0x128] sm:$0xff] }
0x1fab   :  { %v1786_v53 = vunpack.c.l.bf16 %v1783_v49  ;;  %v1787_v57 = vunpack.c.h.bf16 %v1783_v49 }
0x1fac   :  { %v1766_v25 = vmul.f32 %v1762_v24, %v1761_v23 }
0x1fae   :  { %1771 = vrot.lane.b32.xlu0 %v1766_v25, %s3410_s0 }
0x201c   :  { %v1770_v27 = vpop.permute.xlu1 %1769 }
0x201d   :  { %v3854_v35 = vadd.f32 %v1770_v27, %v1763_v26 }
0x201f   :  { %3169 = vtanh.f32 %v3854_v35 }
0x2020   :  { %v1772_v29 = vpop.permute.xlu0 %1771 }
0x2021   :  { %v3857_v37 = vadd.f32 %v1772_v29, %v1764_v28 }
0x2023   :  { %3171 = vtanh.f32 %v3857_v37 }
0x202c   :  { %v3170_v41 = vpop.eup %3169 }
0x202d   :  { %v1779_v42 = vmul.f32 %v3170_v41, %v1760_v12 }
0x2030   :  { %v3172_v31 = vpop.eup %3171 }
0x2031   :  { %v1780_v43 = vmul.f32 %v3172_v31, %v1762_v24 }
0x2033   :  { %v1788_v44 = vpack.c.bf16 %v1780_v43, %v1779_v42 }
0x2035   :  { %1790 = vrot.lane.b32.xlu1 %v1788_v44, %s3410_s0 }
0x20a7   :  { %v1791_v45 = vpop.permute.xlu1 %1790 }
0x20a8   :  { %2894 = vmatmul.mubr.msk.bf16.vlgmr.msra.gmra.mxu1 %vm168_vm1, %v1791_v45 }
0x20a9   :  { %1994 = vmatpush1.bf16.msra.mxu1 %v3862_v32  ;;  %2017 = vmatprep.mubr.bf16.mxu1 %v3409_v34 }
0x20aa   :  { %1995 = vmatprep.subr.bf16.mxu1 %v3866_v33 }
0x20ad   :  { %1996 = vmatpush1.bf16.msra.mxu1 %v3869_v46 }
0x20ae   :  { %1997 = vmatprep.subr.bf16.mxu1 %v3872_v36 }
0x20b1   :  { %1998 = vmatpush1.bf16.msra.mxu1 %v3875_v38 }
0x20b2   :  { %1999 = vmatprep.subr.bf16.mxu1 %v3878_v39 }
0x20b5   :  { %2000 = vmatpush1.bf16.msra.mxu1 %v3881_v48 }
0x20b6   :  { %2183 = vmatprep.subr.bf16.mxu1 %v3884_v40 }
0x2168   :  { %v1829_v51 = vpop.f32.mrf.mxu1 }
0x2169   :  { %v1838_v52 = vadd.f32 %v1829_v51, %v1784_v30 }
0x216a   :  { %v1831_v54 = vpop.f32.mrf.mxu1 }
0x216b   :  { %v1842_v56 = vmul.f32 0.5, %v1838_v52  ;;  %v1839_v55 = vadd.f32 %v1831_v54, %v1785_v50 }
0x216c   :  { %v1833_v58 = vpop.f32.mrf.mxu1 }
0x216d   :  { %3173 = vtanh.f32 %v1842_v56  ;;  %v1843_v11 = vmul.f32 %v1839_v55, %v3456_v4  ;;  %v1840_v59 = vadd.f32 %v1833_v58, %v1786_v53 }
0x216e   :  { %v1835_v60 = vpop.f32.mrf.mxu1 }
0x216f   :  { %3175 = vtanh.f32 %v1843_v11  ;;  %v1844_v61 = vmul.f32 0.5, %v1840_v59  ;;  %v1841_v13 = vadd.f32 %v1835_v60, %v1787_v57 }
0x2171   :  { %3177 = vtanh.f32 %v1844_v61  ;;  %v1845_v62 = vmul.f32 %v1841_v13, %v3456_v4 }
0x2173   :  { %3179 = vtanh.f32 %v1845_v62 }
0x217a   :  { %v3174_v14 = vpop.eup %3173 }
0x217b   :  { %v1850_v63 = vmul.f32 0.5, %v3174_v14 }
0x217c   :  { %v3176_v15 = vpop.eup %3175 }
0x217d   :  { %v1851_v16 = vmul.f32 %v3176_v15, %v3456_v4  ;;  %v1854_v1 = vadd.f32 0.5, %v1850_v63 }
0x217e   :  { %v3178_v18 = vpop.eup %3177 }
0x217f   :  { %v1852_v19 = vmul.f32 0.5, %v3178_v18  ;;  %v1855_v20 = vadd.f32 %v1851_v16, %v3461_v17  ;;  %v1858_v8 = vmul.f32 %v1854_v1, %v3854_v35  ;;  %v1877_v35 = vld [vmem:[#allocation2 + $0x130] sm:$0xff] }
0x2180   :  { %v3180_v0 = vpop.eup %3179  ;;  %v1879_v29 = vunpack.c.l.bf16 %v1877_v35  ;;  %v1880_v41 = vunpack.c.h.bf16 %v1877_v35 }
0x2181   :  { %v1860_v2 = vmul.f32 %v1855_v20, %v1854_v1  ;;  %v1853_v3 = vmul.f32 %v3180_v0, %v3456_v4  ;;  %v1856_v5 = vadd.f32 0.5, %v1852_v19 }
0x2183   :  { %1864 = vrot.lane.b32.xlu0 %v1860_v2, %s3410_s0  ;;  %v1857_v6 = vadd.f32 %v1853_v3, %v3461_v17  ;;  %v1859_v10 = vmul.f32 %v1856_v5, %v3857_v37  ;;  %v1878_v37 = vld [vmem:[#allocation2 + $0x138] sm:$0xff] }
0x2184   :  { %v1881_v43 = vunpack.c.l.bf16 %v1878_v37  ;;  %v1882_v30 = vunpack.c.h.bf16 %v1878_v37 }
0x2185   :  { %v1861_v7 = vmul.f32 %v1857_v6, %v1856_v5 }
0x2187   :  { %1866 = vrot.lane.b32.xlu1 %v1861_v7, %s3410_s0 }
0x21f5   :  { %v1865_v9 = vpop.permute.xlu0 %1864 }
0x21f6   :  { %v1870_v12 = vadd.f32 %v1865_v9, %v1858_v8 }
0x21f8   :  { %3181 = vtanh.f32 %v1870_v12 }
0x21f9   :  { %v1867_v22 = vpop.permute.xlu1 %1866 }
0x21fa   :  { %v1871_v21 = vadd.f32 %v1867_v22, %v1859_v10 }
0x21fc   :  { %3183 = vtanh.f32 %v1871_v21 }
0x2205   :  { %v3182_v23 = vpop.eup %3181 }
0x2206   :  { %v1874_v25 = vmul.f32 %v3182_v23, %v1855_v20 }
0x2209   :  { %v3184_v24 = vpop.eup %3183 }
0x220a   :  { %v1875_v26 = vmul.f32 %v3184_v24, %v1857_v6 }
0x220c   :  { %v1883_v27 = vpack.c.bf16 %v1875_v26, %v1874_v25 }
0x220e   :  { %1885 = vrot.lane.b32.xlu0 %v1883_v27, %s3410_s0 }
0x2280   :  { %v1886_v28 = vpop.permute.xlu0 %1885 }
0x2281   :  { %2895 = vmatmul.mubr.msk.bf16.vlgmr.msra.gmra.mxu0 %vm168_vm1, %v1886_v28 }
0x2282   :  { %2089 = vmatpush1.bf16.msra.mxu0 %v3862_v32  ;;  %2112 = vmatprep.mubr.bf16.mxu0 %v3409_v34 }
0x2283   :  { %2090 = vmatprep.subr.bf16.mxu0 %v3866_v33 }
0x2286   :  { %2091 = vmatpush1.bf16.msra.mxu0 %v3869_v46 }
0x2287   :  { %2092 = vmatprep.subr.bf16.mxu0 %v3872_v36 }
0x228a   :  { %2093 = vmatpush1.bf16.msra.mxu0 %v3875_v38 }
0x228b   :  { %2094 = vmatprep.subr.bf16.mxu0 %v3878_v39 }
0x228e   :  { %2095 = vmatpush1.bf16.msra.mxu0 %v3881_v48 }
0x228f   :  { %2278 = vmatprep.subr.bf16.mxu0 %v3884_v40 }
0x2341   :  { %v1924_v31 = vpop.f32.mrf.mxu0 }
0x2342   :  { %v1933_v42 = vadd.f32 %v1924_v31, %v1879_v29 }
0x2343   :  { %v1926_v44 = vpop.f32.mrf.mxu0 }
0x2344   :  { %v1937_v45 = vmul.f32 0.5, %v1933_v42  ;;  %v1934_v47 = vadd.f32 %v1926_v44, %v1880_v41 }
0x2345   :  { %v1928_v49 = vpop.f32.mrf.mxu0 }
0x2346   :  { %3185 = vtanh.f32 %v1937_v45  ;;  %v1938_v50 = vmul.f32 %v1934_v47, %v3456_v4  ;;  %v1935_v51 = vadd.f32 %v1928_v49, %v1881_v43 }
0x2347   :  { %v1930_v52 = vpop.f32.mrf.mxu0 }
0x2348   :  { %3187 = vtanh.f32 %v1938_v50  ;;  %v1939_v53 = vmul.f32 0.5, %v1935_v51  ;;  %v1936_v54 = vadd.f32 %v1930_v52, %v1882_v30 }
0x234a   :  { %3189 = vtanh.f32 %v1939_v53  ;;  %v1940_v56 = vmul.f32 %v1936_v54, %v3456_v4 }
0x234c   :  { %3191 = vtanh.f32 %v1940_v56 }
0x2353   :  { %v3186_v55 = vpop.eup %3185 }
0x2354   :  { %v1945_v57 = vmul.f32 0.5, %v3186_v55 }
0x2355   :  { %v3188_v58 = vpop.eup %3187 }
0x2356   :  { %v1946_v11 = vmul.f32 %v3188_v58, %v3456_v4  ;;  %v1949_v60 = vadd.f32 0.5, %v1945_v57 }
0x2357   :  { %v3190_v59 = vpop.eup %3189 }
0x2358   :  { %v1947_v61 = vmul.f32 0.5, %v3190_v59  ;;  %v1950_v13 = vadd.f32 %v1946_v11, %v3461_v17  ;;  %v1953_v1 = vmul.f32 %v1949_v60, %v1870_v12  ;;  %v1972_v12 = vld [vmem:[#allocation2 + $0x140] sm:$0xff] }
0x2359   :  { %v3192_v62 = vpop.eup %3191  ;;  %v1974_v22 = vunpack.c.l.bf16 %v1972_v12  ;;  %v1975_v23 = vunpack.c.h.bf16 %v1972_v12 }
0x235a   :  { %v1955_v14 = vmul.f32 %v1950_v13, %v1949_v60  ;;  %v1948_v63 = vmul.f32 %v3192_v62, %v3456_v4  ;;  %v1951_v15 = vadd.f32 0.5, %v1947_v61 }
0x235c   :  { %1959 = vrot.lane.b32.xlu1 %v1955_v14, %s3410_s0  ;;  %v1952_v16 = vadd.f32 %v1948_v63, %v3461_v17  ;;  %v1954_v0 = vmul.f32 %v1951_v15, %v1871_v21  ;;  %v1973_v21 = vld [vmem:[#allocation2 + $0x148] sm:$0xff] }
0x235d   :  { %v1976_v26 = vunpack.c.l.bf16 %v1973_v21  ;;  %v1977_v29 = vunpack.c.h.bf16 %v1973_v21 }
0x235e   :  { %v1956_v18 = vmul.f32 %v1952_v16, %v1951_v15 }
0x2360   :  { %1961 = vrot.lane.b32.xlu0 %v1956_v18, %s3410_s0 }
0x23ce   :  { %v1960_v19 = vpop.permute.xlu1 %1959 }
0x23cf   :  { %v1965_v20 = vadd.f32 %v1960_v19, %v1953_v1 }
0x23d1   :  { %3193 = vtanh.f32 %v1965_v20 }
0x23d2   :  { %v1962_v2 = vpop.permute.xlu0 %1961 }
0x23d3   :  { %v1966_v3 = vadd.f32 %v1962_v2, %v1954_v0 }
0x23d5   :  { %3195 = vtanh.f32 %v1966_v3 }
0x23de   :  { %v3194_v5 = vpop.eup %3193 }
0x23df   :  { %v1969_v7 = vmul.f32 %v3194_v5, %v1950_v13 }
0x23e2   :  { %v3196_v6 = vpop.eup %3195 }
0x23e3   :  { %v1970_v8 = vmul.f32 %v3196_v6, %v1952_v16 }
0x23e5   :  { %v1978_v9 = vpack.c.bf16 %v1970_v8, %v1969_v7 }
0x23e7   :  { %1980 = vrot.lane.b32.xlu1 %v1978_v9, %s3410_s0 }
0x2459   :  { %v1981_v10 = vpop.permute.xlu1 %1980 }
0x245a   :  { %2896 = vmatmul.mubr.msk.bf16.vlgmr.msra.gmra.mxu1 %vm168_vm1, %v1981_v10 }
0x245b   :  { %2184 = vmatpush1.bf16.msra.mxu1 %v3862_v32  ;;  %2207 = vmatprep.mubr.bf16.mxu1 %v3409_v34 }
0x245c   :  { %2185 = vmatprep.subr.bf16.mxu1 %v3866_v33 }
0x245f   :  { %2186 = vmatpush1.bf16.msra.mxu1 %v3869_v46 }
0x2460   :  { %2187 = vmatprep.subr.bf16.mxu1 %v3872_v36 }
0x2463   :  { %2188 = vmatpush1.bf16.msra.mxu1 %v3875_v38 }
0x2464   :  { %2189 = vmatprep.subr.bf16.mxu1 %v3878_v39 }
0x2467   :  { %2190 = vmatpush1.bf16.msra.mxu1 %v3881_v48 }
0x2468   :  { %2373 = vmatprep.subr.bf16.mxu1 %v3884_v40 }
0x251a   :  { %v2019_v24 = vpop.f32.mrf.mxu1 }
0x251b   :  { %v2028_v25 = vadd.f32 %v2019_v24, %v1974_v22 }
0x251c   :  { %v2021_v27 = vpop.f32.mrf.mxu1 }
0x251d   :  { %v2032_v28 = vmul.f32 0.5, %v2028_v25  ;;  %v2029_v35 = vadd.f32 %v2021_v27, %v1975_v23 }
0x251e   :  { %v2023_v37 = vpop.f32.mrf.mxu1 }
0x251f   :  { %3197 = vtanh.f32 %v2032_v28  ;;  %v2033_v41 = vmul.f32 %v2029_v35, %v3456_v4  ;;  %v2030_v31 = vadd.f32 %v2023_v37, %v1976_v26 }
0x2520   :  { %v2025_v42 = vpop.f32.mrf.mxu1 }
0x2521   :  { %3199 = vtanh.f32 %v2033_v41  ;;  %v2034_v43 = vmul.f32 0.5, %v2030_v31  ;;  %v2031_v44 = vadd.f32 %v2025_v42, %v1977_v29 }
0x2523   :  { %3201 = vtanh.f32 %v2034_v43  ;;  %v2035_v45 = vmul.f32 %v2031_v44, %v3456_v4 }
0x2525   :  { %3203 = vtanh.f32 %v2035_v45 }
0x252c   :  { %v3198_v47 = vpop.eup %3197 }
0x252d   :  { %v2040_v30 = vmul.f32 0.5, %v3198_v47 }
0x252e   :  { %v3200_v49 = vpop.eup %3199 }
0x252f   :  { %v2041_v50 = vmul.f32 %v3200_v49, %v3456_v4  ;;  %v2044_v52 = vadd.f32 0.5, %v2040_v30 }
0x2530   :  { %v3202_v51 = vpop.eup %3201 }
0x2531   :  { %v2042_v53 = vmul.f32 0.5, %v3202_v51  ;;  %v2045_v54 = vadd.f32 %v2041_v50, %v3461_v17  ;;  %v2048_v60 = vmul.f32 %v2044_v52, %v1965_v20  ;;  %v2067_v20 = vld [vmem:[#allocation2 + $0x150] sm:$0xff] }
0x2532   :  { %v3204_v56 = vpop.eup %3203  ;;  %v2069_v2 = vunpack.c.l.bf16 %v2067_v20  ;;  %v2070_v5 = vunpack.c.h.bf16 %v2067_v20 }
0x2533   :  { %v2050_v55 = vmul.f32 %v2045_v54, %v2044_v52  ;;  %v2043_v57 = vmul.f32 %v3204_v56, %v3456_v4  ;;  %v2046_v58 = vadd.f32 0.5, %v2042_v53 }
0x2535   :  { %2054 = vrot.lane.b32.xlu0 %v2050_v55, %s3410_s0  ;;  %v2047_v11 = vadd.f32 %v2043_v57, %v3461_v17  ;;  %v2049_v62 = vmul.f32 %v2046_v58, %v1966_v3  ;;  %v2068_v3 = vld [vmem:[#allocation2 + $0x158] sm:$0xff] }
0x2536   :  { %v2071_v8 = vunpack.c.l.bf16 %v2068_v3  ;;  %v2072_v22 = vunpack.c.h.bf16 %v2068_v3 }
0x2537   :  { %v2051_v59 = vmul.f32 %v2047_v11, %v2046_v58 }
0x2539   :  { %2056 = vrot.lane.b32.xlu1 %v2051_v59, %s3410_s0 }
0x25a7   :  { %v2055_v61 = vpop.permute.xlu0 %2054 }
0x25a8   :  { %v2060_v13 = vadd.f32 %v2055_v61, %v2048_v60 }
0x25aa   :  { %3205 = vtanh.f32 %v2060_v13 }
0x25ab   :  { %v2057_v14 = vpop.permute.xlu1 %2056 }
0x25ac   :  { %v2061_v63 = vadd.f32 %v2057_v14, %v2049_v62 }
0x25ae   :  { %3207 = vtanh.f32 %v2061_v63 }
0x25b7   :  { %v3206_v15 = vpop.eup %3205 }
0x25b8   :  { %v2064_v18 = vmul.f32 %v3206_v15, %v2045_v54 }
0x25bb   :  { %v3208_v16 = vpop.eup %3207 }
0x25bc   :  { %v2065_v1 = vmul.f32 %v3208_v16, %v2047_v11 }
0x25be   :  { %v2073_v19 = vpack.c.bf16 %v2065_v1, %v2064_v18 }
0x25c0   :  { %2075 = vrot.lane.b32.xlu0 %v2073_v19, %s3410_s0 }
0x2632   :  { %v2076_v0 = vpop.permute.xlu0 %2075 }
0x2633   :  { %2897 = vmatmul.mubr.msk.bf16.vlgmr.msra.gmra.mxu0 %vm168_vm1, %v2076_v0 }
0x2634   :  { %2279 = vmatpush1.bf16.msra.mxu0 %v3862_v32  ;;  %2302 = vmatprep.mubr.bf16.mxu0 %v3409_v34 }
0x2635   :  { %2280 = vmatprep.subr.bf16.mxu0 %v3866_v33 }
0x2638   :  { %2281 = vmatpush1.bf16.msra.mxu0 %v3869_v46 }
0x2639   :  { %2282 = vmatprep.subr.bf16.mxu0 %v3872_v36 }
0x263c   :  { %2283 = vmatpush1.bf16.msra.mxu0 %v3875_v38 }
0x263d   :  { %2284 = vmatprep.subr.bf16.mxu0 %v3878_v39 }
0x2640   :  { %2285 = vmatpush1.bf16.msra.mxu0 %v3881_v48 }
0x2641   :  { %2468 = vmatprep.subr.bf16.mxu0 %v3884_v40 }
0x26f3   :  { %v2114_v6 = vpop.f32.mrf.mxu0 }
0x26f4   :  { %v2123_v7 = vadd.f32 %v2114_v6, %v2069_v2 }
0x26f5   :  { %v2116_v9 = vpop.f32.mrf.mxu0 }
0x26f6   :  { %v2127_v10 = vmul.f32 0.5, %v2123_v7  ;;  %v2124_v12 = vadd.f32 %v2116_v9, %v2070_v5 }
0x26f7   :  { %v2118_v21 = vpop.f32.mrf.mxu0 }
0x26f8   :  { %3209 = vtanh.f32 %v2127_v10  ;;  %v2128_v23 = vmul.f32 %v2124_v12, %v3456_v4  ;;  %v2125_v24 = vadd.f32 %v2118_v21, %v2071_v8 }
0x26f9   :  { %v2120_v25 = vpop.f32.mrf.mxu0 }
0x26fa   :  { %3211 = vtanh.f32 %v2128_v23  ;;  %v2129_v26 = vmul.f32 0.5, %v2125_v24  ;;  %v2126_v27 = vadd.f32 %v2120_v25, %v2072_v22 }
0x26fc   :  { %3213 = vtanh.f32 %v2129_v26  ;;  %v2130_v28 = vmul.f32 %v2126_v27, %v3456_v4 }
0x26fe   :  { %3215 = vtanh.f32 %v2130_v28 }
0x2705   :  { %v3210_v35 = vpop.eup %3209 }
0x2706   :  { %v2135_v29 = vmul.f32 0.5, %v3210_v35 }
0x2707   :  { %v3212_v37 = vpop.eup %3211 }
0x2708   :  { %v2136_v41 = vmul.f32 %v3212_v37, %v3456_v4  ;;  %v2139_v42 = vadd.f32 0.5, %v2135_v29 }
0x2709   :  { %v3214_v31 = vpop.eup %3213 }
0x270a   :  { %v2137_v43 = vmul.f32 0.5, %v3214_v31  ;;  %v2140_v44 = vadd.f32 %v2136_v41, %v3461_v17  ;;  %v2143_v52 = vmul.f32 %v2139_v42, %v2060_v13  ;;  %v2162_v13 = vld [vmem:[#allocation2 + $0x160] sm:$0xff] }
0x270b   :  { %v3216_v45 = vpop.eup %3215  ;;  %v2164_v14 = vunpack.c.l.bf16 %v2162_v13  ;;  %v2165_v15 = vunpack.c.h.bf16 %v2162_v13 }
0x270c   :  { %v2145_v47 = vmul.f32 %v2140_v44, %v2139_v42  ;;  %v2138_v30 = vmul.f32 %v3216_v45, %v3456_v4  ;;  %v2141_v49 = vadd.f32 0.5, %v2137_v43 }
0x270e   :  { %2149 = vrot.lane.b32.xlu1 %v2145_v47, %s3410_s0  ;;  %v2142_v50 = vadd.f32 %v2138_v30, %v3461_v17  ;;  %v2144_v56 = vmul.f32 %v2141_v49, %v2061_v63  ;;  %v2163_v63 = vld [vmem:[#allocation2 + $0x168] sm:$0xff] }
0x270f   :  { %v2166_v1 = vunpack.c.l.bf16 %v2163_v63  ;;  %v2167_v2 = vunpack.c.h.bf16 %v2163_v63 }
0x2710   :  { %v2146_v51 = vmul.f32 %v2142_v50, %v2141_v49 }
0x2712   :  { %2151 = vrot.lane.b32.xlu0 %v2146_v51, %s3410_s0 }
0x2780   :  { %v2150_v53 = vpop.permute.xlu1 %2149 }
0x2781   :  { %v2155_v54 = vadd.f32 %v2150_v53, %v2143_v52 }
0x2783   :  { %3217 = vtanh.f32 %v2155_v54 }
0x2784   :  { %v2152_v55 = vpop.permute.xlu0 %2151 }
0x2785   :  { %v2156_v57 = vadd.f32 %v2152_v55, %v2144_v56 }
0x2787   :  { %3219 = vtanh.f32 %v2156_v57 }
0x2790   :  { %v3218_v58 = vpop.eup %3217 }
0x2791   :  { %v2159_v59 = vmul.f32 %v3218_v58, %v2140_v44 }
0x2794   :  { %v3220_v11 = vpop.eup %3219 }
0x2795   :  { %v2160_v60 = vmul.f32 %v3220_v11, %v2142_v50 }
0x2797   :  { %v2168_v61 = vpack.c.bf16 %v2160_v60, %v2159_v59 }
0x2799   :  { %2170 = vrot.lane.b32.xlu1 %v2168_v61, %s3410_s0 }
0x280b   :  { %v2171_v62 = vpop.permute.xlu1 %2170 }
0x280c   :  { %2898 = vmatmul.mubr.msk.bf16.vlgmr.msra.gmra.mxu1 %vm168_vm1, %v2171_v62 }
0x280d   :  { %2374 = vmatpush1.bf16.msra.mxu1 %v3862_v32  ;;  %2397 = vmatprep.mubr.bf16.mxu1 %v3409_v34 }
0x280e   :  { %2375 = vmatprep.subr.bf16.mxu1 %v3866_v33 }
0x2811   :  { %2376 = vmatpush1.bf16.msra.mxu1 %v3869_v46 }
0x2812   :  { %2377 = vmatprep.subr.bf16.mxu1 %v3872_v36 }
0x2815   :  { %2378 = vmatpush1.bf16.msra.mxu1 %v3875_v38 }
0x2816   :  { %2379 = vmatprep.subr.bf16.mxu1 %v3878_v39 }
0x2819   :  { %2380 = vmatpush1.bf16.msra.mxu1 %v3881_v48 }
0x281a   :  { %2563 = vmatprep.subr.bf16.mxu1 %v3884_v40 }
0x28cc   :  { %v2209_v16 = vpop.f32.mrf.mxu1 }
0x28cd   :  { %v2218_v18 = vadd.f32 %v2209_v16, %v2164_v14 }
0x28ce   :  { %v2211_v19 = vpop.f32.mrf.mxu1 }
0x28cf   :  { %v2222_v0 = vmul.f32 0.5, %v2218_v18  ;;  %v2219_v20 = vadd.f32 %v2211_v19, %v2165_v15 }
0x28d0   :  { %v2213_v3 = vpop.f32.mrf.mxu1 }
0x28d1   :  { %3221 = vtanh.f32 %v2222_v0  ;;  %v2223_v5 = vmul.f32 %v2219_v20, %v3456_v4  ;;  %v2220_v6 = vadd.f32 %v2213_v3, %v2166_v1 }
0x28d2   :  { %v2215_v7 = vpop.f32.mrf.mxu1 }
0x28d3   :  { %3223 = vtanh.f32 %v2223_v5  ;;  %v2224_v8 = vmul.f32 0.5, %v2220_v6  ;;  %v2221_v9 = vadd.f32 %v2215_v7, %v2167_v2 }
0x28d5   :  { %3225 = vtanh.f32 %v2224_v8  ;;  %v2225_v10 = vmul.f32 %v2221_v9, %v3456_v4 }
0x28d7   :  { %3227 = vtanh.f32 %v2225_v10 }
0x28de   :  { %v3222_v12 = vpop.eup %3221 }
0x28df   :  { %v2230_v22 = vmul.f32 0.5, %v3222_v12 }
0x28e0   :  { %v3224_v21 = vpop.eup %3223 }
0x28e1   :  { %v2231_v23 = vmul.f32 %v3224_v21, %v3456_v4  ;;  %v2234_v25 = vadd.f32 0.5, %v2230_v22 }
0x28e2   :  { %v3226_v24 = vpop.eup %3225 }
0x28e3   :  { %v2232_v26 = vmul.f32 0.5, %v3226_v24  ;;  %v2235_v27 = vadd.f32 %v2231_v23, %v3461_v17  ;;  %v2238_v42 = vmul.f32 %v2234_v25, %v2155_v54  ;;  %v2257_v54 = vld [vmem:[#allocation2 + $0x170] sm:$0xff] }
0x28e4   :  { %v3228_v28 = vpop.eup %3227  ;;  %v2259_v55 = vunpack.c.l.bf16 %v2257_v54  ;;  %v2260_v58 = vunpack.c.h.bf16 %v2257_v54 }
0x28e5   :  { %v2240_v35 = vmul.f32 %v2235_v27, %v2234_v25  ;;  %v2233_v29 = vmul.f32 %v3228_v28, %v3456_v4  ;;  %v2236_v37 = vadd.f32 0.5, %v2232_v26 }
0x28e7   :  { %2244 = vrot.lane.b32.xlu0 %v2240_v35, %s3410_s0  ;;  %v2237_v41 = vadd.f32 %v2233_v29, %v3461_v17  ;;  %v2239_v45 = vmul.f32 %v2236_v37, %v2156_v57  ;;  %v2258_v57 = vld [vmem:[#allocation2 + $0x178] sm:$0xff] }
0x28e8   :  { %v2261_v60 = vunpack.c.l.bf16 %v2258_v57  ;;  %v2262_v14 = vunpack.c.h.bf16 %v2258_v57 }
0x28e9   :  { %v2241_v31 = vmul.f32 %v2237_v41, %v2236_v37 }
0x28eb   :  { %2246 = vrot.lane.b32.xlu1 %v2241_v31, %s3410_s0 }
0x2959   :  { %v2245_v43 = vpop.permute.xlu0 %2244 }
0x295a   :  { %v2250_v44 = vadd.f32 %v2245_v43, %v2238_v42 }
0x295c   :  { %3229 = vtanh.f32 %v2250_v44 }
0x295d   :  { %v2247_v47 = vpop.permute.xlu1 %2246 }
0x295e   :  { %v2251_v30 = vadd.f32 %v2247_v47, %v2239_v45  ;;  %v2353_v47 = vld [vmem:[#allocation2 + $0x188] sm:$0xff] }
0x295f   :  { %v2357_v54 = vunpack.c.h.bf16 %v2353_v47 }
0x2960   :  { %3231 = vtanh.f32 %v2251_v30 }
0x2969   :  { %v3230_v49 = vpop.eup %3229 }
0x296a   :  { %v2254_v51 = vmul.f32 %v3230_v49, %v2235_v27 }
0x296d   :  { %v3232_v50 = vpop.eup %3231 }
0x296e   :  { %v2255_v52 = vmul.f32 %v3232_v50, %v2237_v41 }
0x2970   :  { %v2263_v53 = vpack.c.bf16 %v2255_v52, %v2254_v51  ;;  %v2356_v51 = vunpack.c.l.bf16 %v2353_v47 }
0x2972   :  { %2265 = vrot.lane.b32.xlu0 %v2263_v53, %s3410_s0 }
0x29e4   :  { %v2266_v56 = vpop.permute.xlu0 %2265 }
0x29e5   :  { %2899 = vmatmul.mubr.msk.bf16.vlgmr.msra.gmra.mxu0 %vm168_vm1, %v2266_v56 }
0x29e6   :  { %2469 = vmatpush1.bf16.msra.mxu0 %v3862_v32  ;;  %2492 = vmatprep.mubr.bf16.mxu0 %v3409_v34 }
0x29e7   :  { %2470 = vmatprep.subr.bf16.mxu0 %v3866_v33 }
0x29ea   :  { %2471 = vmatpush1.bf16.msra.mxu0 %v3869_v46 }
0x29eb   :  { %2472 = vmatprep.subr.bf16.mxu0 %v3872_v36 }
0x29ee   :  { %2473 = vmatpush1.bf16.msra.mxu0 %v3875_v38 }
0x29ef   :  { %2474 = vmatprep.subr.bf16.mxu0 %v3878_v39 }
0x29f2   :  { %2475 = vmatpush1.bf16.msra.mxu0 %v3881_v48 }
0x29f3   :  { %2658 = vmatprep.subr.bf16.mxu0 %v3884_v40 }
0x2aa5   :  { %v2304_v11 = vpop.f32.mrf.mxu0 }
0x2aa6   :  { %v2313_v59 = vadd.f32 %v2304_v11, %v2259_v55 }
0x2aa7   :  { %v2306_v61 = vpop.f32.mrf.mxu0 }
0x2aa8   :  { %v2317_v62 = vmul.f32 0.5, %v2313_v59  ;;  %v2314_v13 = vadd.f32 %v2306_v61, %v2260_v58 }
0x2aa9   :  { %v2308_v63 = vpop.f32.mrf.mxu0 }
0x2aaa   :  { %3233 = vtanh.f32 %v2317_v62  ;;  %v2318_v15 = vmul.f32 %v2314_v13, %v3456_v4  ;;  %v2315_v16 = vadd.f32 %v2308_v63, %v2261_v60 }
0x2aab   :  { %v2310_v18 = vpop.f32.mrf.mxu0 }
0x2aac   :  { %3235 = vtanh.f32 %v2318_v15  ;;  %v2319_v1 = vmul.f32 0.5, %v2315_v16  ;;  %v2316_v40 = vadd.f32 %v2310_v18, %v2262_v14 }
0x2aae   :  { %3237 = vtanh.f32 %v2319_v1  ;;  %v2320_v19 = vmul.f32 %v2316_v40, %v3456_v4 }
0x2ab0   :  { %3239 = vtanh.f32 %v2320_v19 }
0x2ab7   :  { %v3234_v0 = vpop.eup %3233 }
0x2ab8   :  { %v2325_v20 = vmul.f32 0.5, %v3234_v0 }
0x2ab9   :  { %v3236_v2 = vpop.eup %3235 }
0x2aba   :  { %v2326_v3 = vmul.f32 %v3236_v2, %v3456_v4  ;;  %v2329_v6 = vadd.f32 0.5, %v2325_v20 }
0x2abb   :  { %v3238_v5 = vpop.eup %3237 }
0x2abc   :  { %v2327_v7 = vmul.f32 0.5, %v3238_v5  ;;  %v2330_v8 = vadd.f32 %v2326_v3, %v3461_v17  ;;  %v2333_v24 = vmul.f32 %v2329_v6, %v2250_v44  ;;  %v2352_v44 = vld [vmem:[#allocation2 + $0x180] sm:$0xff] }
0x2abd   :  { %v3240_v9 = vpop.eup %3239  ;;  %v2354_v45 = vunpack.c.l.bf16 %v2352_v44 }
0x2abe   :  { %v2335_v10 = vmul.f32 %v2330_v8, %v2329_v6  ;;  %v2328_v12 = vmul.f32 %v3240_v9, %v3456_v4  ;;  %v2331_v22 = vadd.f32 0.5, %v2327_v7 }
0x2ac0   :  { %2339 = vrot.lane.b32.xlu1 %v2335_v10, %s3410_s0  ;;  %v2332_v21 = vadd.f32 %v2328_v12, %v3461_v17  ;;  %v2334_v27 = vmul.f32 %v2331_v22, %v2251_v30  ;;  %v2355_v30 = vunpack.c.h.bf16 %v2352_v44 }
0x2ac2   :  { %v2336_v23 = vmul.f32 %v2332_v21, %v2331_v22 }
0x2ac4   :  { %2341 = vrot.lane.b32.xlu0 %v2336_v23, %s3410_s0 }
0x2b32   :  { %v2340_v25 = vpop.permute.xlu1 %2339 }
0x2b33   :  { %v2345_v26 = vadd.f32 %v2340_v25, %v2333_v24 }
0x2b35   :  { %3241 = vtanh.f32 %v2345_v26 }
0x2b36   :  { %v2342_v28 = vpop.permute.xlu0 %2341 }
0x2b37   :  { %v2346_v35 = vadd.f32 %v2342_v28, %v2334_v27  ;;  %v2448_v28 = vld [vmem:[#allocation2 + $0x198] sm:$0xff] }
0x2b39   :  { %3243 = vtanh.f32 %v2346_v35 }
0x2b42   :  { %v3242_v29 = vpop.eup %3241 }
0x2b43   :  { %v2349_v41 = vmul.f32 %v3242_v29, %v2330_v8 }
0x2b46   :  { %v3244_v37 = vpop.eup %3243 }
0x2b47   :  { %v2350_v31 = vmul.f32 %v3244_v37, %v2332_v21  ;;  %v2451_v37 = vunpack.c.l.bf16 %v2448_v28 }
0x2b49   :  { %v2358_v42 = vpack.c.bf16 %v2350_v31, %v2349_v41  ;;  %v2452_v31 = vunpack.c.h.bf16 %v2448_v28 }
0x2b4b   :  { %2360 = vrot.lane.b32.xlu1 %v2358_v42, %s3410_s0 }
0x2bbd   :  { %v2361_v43 = vpop.permute.xlu1 %2360 }
0x2bbe   :  { %2900 = vmatmul.mubr.msk.bf16.vlgmr.msra.gmra.mxu1 %vm168_vm1, %v2361_v43 }
0x2bbf   :  { %2564 = vmatpush1.bf16.msra.mxu1 %v3862_v32  ;;  %2587 = vmatprep.mubr.bf16.mxu1 %v3409_v34 }
0x2bc0   :  { %2565 = vmatprep.subr.bf16.mxu1 %v3866_v33 }
0x2bc3   :  { %2566 = vmatpush1.bf16.msra.mxu1 %v3869_v46 }
0x2bc4   :  { %2567 = vmatprep.subr.bf16.mxu1 %v3872_v36 }
0x2bc7   :  { %2568 = vmatpush1.bf16.msra.mxu1 %v3875_v38 }
0x2bc8   :  { %2569 = vmatprep.subr.bf16.mxu1 %v3878_v39 }
0x2bcb   :  { %2570 = vmatpush1.bf16.msra.mxu1 %v3881_v48 }
0x2c7e   :  { %v2399_v49 = vpop.f32.mrf.mxu1 }
0x2c7f   :  { %v2408_v50 = vadd.f32 %v2399_v49, %v2354_v45 }
0x2c80   :  { %v2401_v52 = vpop.f32.mrf.mxu1 }
0x2c81   :  { %v2412_v53 = vmul.f32 0.5, %v2408_v50  ;;  %v2409_v56 = vadd.f32 %v2401_v52, %v2355_v30 }
0x2c82   :  { %v2403_v55 = vpop.f32.mrf.mxu1 }
0x2c83   :  { %3245 = vtanh.f32 %v2412_v53  ;;  %v2413_v57 = vmul.f32 %v2409_v56, %v3456_v4  ;;  %v2410_v58 = vadd.f32 %v2403_v55, %v2356_v51 }
0x2c84   :  { %v2405_v11 = vpop.f32.mrf.mxu1 }
0x2c85   :  { %3247 = vtanh.f32 %v2413_v57  ;;  %v2414_v59 = vmul.f32 0.5, %v2410_v58  ;;  %v2411_v60 = vadd.f32 %v2405_v11, %v2357_v54 }
0x2c87   :  { %3249 = vtanh.f32 %v2414_v59  ;;  %v2415_v61 = vmul.f32 %v2411_v60, %v3456_v4 }
0x2c89   :  { %3251 = vtanh.f32 %v2415_v61 }
0x2c90   :  { %v3246_v62 = vpop.eup %3245 }
0x2c91   :  { %v2420_v13 = vmul.f32 0.5, %v3246_v62 }
0x2c92   :  { %v3248_v14 = vpop.eup %3247 }
0x2c93   :  { %v2421_v63 = vmul.f32 %v3248_v14, %v3456_v4  ;;  %v2424_v16 = vadd.f32 0.5, %v2420_v13 }
0x2c94   :  { %v3250_v15 = vpop.eup %3249 }
0x2c95   :  { %v2422_v18 = vmul.f32 0.5, %v3250_v15  ;;  %v2425_v1 = vadd.f32 %v2421_v63, %v3461_v17  ;;  %v2428_v5 = vmul.f32 %v2424_v16, %v2345_v26  ;;  %v2447_v26 = vld [vmem:[#allocation2 + $0x190] sm:$0xff] }
0x2c96   :  { %v3252_v40 = vpop.eup %3251  ;;  %v2449_v27 = vunpack.c.l.bf16 %v2447_v26 }
0x2c97   :  { %v2430_v19 = vmul.f32 %v2425_v1, %v2424_v16  ;;  %v2423_v0 = vmul.f32 %v3252_v40, %v3456_v4  ;;  %v2426_v20 = vadd.f32 0.5, %v2422_v18  ;;  %v2542_v40 = vld [vmem:[#allocation2 + $0x1a0] sm:$0xff] }
0x2c99   :  { %2434 = vrot.lane.b32.xlu0 %v2430_v19, %s3410_s0  ;;  %v2427_v2 = vadd.f32 %v2423_v0, %v3461_v17  ;;  %v2429_v8 = vmul.f32 %v2426_v20, %v2346_v35  ;;  %v2450_v35 = vunpack.c.h.bf16 %v2447_v26  ;;  %v2544_v19 = vunpack.c.l.bf16 %v2542_v40  ;;  %v2543_v0 = vld [vmem:[#allocation2 + $0x1a8] sm:$0xff] }
0x2c9b   :  { %v2431_v3 = vmul.f32 %v2427_v2, %v2426_v20  ;;  %v2545_v20 = vunpack.c.h.bf16 %v2542_v40 }
0x2c9d   :  { %2436 = vrot.lane.b32.xlu1 %v2431_v3, %s3410_s0 }
0x2d0b   :  { %v2435_v6 = vpop.permute.xlu0 %2434 }
0x2d0c   :  { %v2440_v7 = vadd.f32 %v2435_v6, %v2428_v5  ;;  %v2546_v5 = vunpack.c.l.bf16 %v2543_v0 }
0x2d0e   :  { %3253 = vtanh.f32 %v2440_v7 }
0x2d0f   :  { %v2437_v9 = vpop.permute.xlu1 %2436 }
0x2d10   :  { %v2441_v10 = vadd.f32 %v2437_v9, %v2429_v8  ;;  %v2547_v9 = vunpack.c.h.bf16 %v2543_v0 }
0x2d12   :  { %3255 = vtanh.f32 %v2441_v10 }
0x2d1b   :  { %v3254_v12 = vpop.eup %3253 }
0x2d1c   :  { %v2444_v21 = vmul.f32 %v3254_v12, %v2425_v1 }
0x2d1f   :  { %v3256_v22 = vpop.eup %3255 }
0x2d20   :  { %v2445_v23 = vmul.f32 %v3256_v22, %v2427_v2 }
0x2d22   :  { %v2453_v24 = vpack.c.bf16 %v2445_v23, %v2444_v21 }
0x2d24   :  { %2455 = vrot.lane.b32.xlu0 %v2453_v24, %s3410_s0 }
0x2d96   :  { %v2456_v25 = vpop.permute.xlu0 %2455 }
0x2d97   :  { %2901 = vmatmul.mubr.msk.bf16.vlgmr.msra.gmra.mxu0 %vm168_vm1, %v2456_v25 }
0x2d98   :  { %2659 = vmatpush1.bf16.msra.mxu0 %v3862_v32  ;;  %2682 = vmatprep.mubr.bf16.mxu0 %v3409_v34 }
0x2d99   :  { %2660 = vmatprep.subr.bf16.mxu0 %v3866_v33 }
0x2d9c   :  { %2661 = vmatpush1.bf16.msra.mxu0 %v3869_v46 }
0x2d9d   :  { %2662 = vmatprep.subr.bf16.mxu0 %v3872_v36 }
0x2da0   :  { %2663 = vmatpush1.bf16.msra.mxu0 %v3875_v38 }
0x2da1   :  { %2664 = vmatprep.subr.bf16.mxu0 %v3878_v39 }
0x2da4   :  { %2665 = vmatpush1.bf16.msra.mxu0 %v3881_v48 }
0x2e57   :  { %v2494_v29 = vpop.f32.mrf.mxu0 }
0x2e58   :  { %v2503_v32 = vadd.f32 %v2494_v29, %v2449_v27 }
0x2e59   :  { %v2496_v34 = vpop.f32.mrf.mxu0 }
0x2e5a   :  { %v2507_v41 = vmul.f32 0.5, %v2503_v32  ;;  %v2504_v33 = vadd.f32 %v2496_v34, %v2450_v35 }
0x2e5b   :  { %v2498_v46 = vpop.f32.mrf.mxu0 }
0x2e5c   :  { %3257 = vtanh.f32 %v2507_v41  ;;  %v2508_v36 = vmul.f32 %v2504_v33, %v3456_v4  ;;  %v2505_v38 = vadd.f32 %v2498_v46, %v2451_v37 }
0x2e5d   :  { %v2500_v42 = vpop.f32.mrf.mxu0 }
0x2e5e   :  { %3259 = vtanh.f32 %v2508_v36  ;;  %v2509_v39 = vmul.f32 0.5, %v2505_v38  ;;  %v2506_v48 = vadd.f32 %v2500_v42, %v2452_v31 }
0x2e60   :  { %3261 = vtanh.f32 %v2509_v39  ;;  %v2510_v43 = vmul.f32 %v2506_v48, %v3456_v4 }
0x2e62   :  { %3263 = vtanh.f32 %v2510_v43 }
0x2e69   :  { %v3258_v44 = vpop.eup %3257 }
0x2e6a   :  { %v2515_v45 = vmul.f32 0.5, %v3258_v44 }
0x2e6b   :  { %v3260_v47 = vpop.eup %3259 }
0x2e6c   :  { %v2516_v30 = vmul.f32 %v3260_v47, %v3456_v4  ;;  %v2519_v50 = vadd.f32 0.5, %v2515_v45 }
0x2e6d   :  { %v3262_v49 = vpop.eup %3261 }
0x2e6e   :  { %v2517_v51 = vmul.f32 0.5, %v3262_v49  ;;  %v2520_v52 = vadd.f32 %v2516_v30, %v3461_v17  ;;  %v2523_v11 = vmul.f32 %v2519_v50, %v2440_v7 }
0x2e6f   :  { %v3264_v53 = vpop.eup %3263 }
0x2e70   :  { %v2525_v56 = vmul.f32 %v2520_v52, %v2519_v50  ;;  %v2518_v54 = vmul.f32 %v3264_v53, %v3456_v4  ;;  %v2521_v55 = vadd.f32 0.5, %v2517_v51  ;;  %v2637_v53 = vld [vmem:[#allocation2 + $0x1b0] sm:$0xff] }
0x2e72   :  { %2529 = vrot.lane.b32.xlu1 %v2525_v56, %s3410_s0  ;;  %v2522_v57 = vadd.f32 %v2518_v54, %v3461_v17  ;;  %v2524_v61 = vmul.f32 %v2521_v55, %v2441_v10  ;;  %v2639_v56 = vunpack.c.l.bf16 %v2637_v53  ;;  %v2638_v54 = vld [vmem:[#allocation2 + $0x1b8] sm:$0xff] }
0x2e74   :  { %v2526_v58 = vmul.f32 %v2522_v57, %v2521_v55  ;;  %v2640_v55 = vunpack.c.h.bf16 %v2637_v53 }
0x2e76   :  { %2531 = vrot.lane.b32.xlu0 %v2526_v58, %s3410_s0 }
0x2ee4   :  { %v2530_v59 = vpop.permute.xlu1 %2529 }
0x2ee5   :  { %v2535_v60 = vadd.f32 %v2530_v59, %v2523_v11  ;;  %v2641_v11 = vunpack.c.l.bf16 %v2638_v54 }
0x2ee7   :  { %3265 = vtanh.f32 %v2535_v60 }
0x2ee8   :  { %v2532_v62 = vpop.permute.xlu0 %2531 }
0x2ee9   :  { %v2536_v13 = vadd.f32 %v2532_v62, %v2524_v61  ;;  %v2642_v62 = vunpack.c.h.bf16 %v2638_v54 }
0x2eeb   :  { %3267 = vtanh.f32 %v2536_v13 }
0x2ef4   :  { %v3266_v14 = vpop.eup %3265 }
0x2ef5   :  { %v2539_v15 = vmul.f32 %v3266_v14, %v2520_v52 }
0x2ef8   :  { %v3268_v63 = vpop.eup %3267 }
0x2ef9   :  { %v2540_v16 = vmul.f32 %v3268_v63, %v2522_v57 }
0x2efb   :  { %v2548_v18 = vpack.c.bf16 %v2540_v16, %v2539_v15 }
0x2efd   :  { %2550 = vrot.lane.b32.xlu1 %v2548_v18, %s3410_s0 }
0x2f6f   :  { %v2551_v1 = vpop.permute.xlu1 %2550 }
0x2f70   :  { %2902 = vmatmul.mubr.msk.bf16.vlgmr.msra.gmra.mxu1 %vm168_vm1, %v2551_v1 }
0x3030   :  { %v2589_v2 = vpop.f32.mrf.mxu1 }
0x3031   :  { %v2598_v3 = vadd.f32 %v2589_v2, %v2544_v19 }
0x3032   :  { %v2591_v6 = vpop.f32.mrf.mxu1 }
0x3033   :  { %v2602_v7 = vmul.f32 0.5, %v2598_v3  ;;  %v2599_v8 = vadd.f32 %v2591_v6, %v2545_v20 }
0x3034   :  { %v2593_v10 = vpop.f32.mrf.mxu1 }
0x3035   :  { %3269 = vtanh.f32 %v2602_v7  ;;  %v2603_v12 = vmul.f32 %v2599_v8, %v3456_v4  ;;  %v2600_v22 = vadd.f32 %v2593_v10, %v2546_v5 }
0x3036   :  { %v2595_v21 = vpop.f32.mrf.mxu1 }
0x3037   :  { %3271 = vtanh.f32 %v2603_v12  ;;  %v2604_v23 = vmul.f32 0.5, %v2600_v22  ;;  %v2601_v24 = vadd.f32 %v2595_v21, %v2547_v9  ;;  %v2738_v21 = vld [vmem:[#allocation7 + $0x38] sm:$0xff] }
0x3038   :  { %2917 = vmatprep.subr.mxu1 %v2738_v21 }
0x3039   :  { %3273 = vtanh.f32 %v2604_v23  ;;  %v2605_v25 = vmul.f32 %v2601_v24, %v3456_v4  ;;  %v2737_v23 = vld [vmem:[#allocation7 + $0x30] sm:$0xff]  ;;  %2918 = vmatpush3.msra.mxu1 %v2738_v21  ;;  %v2736_v24 = vld [vmem:[#allocation7 + $0x28] sm:$0xff] }
0x303a   :  { %2919 = vmatprep.subr.mxu1 %v2737_v23 }
0x303b   :  { %3275 = vtanh.f32 %v2605_v25  ;;  %2920 = vmatpush3.msra.mxu1 %v2737_v23  ;;  %v2735_v25 = vld [vmem:[#allocation7 + $0x20] sm:$0xff] }
0x303c   :  { %2921 = vmatprep.subr.mxu1 %v2736_v24 }
0x303d   :  { %2922 = vmatpush3.msra.mxu1 %v2736_v24 }
0x303e   :  { %2923 = vmatprep.subr.mxu1 %v2735_v25 }
0x303f   :  { %2924 = vmatpush3.msra.mxu1 %v2735_v25 }
0x3042   :  { %v3270_v26 = vpop.eup %3269 }
0x3043   :  { %v2610_v27 = vmul.f32 0.5, %v3270_v26  ;;  %v2734_v26 = vld [vmem:[#allocation7 + $0x18] sm:$0xff] }
0x3044   :  { %v3272_v28 = vpop.eup %3271  ;;  %2925 = vmatprep.subr.mxu1 %v2734_v26 }
0x3045   :  { %v2611_v35 = vmul.f32 %v3272_v28, %v3456_v4  ;;  %v2614_v32 = vadd.f32 0.5, %v2610_v27  ;;  %2926 = vmatpush3.msra.mxu1 %v2734_v26 }
0x3046   :  { %v3274_v29 = vpop.eup %3273 }
0x3047   :  { %v2612_v37 = vmul.f32 0.5, %v3274_v29  ;;  %v2615_v34 = vadd.f32 %v2611_v35, %v3461_v17  ;;  %v2618_v42 = vmul.f32 %v2614_v32, %v2535_v60 }
0x3048   :  { %v3276_v41 = vpop.eup %3275 }
0x3049   :  { %v2620_v33 = vmul.f32 %v2615_v34, %v2614_v32  ;;  %v2613_v31 = vmul.f32 %v3276_v41, %v3456_v4  ;;  %v2616_v46 = vadd.f32 0.5, %v2612_v37  ;;  %v2732_v37 = vld [vmem:[#allocation7 + $0x8] sm:$0xff] }
0x304b   :  { %2624 = vrot.lane.b32.xlu0 %v2620_v33, %s3410_s0  ;;  %v2617_v36 = vadd.f32 %v2613_v31, %v3461_v17  ;;  %v2619_v43 = vmul.f32 %v2616_v46, %v2536_v13 }
0x304d   :  { %v2621_v38 = vmul.f32 %v2617_v36, %v2616_v46 }
0x304f   :  { %2626 = vrot.lane.b32.xlu1 %v2621_v38, %s3410_s0 }
0x30bd   :  { %v2625_v39 = vpop.permute.xlu0 %2624 }
0x30be   :  { %v4038_v48 = vadd.f32 %v2625_v39, %v2618_v42  ;;  %v2904_v42 = vld [vmem:[%s4072_s3] ss:$0 sm:$0xff]  ;;  %s3411_s3 = smov [#allocation8]  }
0x30bf   :  { %s2856_s6 = sshll.u32 %s3411_s3, 4  ;;  %s2857_s6 = int_to_ptr.vmem [resolvable:$true] %s2856_s6 }
0x30c0   :  { %3277 = vtanh.f32 %v4038_v48  ;;  %s3377_s7 = scalar_lea.vmem %s2857_s6, 256  ;;  %p3382_p2 = scmp.lt.s32.totalorder %s2857_s6, %s2857_s6 }
0x30c1   :  { %v2627_v44 = vpop.permute.xlu1 %2626  ;;  %p3378_p1 = scmp.ne.s32.totalorder %s2857_s6, %s3377_s7  ;;  %p3383_p3 = scmp.lt.s32.totalorder %s3377_s7, %s3377_s7 }
0x30c2   :  { %v4041_v45 = vadd.f32 %v2627_v44, %v2619_v43 }
0x30c3   :  { %p3384_p4 = por %p3383_p3, %p3382_p2 }
0x30c4   :  { %3279 = vtanh.f32 %v4041_v45 }
0x30c5   :  { %p3385_p5 = pnand %p3384_p4, %p3378_p1 }
0x30cd   :  { %v3278_v47 = vpop.eup %3277 }
0x30ce   :  { %v2634_v49 = vmul.f32 %v3278_v47, %v2615_v34  ;;  %v2731_v34 = vld [vmem:[#allocation7] sm:$0xff] }
0x30d1   :  { %v3280_v30 = vpop.eup %3279 }
0x30d2   :  { %v2635_v50 = vmul.f32 %v3280_v30, %v2617_v36 }
0x30d4   :  { %v2643_v51 = vpack.c.bf16 %v2635_v50, %v2634_v49 }
0x30d6   :  { %2645 = vrot.lane.b32.xlu0 %v2643_v51, %s3410_s0 }
0x3148   :  { %v2646_v52 = vpop.permute.xlu0 %2645 }
0x3149   :  { %2903 = vmatmul.mubr.msk.bf16.vlgmr.msra.gmra.mxu0 %vm168_vm1, %v2646_v52 }
0x3209   :  { %v2684_v57 = vpop.f32.mrf.mxu0 }
0x320a   :  { %v2693_v58 = vadd.f32 %v2684_v57, %v2639_v56 }
0x320b   :  { %v2686_v59 = vpop.f32.mrf.mxu0 }
0x320c   :  { %v2697_v60 = vmul.f32 0.5, %v2693_v58  ;;  %v2694_v61 = vadd.f32 %v2686_v59, %v2640_v55 }
0x320d   :  { %v2688_v13 = vpop.f32.mrf.mxu0 }
0x320e   :  { %3281 = vtanh.f32 %v2697_v60  ;;  %v2698_v14 = vmul.f32 %v2694_v61, %v3456_v4  ;;  %v2695_v63 = vadd.f32 %v2688_v13, %v2641_v11 }
0x320f   :  { %v2690_v15 = vpop.f32.mrf.mxu0 }
0x3210   :  { %3283 = vtanh.f32 %v2698_v14  ;;  %v2699_v16 = vmul.f32 0.5, %v2695_v63  ;;  %v2696_v18 = vadd.f32 %v2690_v15, %v2642_v62 }
0x3212   :  { %3285 = vtanh.f32 %v2699_v16  ;;  %v2700_v1 = vmul.f32 %v2696_v18, %v3456_v4 }
0x3214   :  { %3287 = vtanh.f32 %v2700_v1 }
0x321b   :  { %v3282_v40 = vpop.eup %3281 }
0x321c   :  { %v2705_v19 = vmul.f32 0.5, %v3282_v40 }
0x321d   :  { %v3284_v0 = vpop.eup %3283 }
0x321e   :  { %v2706_v20 = vmul.f32 %v3284_v0, %v3456_v4  ;;  %v2709_v3 = vadd.f32 0.5, %v2705_v19 }
0x321f   :  { %v3286_v2 = vpop.eup %3285 }
0x3220   :  { %v2707_v5 = vmul.f32 0.5, %v3286_v2  ;;  %v2710_v6 = vadd.f32 %v2706_v20, %v3461_v17 }
0x3221   :  { %v3288_v7 = vpop.eup %3287 }
0x3222   :  { %v2715_v8 = vmul.f32 %v2710_v6, %v2709_v3  ;;  %v2708_v9 = vmul.f32 %v3288_v7, %v3456_v4  ;;  %v2711_v10 = vadd.f32 0.5, %v2707_v5  ;;  %v2733_v4 = vld [vmem:[#allocation7 + $0x10] sm:$0xff] }
0x3223   :  { %2927 = vmatprep.subr.mxu1 %v2733_v4 }
0x3224   :  { %2719 = vrot.lane.b32.xlu1 %v2715_v8, %s3410_s0  ;;  %v2712_v12 = vadd.f32 %v2708_v9, %v3461_v17  ;;  %2928 = vmatpush3.msra.mxu1 %v2733_v4  ;;  %v2713_v17 = vmul.f32 %v2709_v3, %v4038_v48  ;;  %v2714_v35 = vmul.f32 %v2711_v10, %v4041_v45 }
0x3225   :  { %2929 = vmatprep.subr.mxu1 %v2732_v37 }
0x3226   :  { %v2716_v22 = vmul.f32 %v2712_v12, %v2711_v10  ;;  %2930 = vmatpush3.msra.mxu1 %v2732_v37 }
0x3227   :  { %2931 = vmatprep.subr.mxu1 %v2731_v34 }
0x3228   :  { %2721 = vrot.lane.b32.xlu0 %v2716_v22, %s3410_s0  ;;  %2932 = vmatpush3.msra.mxu1 %v2731_v34 }
0x3296   :  { %v2720_v27 = vpop.permute.xlu1 %2719 }
0x3297   :  { %v2725_v28 = vadd.f32 %v2720_v27, %v2713_v17 }
0x3299   :  { %3289 = vtanh.f32 %v2725_v28 }
0x329a   :  { %v2722_v29 = vpop.permute.xlu0 %2721 }
0x329b   :  { %v2726_v32 = vadd.f32 %v2722_v29, %v2714_v35 }
0x329d   :  { %3291 = vtanh.f32 %v2726_v32 }
0x32a6   :  { %v3290_v41 = vpop.eup %3289 }
0x32a7   :  { %v2729_v33 = vmul.f32 %v3290_v41, %v2710_v6 }
0x32a9   :  { %2748 = vrot.lane.b32.xlu1 %v2729_v33, %s3410_s0 }
0x32aa   :  { %v3292_v31 = vpop.eup %3291 }
0x32ab   :  { %v2730_v46 = vmul.f32 %v3292_v31, %v2712_v12 }
0x32ad   :  { %2750 = vrot.lane.b32.xlu0 %v2730_v46, %s3410_s0 }
0x331b   :  { %v2749_v36 = vpop.permute.xlu1 %2748 }
0x331c   :  { %2933 = vmatprep.mubr.msk.f32.mxu1 %vm168_vm1, %v2749_v36 }
0x331f   :  { %v2751_v38 = vpop.permute.xlu0 %2750 }
0x3320   :  { %2934 = vmatmul.mubr.msk.f32.vlgmr.msra.gmra.mxu1 %vm168_vm1, %v2751_v38 }
0x33e0   :  { %v2935_v39 = vpop.f32.mrf.mxu1 }
0x33e1   :  { %v2828_v48 = vadd.f32 %v2935_v39, %v2904_v42 }
0x33e2   :  { %v2822_v43 = vpop.f32.mrf.mxu1 }
0x33e3   :  { %v2823_v44 = vadd.f32 %v2904_v42, %v2822_v43  ;;  %2833 = vmax.xlane.f32.xlu0 %v2828_v48 }
0x33e5   :  { %2831 = vmax.xlane.f32.xlu1 %v2823_v44 }
0x346c   :  { %v2834_v45 = vpop.xlane.xlu0 %2833 }
0x346d   :  { %v2836_v47 = vsub.f32 %v2828_v48, %v2834_v45 }
0x346e   :  { %v2832_v30 = vpop.xlane.xlu1 %2831 }
0x346f   :  { %v2839_v49 = vmul.f32 1.442695, %v2836_v47  ;;  %v2835_v50 = vsub.f32 %v2823_v44, %v2832_v30 }
0x3471   :  { %3293 = vpow2.f32 %v2839_v49  ;;  %v2837_v51 = vmul.f32 1.442695, %v2835_v50 }
0x3473   :  { %3295 = vpow2.f32 %v2837_v51 }
0x347e   :  { %v3294_v52 = vpop.eup %3293 }
0x347f   :  { %2843 = vadd.xlane.f32.xlu1 %v3294_v52 }
0x3480   :  { %v3296_v53 = vpop.eup %3295 }
0x3481   :  { %2841 = vadd.xlane.f32.xlu0 %v3296_v53 }
0x3508   :  { %v2844_v56 = vpop.xlane.xlu1 %2843 }
0x3509   :  { %3297 = vrcp.f32 %v2844_v56 }
0x350a   :  { %v2842_v54 = vpop.xlane.xlu0 %2841 }
0x350b   :  { %3299 = vrcp.f32 %v2842_v54 }
0x3516   :  { %v3298_v55 = vpop.eup %3297 }
0x3517   :  { %v2848_v57 = vmul.f32 %v3298_v55, %v3294_v52 }
0x3518   :  { %v3300_v58 = vpop.eup %3299 }
0x3519   :  { %v2846_v11 = vmul.f32 %v3300_v58, %v3296_v53  ;;  %2850 = vst [vmem:[#allocation8 + $0x8] sm:$0xff] %v2848_v57 }
0x351b   :  { %2849 = vst [vmem:[#allocation8] sm:$0xff] %v2846_v11 }
0x351c   :  { %3388 = shalt.err (!%p3385_p5)
}
0x351d   :  { %2862 = dma.vmem_to_hbm [thread:$0]  %s2857_s6, 256, %s4073_s4, [#allocation4], %s3405_s20, %s3405_s20, %s3406_s21  }
0x351e   :  { %3401 = dma.done.wait [#allocation4], 256  }
0x351f   :  { %3402 = vsyncadd [#allocation4], 4294967040 }
0x3520   :  { %2866 = vsyncpa [#allocation3], 1 }
0x3521   :  { %2867 = vsyncpa [#allocation6], 1 }
0x3522   :  { %2868 = vsyncpa [#allocation4], 1 }

</bundles_post_ra>
